<compile_context>
chip_gen: v5e
topology: v5e:2x2
jax: 0.10.0
libtpu: 0.0.40
codegen_flags: <defaults>
</compile_context>

<pallas_src>
import functools

import jax
import jax.numpy as jnp
import numpy as np
from jax.experimental import pallas as pl
from jax.experimental.pallas import tpu as pltpu

EPS = 1e-5     # PyTorch BatchNorm2d default eps
LANE = 128


def _round_up(x, m):
    return ((x + m - 1) // m) * m


def _basic_block_kernel(xph_ref, w1_ref, s1_ref, b1_ref, w2_ref, s2_ref, b2_ref,
                        *rest, stride, TH, RT, Wo, Cin_p, Cout_p, has_proj):
    # xph_ref: [1, s*s, Hqp, Wq, Cin_p]  stride-phase-decomposed, zero-padded bf16 input
    # w1_ref:  [9*Cin_p, Cout_p]  w2_ref: [9*Cout_p, Cout_p]   (tap-major, bf16)
    # s*/b*:   folded BN scale/bias, [1, Cout_p] f32
    if has_proj:
        ws_ref, ss_ref, bs_ref, out_ref, slab1_ref, y1p_ref, slab2_ref = rest
    else:
        out_ref, slab1_ref, y1p_ref, slab2_ref = rest

    s = stride
    rt = pl.program_id(1)
    r0 = rt * TH                       # first output row of this tile

    # ---- conv1: build im2col slab covering y1 rows [r0-1, r0+TH] (1-row halo) ----
    for kh in range(3):
        for kw in range(3):
            p = (kh % s) * s + (kw % s)
            ro, co = kh // s, kw // s
            t = kh * 3 + kw
            slab1_ref[:, :, t * Cin_p:(t + 1) * Cin_p] = (
                xph_ref[0, p, pl.ds(r0 + ro, TH + 2), co:co + Wo, :])

    # one big-K bf16 matmul on the MXU, f32 accumulation, fused BN1 + ReLU
    y1 = jnp.dot(slab1_ref[...].reshape((TH + 2) * Wo, 9 * Cin_p), w1_ref[...],
                 preferred_element_type=jnp.float32)
    y1 = jnp.maximum(y1 * s1_ref[...] + b1_ref[...], 0.0)

    # ---- write y1 (bf16) into W-padded scratch; zero only the 1-px border ----
    y1p_ref[:, 1:Wo + 1, :] = y1.reshape(TH + 2, Wo, Cout_p).astype(jnp.bfloat16)
    y1p_ref[:, 0:1, :] = jnp.zeros((TH + 2, 1, Cout_p), jnp.bfloat16)
    y1p_ref[:, Wo + 1:Wo + 2, :] = jnp.zeros((TH + 2, 1, Cout_p), jnp.bfloat16)

    @pl.when(rt == 0)
    def _():  # top of the image: y1 row r0-1 is conv2 zero padding
        y1p_ref[0:1, :, :] = jnp.zeros((1, Wo + 2, Cout_p), jnp.bfloat16)

    @pl.when(rt == RT - 1)
    def _():  # bottom of the image
        y1p_ref[TH + 1:TH + 2, :, :] = jnp.zeros((1, Wo + 2, Cout_p), jnp.bfloat16)

    # ---- conv2 (3x3, stride 1, pad 1): im2col over y1p, one big-K matmul + BN2 ----
    for kh in range(3):
        for kw in range(3):
            t = kh * 3 + kw
            slab2_ref[:, :, t * Cout_p:(t + 1) * Cout_p] = (
                y1p_ref[kh:kh + TH, kw:kw + Wo, :])

    acc2 = jnp.dot(slab2_ref[...].reshape(TH * Wo, 9 * Cout_p), w2_ref[...],
                   preferred_element_type=jnp.float32)
    acc2 = acc2 * s2_ref[...] + b2_ref[...]

    # ---- shortcut (identity, or 1x1 conv stride s + BN) ----
    p_s = (1 % s) * s + (1 % s)
    off = 1 // s
    xs = xph_ref[0, p_s, pl.ds(r0 + off + 1, TH), off:off + Wo, :]
    xs = xs.reshape(TH * Wo, Cin_p)
    if has_proj:
        sc = jnp.dot(xs, ws_ref[...], preferred_element_type=jnp.float32)
        sc = sc * ss_ref[...] + bs_ref[...]
    else:
        sc = xs.astype(jnp.float32)        # identity: stride == 1 and Cin_p == Cout_p

    out = jnp.maximum(acc2 + sc, 0.0)
    out_ref[...] = out.reshape(1, TH * Wo, Cout_p).astype(out_ref.dtype)


def _fold_bn(gamma, beta, mean, var, Cp):
    scale = (gamma / jnp.sqrt(var + EPS)).astype(jnp.float32)
    bias = (beta - mean * gamma / jnp.sqrt(var + EPS)).astype(jnp.float32)
    C = gamma.shape[0]
    s = jnp.zeros((1, Cp), jnp.float32).at[0, :C].set(scale)
    b = jnp.zeros((1, Cp), jnp.float32).at[0, :C].set(bias)
    return s, b


def _pad_c(a, axis, Cp):
    pad = [(0, 0)] * a.ndim
    pad[axis] = (0, Cp - a.shape[axis])
    return jnp.pad(a, pad)


def _pick_row_tile(Ho, Wo, max_tile_rows):
    # largest divisor of Ho s.t. the output block keeps a sublane-aligned row count
    TH = Ho
    for th in range(1, Ho + 1):
        if Ho % th == 0 and (th * Wo) % 8 == 0 and th * Wo <= max_tile_rows:
            TH = th
    return TH


def basic_block_pallas(x_nchw, params, stride, *, max_tile_rows=2048):
    N, Cin, H, W = x_nchw.shape
    w1 = params["w1"]
    Cout = w1.shape[-1]
    has_proj = (stride != 1) or (Cin != Cout)
    s = stride
    Ho = (H + 2 - 3) // s + 1
    Wo = (W + 2 - 3) // s + 1
    Cin_p = _round_up(Cin, LANE)
    Cout_p = _round_up(Cout, LANE)
    TH = _pick_row_tile(Ho, Wo, max_tile_rows)
    RT = Ho // TH

    # ---- layout glue: NHWC, bf16, lane-padded channels, spatial pad, phase decomp ----
    x = jnp.transpose(x_nchw, (0, 2, 3, 1)).astype(jnp.bfloat16)
    x = _pad_c(x, 3, Cin_p)
    xpad = jnp.pad(x, ((0, 0), (1, 1), (1, 1), (0, 0)))
    Hq = Ho + 2 // s
    Wq = Wo + 2 // s
    phases = []
    for ph in range(s):
        for pw in range(s):
            sub = xpad[:, ph::s, pw::s, :][:, :Hq, :Wq, :]
            pad_h, pad_w = Hq - sub.shape[1], Wq - sub.shape[2]
            if pad_h or pad_w:
                sub = jnp.pad(sub, ((0, 0), (0, pad_h), (0, pad_w), (0, 0)))
            phases.append(sub)
    xph = jnp.stack(phases, axis=1)                                  # [N, s*s, Hq, Wq, Cin_p]
    xph = jnp.pad(xph, ((0, 0), (0, 0), (1, 1), (0, 0), (0, 0)))     # halo rows for row tiling
    Hqp = Hq + 2

    # weights -> tap-major (9*C, Cout_p) bf16, zero-padded channels
    w1p = _pad_c(_pad_c(w1.astype(jnp.bfloat16), 2, Cin_p), 3, Cout_p)
    w1r = w1p.reshape(9 * Cin_p, Cout_p)
    w2p = _pad_c(_pad_c(params["w2"].astype(jnp.bfloat16), 2, Cout_p), 3, Cout_p)
    w2r = w2p.reshape(9 * Cout_p, Cout_p)

    s1, b1 = _fold_bn(params["g1"], params["b1"], params["m1"], params["v1"], Cout_p)
    s2, b2 = _fold_bn(params["g2"], params["b2"], params["m2"], params["v2"], Cout_p)

    args = [xph, w1r, s1, b1, w2r, s2, b2]
    in_specs = [
        pl.BlockSpec((1, s * s, Hqp, Wq, Cin_p), lambda n, rt: (n, 0, 0, 0, 0)),
        pl.BlockSpec((9 * Cin_p, Cout_p), lambda n, rt: (0, 0)),
        pl.BlockSpec((1, Cout_p), lambda n, rt: (0, 0)),
        pl.BlockSpec((1, Cout_p), lambda n, rt: (0, 0)),
        pl.BlockSpec((9 * Cout_p, Cout_p), lambda n, rt: (0, 0)),
        pl.BlockSpec((1, Cout_p), lambda n, rt: (0, 0)),
        pl.BlockSpec((1, Cout_p), lambda n, rt: (0, 0)),
    ]
    if has_proj:
        wsp = _pad_c(_pad_c(params["ws"].astype(jnp.bfloat16), 0, Cin_p), 1, Cout_p)
        ss, bs = _fold_bn(params["gs"], params["bs"], params["ms"], params["vs"], Cout_p)
        args += [wsp, ss, bs]
        in_specs += [
            pl.BlockSpec((Cin_p, Cout_p), lambda n, rt: (0, 0)),
            pl.BlockSpec((1, Cout_p), lambda n, rt: (0, 0)),
            pl.BlockSpec((1, Cout_p), lambda n, rt: (0, 0)),
        ]

    kernel = functools.partial(
        _basic_block_kernel, stride=s, TH=TH, RT=RT, Wo=Wo,
        Cin_p=Cin_p, Cout_p=Cout_p, has_proj=has_proj)

    flops = 2 * N * Ho * Wo * Cout_p * (9 * Cin_p + 9 * Cout_p)
    if has_proj:
        flops += 2 * N * Ho * Wo * Cout_p * Cin_p
    bytes_accessed = (xph.size * 2 + w1r.size * 2 + w2r.size * 2
                      + N * Ho * Wo * Cout_p * 4)

    out = pl.pallas_call(
        kernel,
        out_shape=jax.ShapeDtypeStruct((N, Ho * Wo, Cout_p), jnp.float32),
        grid=(N, RT),
        in_specs=in_specs,
        out_specs=pl.BlockSpec((1, TH * Wo, Cout_p), lambda n, rt: (n, rt, 0)),
        scratch_shapes=[
            pltpu.VMEM((TH + 2, Wo, 9 * Cin_p), jnp.bfloat16),    # conv1 im2col slab
            pltpu.VMEM((TH + 2, Wo + 2, Cout_p), jnp.bfloat16),   # 1-px padded y1 tile
            pltpu.VMEM((TH, Wo, 9 * Cout_p), jnp.bfloat16),       # conv2 im2col slab
        ],
        compiler_params=pltpu.CompilerParams(
            dimension_semantics=("parallel", "arbitrary")),
        cost_estimate=pl.CostEstimate(flops=flops, transcendentals=0,
                                      bytes_accessed=bytes_accessed),
    )(*args)

    out = out[:, :, :Cout].reshape(N, Ho, Wo, Cout)
    return jnp.transpose(out, (0, 3, 1, 2))   # NHWC -> NCHW


def init_params(key, in_channels, out_channels, stride):
    ks = jax.random.split(key, 15)
    p = {
        "w1": jax.random.normal(ks[0], (3, 3, in_channels, out_channels), jnp.float32) * 0.1,
        "g1": jax.random.uniform(ks[1], (out_channels,), jnp.float32, 0.5, 1.5),
        "b1": jax.random.normal(ks[2], (out_channels,), jnp.float32) * 0.1,
        "m1": jax.random.normal(ks[3], (out_channels,), jnp.float32) * 0.1,
        "v1": jax.random.uniform(ks[4], (out_channels,), jnp.float32, 0.5, 1.5),
        "w2": jax.random.normal(ks[5], (3, 3, out_channels, out_channels), jnp.float32) * 0.1,
        "g2": jax.random.uniform(ks[6], (out_channels,), jnp.float32, 0.5, 1.5),
        "b2": jax.random.normal(ks[7], (out_channels,), jnp.float32) * 0.1,
        "m2": jax.random.normal(ks[8], (out_channels,), jnp.float32) * 0.1,
        "v2": jax.random.uniform(ks[9], (out_channels,), jnp.float32, 0.5, 1.5),
    }
    if stride != 1 or in_channels != out_channels:
        p.update({
            "ws": jax.random.normal(ks[10], (in_channels, out_channels), jnp.float32) * 0.1,
            "gs": jax.random.uniform(ks[11], (out_channels,), jnp.float32, 0.5, 1.5),
            "bs": jax.random.normal(ks[12], (out_channels,), jnp.float32) * 0.1,
            "ms": jax.random.normal(ks[13], (out_channels,), jnp.float32) * 0.1,
            "vs": jax.random.uniform(ks[14], (out_channels,), jnp.float32, 0.5, 1.5),
        })
    return p


def basic_block_ref(x_nchw, params, stride, *, mirror_kernel_precision=False):
    # Pure-JAX reference (inference-mode BN). With mirror_kernel_precision=True it
    # mirrors the kernel's bf16 rounding points (inputs/weights and the y1 tensor),
    # giving a tight correctness check on the kernel logic itself.
    if mirror_kernel_precision:
        cast = lambda a: a.astype(jnp.bfloat16).astype(jnp.float32)
    else:
        cast = lambda a: a.astype(jnp.float32)

    x = cast(jnp.transpose(x_nchw, (0, 2, 3, 1)))
    Cin = x.shape[-1]
    Cout = params["w1"].shape[-1]
    has_proj = (stride != 1) or (Cin != Cout)

    def conv(inp, w, st, pad):
        return jax.lax.conv_general_dilated(
            inp, w, (st, st), [(pad, pad), (pad, pad)],
            dimension_numbers=("NHWC", "HWIO", "NHWC"))

    def bn(inp, g, b, m, v):
        return (inp - m) / jnp.sqrt(v + EPS) * g + b

    y = jnp.maximum(bn(conv(x, cast(params["w1"]), stride, 1),
                       params["g1"], params["b1"], params["m1"], params["v1"]), 0.0)
    y = cast(y)
    y = bn(conv(y, cast(params["w2"]), 1, 1),
           params["g2"], params["b2"], params["m2"], params["v2"])
    if has_proj:
        sc = bn(conv(x, cast(params["ws"])[None, None], stride, 0),
                params["gs"], params["bs"], params["ms"], params["vs"])
    else:
        sc = x
    out = jnp.maximum(y + sc, 0.0)
    return jnp.transpose(out, (0, 3, 1, 2))


def _check(out, x, p, stride):
    ref_mirror = basic_block_ref(x, p, stride, mirror_kernel_precision=True)
    ref_f32 = basic_block_ref(x, p, stride)
    # tight check of kernel logic (same bf16 rounding points as the kernel):
    np.testing.assert_allclose(np.asarray(out), np.asarray(ref_mirror), rtol=1e-2, atol=1e-2)
    # loose semantic check against full-f32 math (bf16 matmul inputs):
    np.testing.assert_allclose(np.asarray(out), np.asarray(ref_f32), rtol=5e-2, atol=1e-1)


if __name__ == "__main__":
    key = jax.random.PRNGKey(0)
    k_x1, k_p1, k_x2, k_p2 = jax.random.split(key, 4)

    # Case 1: projection shortcut (in=4 -> out=8, stride=2), x: [2, 4, 16, 16] NCHW
    x1 = jax.random.normal(k_x1, (2, 4, 16, 16), jnp.float32)
    p1 = init_params(k_p1, 4, 8, stride=2)
    out1a = jax.block_until_ready(basic_block_pallas(x1, p1, stride=2))                    # RT = 1
    out1b = jax.block_until_ready(basic_block_pallas(x1, p1, stride=2, max_tile_rows=32))  # RT = 2
    _check(out1a, x1, p1, 2)
    _check(out1b, x1, p1, 2)

    # Case 2: identity shortcut (in=out=8, stride=1), x: [2, 8, 16, 16] NCHW, RT = 4
    x2 = jax.random.normal(k_x2, (2, 8, 16, 16), jnp.float32)
    p2 = init_params(k_p2, 8, 8, stride=1)
    out2 = jax.block_until_ready(basic_block_pallas(x2, p2, stride=1, max_tile_rows=64))
    _check(out2, x2, p2, 1)

    print("KERNEL_OK")
</pallas_src>

<mosaic_0001>
module attributes {stable_mosaic.version = 11 : i64} {
  func.func @_basic_block_kernel(%arg0: i32, %arg1: i32, %arg2: memref<1x4x11x9x128xbf16, #tpu.memory_space<vmem>>, %arg3: memref<1152x128xbf16, #tpu.memory_space<vmem>>, %arg4: memref<1x128xf32, #tpu.memory_space<vmem>>, %arg5: memref<1x128xf32, #tpu.memory_space<vmem>>, %arg6: memref<1152x128xbf16, #tpu.memory_space<vmem>>, %arg7: memref<1x128xf32, #tpu.memory_space<vmem>>, %arg8: memref<1x128xf32, #tpu.memory_space<vmem>>, %arg9: memref<128x128xbf16, #tpu.memory_space<vmem>>, %arg10: memref<1x128xf32, #tpu.memory_space<vmem>>, %arg11: memref<1x128xf32, #tpu.memory_space<vmem>>, %arg12: memref<1x64x128xf32, #tpu.memory_space<vmem>>, %arg13: memref<10x8x1152xbf16, #tpu.memory_space<vmem>>, %arg14: memref<10x10x128xbf16, #tpu.memory_space<vmem>>, %arg15: memref<8x8x1152xbf16, #tpu.memory_space<vmem>>) attributes {dimension_semantics = [#tpu.dimension_semantics<parallel>, #tpu.dimension_semantics<arbitrary>], iteration_bounds = array<i64: 2, 1>, scalar_prefetch = 0 : i64, scratch_operands = 3 : i64, tpu.core_type = #tpu.core_type<tc>, window_params = [{transform_indices = @transform_0, window_bounds = array<i64: 1, 4, 11, 9, 128>}, {pipeline_mode = #tpu.pipeline_mode<synchronous>, transform_indices = @transform_1, window_bounds = array<i64: 1152, 128>}, {pipeline_mode = #tpu.pipeline_mode<synchronous>, transform_indices = @transform_2, window_bounds = array<i64: 1, 128>}, {pipeline_mode = #tpu.pipeline_mode<synchronous>, transform_indices = @transform_3, window_bounds = array<i64: 1, 128>}, {pipeline_mode = #tpu.pipeline_mode<synchronous>, transform_indices = @transform_4, window_bounds = array<i64: 1152, 128>}, {pipeline_mode = #tpu.pipeline_mode<synchronous>, transform_indices = @transform_5, window_bounds = array<i64: 1, 128>}, {pipeline_mode = #tpu.pipeline_mode<synchronous>, transform_indices = @transform_6, window_bounds = array<i64: 1, 128>}, {pipeline_mode = #tpu.pipeline_mode<synchronous>, transform_indices = @transform_7, window_bounds = array<i64: 128, 128>}, {pipeline_mode = #tpu.pipeline_mode<synchronous>, transform_indices = @transform_8, window_bounds = array<i64: 1, 128>}, {pipeline_mode = #tpu.pipeline_mode<synchronous>, transform_indices = @transform_9, window_bounds = array<i64: 1, 128>}, {transform_indices = @transform_10, window_bounds = array<i64: 1, 64, 128>}]} {
    %c8_i32 = arith.constant 8 : i32
    %0 = arith.muli %arg1, %c8_i32 : i32
    %c0_i32 = arith.constant 0 : i32
    %1 = arith.addi %0, %c0_i32 : i32
    %c0 = arith.constant 0 : index
    %c0_0 = arith.constant 0 : index
    %2 = arith.index_cast %1 : i32 to index
    %c0_1 = arith.constant 0 : index
    %c0_2 = arith.constant 0 : index
    %3 = vector.load %arg2[%c0, %c0_0, %2, %c0_1, %c0_2] : memref<1x4x11x9x128xbf16, #tpu.memory_space<vmem>>, vector<1x1x10x8x128xbf16>
    %4 = vector.shape_cast %3 : vector<1x1x10x8x128xbf16> to vector<10x8x128xbf16>
    %c0_3 = arith.constant 0 : index
    %c0_4 = arith.constant 0 : index
    %c0_5 = arith.constant 0 : index
    %5 = vector.load %arg13[%c0_3, %c0_4, %c0_5] : memref<10x8x1152xbf16, #tpu.memory_space<vmem>>, vector<10x8x128xbf16>
    tpu.vector_store %arg13[%c0_3, %c0_4, %c0_5], %4 {strides = array<i32>} : memref<10x8x1152xbf16, #tpu.memory_space<vmem>>, vector<10x8x128xbf16>,
    %c0_i32_6 = arith.constant 0 : i32
    %6 = arith.addi %0, %c0_i32_6 : i32
    %c0_7 = arith.constant 0 : index
    %c1 = arith.constant 1 : index
    %7 = arith.index_cast %6 : i32 to index
    %c0_8 = arith.constant 0 : index
    %c0_9 = arith.constant 0 : index
    %8 = vector.load %arg2[%c0_7, %c1, %7, %c0_8, %c0_9] : memref<1x4x11x9x128xbf16, #tpu.memory_space<vmem>>, vector<1x1x10x8x128xbf16>
    %9 = vector.shape_cast %8 : vector<1x1x10x8x128xbf16> to vector<10x8x128xbf16>
    %c0_10 = arith.constant 0 : index
    %c0_11 = arith.constant 0 : index
    %c128 = arith.constant 128 : index
    %10 = vector.load %arg13[%c0_10, %c0_11, %c128] : memref<10x8x1152xbf16, #tpu.memory_space<vmem>>, vector<10x8x128xbf16>
    tpu.vector_store %arg13[%c0_10, %c0_11, %c128], %9 {strides = array<i32>} : memref<10x8x1152xbf16, #tpu.memory_space<vmem>>, vector<10x8x128xbf16>,
    %c0_i32_12 = arith.constant 0 : i32
    %11 = arith.addi %0, %c0_i32_12 : i32
    %c0_13 = arith.constant 0 : index
    %c0_14 = arith.constant 0 : index
    %12 = arith.index_cast %11 : i32 to index
    %c1_15 = arith.constant 1 : index
    %c0_16 = arith.constant 0 : index
    %13 = vector.load %arg2[%c0_13, %c0_14, %12, %c1_15, %c0_16] : memref<1x4x11x9x128xbf16, #tpu.memory_space<vmem>>, vector<1x1x10x8x128xbf16>
    %14 = vector.shape_cast %13 : vector<1x1x10x8x128xbf16> to vector<10x8x128xbf16>
    %c0_17 = arith.constant 0 : index
    %c0_18 = arith.constant 0 : index
    %c256 = arith.constant 256 : index
    %15 = vector.load %arg13[%c0_17, %c0_18, %c256] : memref<10x8x1152xbf16, #tpu.memory_space<vmem>>, vector<10x8x128xbf16>
    tpu.vector_store %arg13[%c0_17, %c0_18, %c256], %14 {strides = array<i32>} : memref<10x8x1152xbf16, #tpu.memory_space<vmem>>, vector<10x8x128xbf16>,
    %c0_i32_19 = arith.constant 0 : i32
    %16 = arith.addi %0, %c0_i32_19 : i32
    %c0_20 = arith.constant 0 : index
    %c2 = arith.constant 2 : index
    %17 = arith.index_cast %16 : i32 to index
    %c0_21 = arith.constant 0 : index
    %c0_22 = arith.constant 0 : index
    %18 = vector.load %arg2[%c0_20, %c2, %17, %c0_21, %c0_22] : memref<1x4x11x9x128xbf16, #tpu.memory_space<vmem>>, vector<1x1x10x8x128xbf16>
    %19 = vector.shape_cast %18 : vector<1x1x10x8x128xbf16> to vector<10x8x128xbf16>
    %c0_23 = arith.constant 0 : index
    %c0_24 = arith.constant 0 : index
    %c384 = arith.constant 384 : index
    %20 = vector.load %arg13[%c0_23, %c0_24, %c384] : memref<10x8x1152xbf16, #tpu.memory_space<vmem>>, vector<10x8x128xbf16>
    tpu.vector_store %arg13[%c0_23, %c0_24, %c384], %19 {strides = array<i32>} : memref<10x8x1152xbf16, #tpu.memory_space<vmem>>, vector<10x8x128xbf16>,
    %c0_i32_25 = arith.constant 0 : i32
    %21 = arith.addi %0, %c0_i32_25 : i32
    %c0_26 = arith.constant 0 : index
    %c3 = arith.constant 3 : index
    %22 = arith.index_cast %21 : i32 to index
    %c0_27 = arith.constant 0 : index
    %c0_28 = arith.constant 0 : index
    %23 = vector.load %arg2[%c0_26, %c3, %22, %c0_27, %c0_28] : memref<1x4x11x9x128xbf16, #tpu.memory_space<vmem>>, vector<1x1x10x8x128xbf16>
    %24 = vector.shape_cast %23 : vector<1x1x10x8x128xbf16> to vector<10x8x128xbf16>
    %c0_29 = arith.constant 0 : index
    %c0_30 = arith.constant 0 : index
    %c512 = arith.constant 512 : index
    %25 = vector.load %arg13[%c0_29, %c0_30, %c512] : memref<10x8x1152xbf16, #tpu.memory_space<vmem>>, vector<10x8x128xbf16>
    tpu.vector_store %arg13[%c0_29, %c0_30, %c512], %24 {strides = array<i32>} : memref<10x8x1152xbf16, #tpu.memory_space<vmem>>, vector<10x8x128xbf16>,
    %c0_i32_31 = arith.constant 0 : i32
    %26 = arith.addi %0, %c0_i32_31 : i32
    %c0_32 = arith.constant 0 : index
    %c2_33 = arith.constant 2 : index
    %27 = arith.index_cast %26 : i32 to index
    %c1_34 = arith.constant 1 : index
    %c0_35 = arith.constant 0 : index
    %28 = vector.load %arg2[%c0_32, %c2_33, %27, %c1_34, %c0_35] : memref<1x4x11x9x128xbf16, #tpu.memory_space<vmem>>, vector<1x1x10x8x128xbf16>
    %29 = vector.shape_cast %28 : vector<1x1x10x8x128xbf16> to vector<10x8x128xbf16>
    %c0_36 = arith.constant 0 : index
    %c0_37 = arith.constant 0 : index
    %c640 = arith.constant 640 : index
    %30 = vector.load %arg13[%c0_36, %c0_37, %c640] : memref<10x8x1152xbf16, #tpu.memory_space<vmem>>, vector<10x8x128xbf16>
    tpu.vector_store %arg13[%c0_36, %c0_37, %c640], %29 {strides = array<i32>} : memref<10x8x1152xbf16, #tpu.memory_space<vmem>>, vector<10x8x128xbf16>,
    %c1_i32 = arith.constant 1 : i32
    %31 = arith.addi %0, %c1_i32 : i32
    %c0_38 = arith.constant 0 : index
    %c0_39 = arith.constant 0 : index
    %32 = arith.index_cast %31 : i32 to index
    %c0_40 = arith.constant 0 : index
    %c0_41 = arith.constant 0 : index
    %33 = vector.load %arg2[%c0_38, %c0_39, %32, %c0_40, %c0_41] : memref<1x4x11x9x128xbf16, #tpu.memory_space<vmem>>, vector<1x1x10x8x128xbf16>
    %34 = vector.shape_cast %33 : vector<1x1x10x8x128xbf16> to vector<10x8x128xbf16>
    %c0_42 = arith.constant 0 : index
    %c0_43 = arith.constant 0 : index
    %c768 = arith.constant 768 : index
    %35 = vector.load %arg13[%c0_42, %c0_43, %c768] : memref<10x8x1152xbf16, #tpu.memory_space<vmem>>, vector<10x8x128xbf16>
    tpu.vector_store %arg13[%c0_42, %c0_43, %c768], %34 {strides = array<i32>} : memref<10x8x1152xbf16, #tpu.memory_space<vmem>>, vector<10x8x128xbf16>,
    %c1_i32_44 = arith.constant 1 : i32
    %36 = arith.addi %0, %c1_i32_44 : i32
    %c0_45 = arith.constant 0 : index
    %c1_46 = arith.constant 1 : index
    %37 = arith.index_cast %36 : i32 to index
    %c0_47 = arith.constant 0 : index
    %c0_48 = arith.constant 0 : index
    %38 = vector.load %arg2[%c0_45, %c1_46, %37, %c0_47, %c0_48] : memref<1x4x11x9x128xbf16, #tpu.memory_space<vmem>>, vector<1x1x10x8x128xbf16>
    %39 = vector.shape_cast %38 : vector<1x1x10x8x128xbf16> to vector<10x8x128xbf16>
    %c0_49 = arith.constant 0 : index
    %c0_50 = arith.constant 0 : index
    %c896 = arith.constant 896 : index
    %40 = vector.load %arg13[%c0_49, %c0_50, %c896] : memref<10x8x1152xbf16, #tpu.memory_space<vmem>>, vector<10x8x128xbf16>
    tpu.vector_store %arg13[%c0_49, %c0_50, %c896], %39 {strides = array<i32>} : memref<10x8x1152xbf16, #tpu.memory_space<vmem>>, vector<10x8x128xbf16>,
    %c1_i32_51 = arith.constant 1 : i32
    %41 = arith.addi %0, %c1_i32_51 : i32
    %c0_52 = arith.constant 0 : index
    %c0_53 = arith.constant 0 : index
    %42 = arith.index_cast %41 : i32 to index
    %c1_54 = arith.constant 1 : index
    %c0_55 = arith.constant 0 : index
    %43 = vector.load %arg2[%c0_52, %c0_53, %42, %c1_54, %c0_55] : memref<1x4x11x9x128xbf16, #tpu.memory_space<vmem>>, vector<1x1x10x8x128xbf16>
    %44 = vector.shape_cast %43 : vector<1x1x10x8x128xbf16> to vector<10x8x128xbf16>
    %c0_56 = arith.constant 0 : index
    %c0_57 = arith.constant 0 : index
    %c1024 = arith.constant 1024 : index
    %45 = vector.load %arg13[%c0_56, %c0_57, %c1024] : memref<10x8x1152xbf16, #tpu.memory_space<vmem>>, vector<10x8x128xbf16>
    tpu.vector_store %arg13[%c0_56, %c0_57, %c1024], %44 {strides = array<i32>} : memref<10x8x1152xbf16, #tpu.memory_space<vmem>>, vector<10x8x128xbf16>,
    %c0_58 = arith.constant 0 : index
    %c0_59 = arith.constant 0 : index
    %c0_60 = arith.constant 0 : index
    %46 = vector.load %arg13[%c0_58, %c0_59, %c0_60] : memref<10x8x1152xbf16, #tpu.memory_space<vmem>>, vector<10x8x1152xbf16>
    %47 = vector.shape_cast %46 : vector<10x8x1152xbf16> to vector<80x1152xbf16>
    %c0_61 = arith.constant 0 : index
    %c0_62 = arith.constant 0 : index
    %48 = vector.load %arg3[%c0_61, %c0_62] : memref<1152x128xbf16, #tpu.memory_space<vmem>>, vector<1152x128xbf16>
    %cst = arith.constant dense<0.000000e+00> : vector<80x128xf32>
    %49 = tpu.matmul %47, %48, %cst {dimension_numbers = #tpu.dot_dimension_numbers<[1], [0], [0], [1], [0, 0, 1, 1], [], []>} : vector<80x1152xbf16>, vector<1152x128xbf16>, vector<80x128xf32> -> vector<80x128xf32>
    %c0_63 = arith.constant 0 : index
    %c0_64 = arith.constant 0 : index
    %50 = vector.load %arg4[%c0_63, %c0_64] : memref<1x128xf32, #tpu.memory_space<vmem>>, vector<1x128xf32>
    %51 = vector.broadcast %50 : vector<1x128xf32> to vector<80x128xf32>
    %52 = arith.mulf %49, %51 : vector<80x128xf32>
    %c0_65 = arith.constant 0 : index
    %c0_66 = arith.constant 0 : index
    %53 = vector.load %arg5[%c0_65, %c0_66] : memref<1x128xf32, #tpu.memory_space<vmem>>, vector<1x128xf32>
    %54 = vector.broadcast %53 : vector<1x128xf32> to vector<80x128xf32>
    %55 = arith.addf %52, %54 : vector<80x128xf32>
    %cst_67 = arith.constant 0.000000e+00 : f32
    %56 = vector.broadcast %cst_67 : f32 to vector<80x128xf32>
    %57 = arith.maximumf %55, %56 : vector<80x128xf32>
    %58 = vector.shape_cast %57 : vector<80x128xf32> to vector<10x8x128xf32>
    %59 = arith.truncf %58 : vector<10x8x128xf32> to vector<10x8x128xbf16>
    %c0_68 = arith.constant 0 : index
    %c1_69 = arith.constant 1 : index
    %c0_70 = arith.constant 0 : index
    %60 = vector.load %arg14[%c0_68, %c1_69, %c0_70] : memref<10x10x128xbf16, #tpu.memory_space<vmem>>, vector<10x8x128xbf16>
    tpu.vector_store %arg14[%c0_68, %c1_69, %c0_70], %59 {strides = array<i32>} : memref<10x10x128xbf16, #tpu.memory_space<vmem>>, vector<10x8x128xbf16>,
    %cst_71 = arith.constant 0.000000e+00 : bf16
    %61 = vector.broadcast %cst_71 : bf16 to vector<10x1x128xbf16>
    %c0_72 = arith.constant 0 : index
    %c0_73 = arith.constant 0 : index
    %c0_74 = arith.constant 0 : index
    %62 = vector.load %arg14[%c0_72, %c0_73, %c0_74] : memref<10x10x128xbf16, #tpu.memory_space<vmem>>, vector<10x1x128xbf16>
    tpu.vector_store %arg14[%c0_72, %c0_73, %c0_74], %61 {strides = array<i32>} : memref<10x10x128xbf16, #tpu.memory_space<vmem>>, vector<10x1x128xbf16>,
    %cst_75 = arith.constant 0.000000e+00 : bf16
    %63 = vector.broadcast %cst_75 : bf16 to vector<10x1x128xbf16>
    %c0_76 = arith.constant 0 : index
    %c9 = arith.constant 9 : index
    %c0_77 = arith.constant 0 : index
    %64 = vector.load %arg14[%c0_76, %c9, %c0_77] : memref<10x10x128xbf16, #tpu.memory_space<vmem>>, vector<10x1x128xbf16>
    tpu.vector_store %arg14[%c0_76, %c9, %c0_77], %63 {strides = array<i32>} : memref<10x10x128xbf16, #tpu.memory_space<vmem>>, vector<10x1x128xbf16>,
    %c0_i32_78 = arith.constant 0 : i32
    %65 = arith.cmpi eq, %arg1, %c0_i32_78 : i32
    %66 = arith.extui %65 : i1 to i32
    %c0_i32_79 = arith.constant 0 : i32
    %67 = arith.cmpi ne, %66, %c0_i32_79 : i32
    scf.if %67 {
      %cst_163 = arith.constant 0.000000e+00 : bf16
      %118 = vector.broadcast %cst_163 : bf16 to vector<1x10x128xbf16>
      %c0_164 = arith.constant 0 : index
      %c0_165 = arith.constant 0 : index
      %c0_166 = arith.constant 0 : index
      %119 = vector.load %arg14[%c0_164, %c0_165, %c0_166] : memref<10x10x128xbf16, #tpu.memory_space<vmem>>, vector<1x10x128xbf16>
      tpu.vector_store %arg14[%c0_164, %c0_165, %c0_166], %118 {strides = array<i32>} : memref<10x10x128xbf16, #tpu.memory_space<vmem>>, vector<1x10x128xbf16>,
    } else {
    }
    %c0_i32_80 = arith.constant 0 : i32
    %68 = arith.cmpi eq, %arg1, %c0_i32_80 : i32
    %69 = arith.extui %68 : i1 to i32
    %c0_i32_81 = arith.constant 0 : i32
    %70 = arith.cmpi ne, %69, %c0_i32_81 : i32
    scf.if %70 {
      %cst_163 = arith.constant 0.000000e+00 : bf16
      %118 = vector.broadcast %cst_163 : bf16 to vector<1x10x128xbf16>
      %c9_164 = arith.constant 9 : index
      %c0_165 = arith.constant 0 : index
      %c0_166 = arith.constant 0 : index
      %119 = vector.load %arg14[%c9_164, %c0_165, %c0_166] : memref<10x10x128xbf16, #tpu.memory_space<vmem>>, vector<1x10x128xbf16>
      tpu.vector_store %arg14[%c9_164, %c0_165, %c0_166], %118 {strides = array<i32>} : memref<10x10x128xbf16, #tpu.memory_space<vmem>>, vector<1x10x128xbf16>,
    } else {
    }
    %c0_82 = arith.constant 0 : index
    %c0_83 = arith.constant 0 : index
    %c0_84 = arith.constant 0 : index
    %71 = vector.load %arg14[%c0_82, %c0_83, %c0_84] : memref<10x10x128xbf16, #tpu.memory_space<vmem>>, vector<8x8x128xbf16>
    %c0_85 = arith.constant 0 : index
    %c0_86 = arith.constant 0 : index
    %c0_87 = arith.constant 0 : index
    %72 = vector.load %arg15[%c0_85, %c0_86, %c0_87] : memref<8x8x1152xbf16, #tpu.memory_space<vmem>>, vector<8x8x128xbf16>
    tpu.vector_store %arg15[%c0_85, %c0_86, %c0_87], %71 {strides = array<i32>} : memref<8x8x1152xbf16, #tpu.memory_space<vmem>>, vector<8x8x128xbf16>,
    %c0_88 = arith.constant 0 : index
    %c1_89 = arith.constant 1 : index
    %c0_90 = arith.constant 0 : index
    %73 = vector.load %arg14[%c0_88, %c1_89, %c0_90] : memref<10x10x128xbf16, #tpu.memory_space<vmem>>, vector<8x8x128xbf16>
    %c0_91 = arith.constant 0 : index
    %c0_92 = arith.constant 0 : index
    %c128_93 = arith.constant 128 : index
    %74 = vector.load %arg15[%c0_91, %c0_92, %c128_93] : memref<8x8x1152xbf16, #tpu.memory_space<vmem>>, vector<8x8x128xbf16>
    tpu.vector_store %arg15[%c0_91, %c0_92, %c128_93], %73 {strides = array<i32>} : memref<8x8x1152xbf16, #tpu.memory_space<vmem>>, vector<8x8x128xbf16>,
    %c0_94 = arith.constant 0 : index
    %c2_95 = arith.constant 2 : index
    %c0_96 = arith.constant 0 : index
    %75 = vector.load %arg14[%c0_94, %c2_95, %c0_96] : memref<10x10x128xbf16, #tpu.memory_space<vmem>>, vector<8x8x128xbf16>
    %c0_97 = arith.constant 0 : index
    %c0_98 = arith.constant 0 : index
    %c256_99 = arith.constant 256 : index
    %76 = vector.load %arg15[%c0_97, %c0_98, %c256_99] : memref<8x8x1152xbf16, #tpu.memory_space<vmem>>, vector<8x8x128xbf16>
    tpu.vector_store %arg15[%c0_97, %c0_98, %c256_99], %75 {strides = array<i32>} : memref<8x8x1152xbf16, #tpu.memory_space<vmem>>, vector<8x8x128xbf16>,
    %c1_100 = arith.constant 1 : index
    %c0_101 = arith.constant 0 : index
    %c0_102 = arith.constant 0 : index
    %77 = vector.load %arg14[%c1_100, %c0_101, %c0_102] : memref<10x10x128xbf16, #tpu.memory_space<vmem>>, vector<8x8x128xbf16>
    %c0_103 = arith.constant 0 : index
    %c0_104 = arith.constant 0 : index
    %c384_105 = arith.constant 384 : index
    %78 = vector.load %arg15[%c0_103, %c0_104, %c384_105] : memref<8x8x1152xbf16, #tpu.memory_space<vmem>>, vector<8x8x128xbf16>
    tpu.vector_store %arg15[%c0_103, %c0_104, %c384_105], %77 {strides = array<i32>} : memref<8x8x1152xbf16, #tpu.memory_space<vmem>>, vector<8x8x128xbf16>,
    %c1_106 = arith.constant 1 : index
    %c1_107 = arith.constant 1 : index
    %c0_108 = arith.constant 0 : index
    %79 = vector.load %arg14[%c1_106, %c1_107, %c0_108] : memref<10x10x128xbf16, #tpu.memory_space<vmem>>, vector<8x8x128xbf16>
    %c0_109 = arith.constant 0 : index
    %c0_110 = arith.constant 0 : index
    %c512_111 = arith.constant 512 : index
    %80 = vector.load %arg15[%c0_109, %c0_110, %c512_111] : memref<8x8x1152xbf16, #tpu.memory_space<vmem>>, vector<8x8x128xbf16>
    tpu.vector_store %arg15[%c0_109, %c0_110, %c512_111], %79 {strides = array<i32>} : memref<8x8x1152xbf16, #tpu.memory_space<vmem>>, vector<8x8x128xbf16>,
    %c1_112 = arith.constant 1 : index
    %c2_113 = arith.constant 2 : index
    %c0_114 = arith.constant 0 : index
    %81 = vector.load %arg14[%c1_112, %c2_113, %c0_114] : memref<10x10x128xbf16, #tpu.memory_space<vmem>>, vector<8x8x128xbf16>
    %c0_115 = arith.constant 0 : index
    %c0_116 = arith.constant 0 : index
    %c640_117 = arith.constant 640 : index
    %82 = vector.load %arg15[%c0_115, %c0_116, %c640_117] : memref<8x8x1152xbf16, #tpu.memory_space<vmem>>, vector<8x8x128xbf16>
    tpu.vector_store %arg15[%c0_115, %c0_116, %c640_117], %81 {strides = array<i32>} : memref<8x8x1152xbf16, #tpu.memory_space<vmem>>, vector<8x8x128xbf16>,
    %c2_118 = arith.constant 2 : index
    %c0_119 = arith.constant 0 : index
    %c0_120 = arith.constant 0 : index
    %83 = vector.load %arg14[%c2_118, %c0_119, %c0_120] : memref<10x10x128xbf16, #tpu.memory_space<vmem>>, vector<8x8x128xbf16>
    %c0_121 = arith.constant 0 : index
    %c0_122 = arith.constant 0 : index
    %c768_123 = arith.constant 768 : index
    %84 = vector.load %arg15[%c0_121, %c0_122, %c768_123] : memref<8x8x1152xbf16, #tpu.memory_space<vmem>>, vector<8x8x128xbf16>
    tpu.vector_store %arg15[%c0_121, %c0_122, %c768_123], %83 {strides = array<i32>} : memref<8x8x1152xbf16, #tpu.memory_space<vmem>>, vector<8x8x128xbf16>,
    %c2_124 = arith.constant 2 : index
    %c1_125 = arith.constant 1 : index
    %c0_126 = arith.constant 0 : index
    %85 = vector.load %arg14[%c2_124, %c1_125, %c0_126] : memref<10x10x128xbf16, #tpu.memory_space<vmem>>, vector<8x8x128xbf16>
    %c0_127 = arith.constant 0 : index
    %c0_128 = arith.constant 0 : index
    %c896_129 = arith.constant 896 : index
    %86 = vector.load %arg15[%c0_127, %c0_128, %c896_129] : memref<8x8x1152xbf16, #tpu.memory_space<vmem>>, vector<8x8x128xbf16>
    tpu.vector_store %arg15[%c0_127, %c0_128, %c896_129], %85 {strides = array<i32>} : memref<8x8x1152xbf16, #tpu.memory_space<vmem>>, vector<8x8x128xbf16>,
    %c2_130 = arith.constant 2 : index
    %c2_131 = arith.constant 2 : index
    %c0_132 = arith.constant 0 : index
    %87 = vector.load %arg14[%c2_130, %c2_131, %c0_132] : memref<10x10x128xbf16, #tpu.memory_space<vmem>>, vector<8x8x128xbf16>
    %c0_133 = arith.constant 0 : index
    %c0_134 = arith.constant 0 : index
    %c1024_135 = arith.constant 1024 : index
    %88 = vector.load %arg15[%c0_133, %c0_134, %c1024_135] : memref<8x8x1152xbf16, #tpu.memory_space<vmem>>, vector<8x8x128xbf16>
    tpu.vector_store %arg15[%c0_133, %c0_134, %c1024_135], %87 {strides = array<i32>} : memref<8x8x1152xbf16, #tpu.memory_space<vmem>>, vector<8x8x128xbf16>,
    %c0_136 = arith.constant 0 : index
    %c0_137 = arith.constant 0 : index
    %c0_138 = arith.constant 0 : index
    %89 = vector.load %arg15[%c0_136, %c0_137, %c0_138] : memref<8x8x1152xbf16, #tpu.memory_space<vmem>>, vector<8x8x1152xbf16>
    %90 = vector.shape_cast %89 : vector<8x8x1152xbf16> to vector<64x1152xbf16>
    %c0_139 = arith.constant 0 : index
    %c0_140 = arith.constant 0 : index
    %91 = vector.load %arg6[%c0_139, %c0_140] : memref<1152x128xbf16, #tpu.memory_space<vmem>>, vector<1152x128xbf16>
    %cst_141 = arith.constant dense<0.000000e+00> : vector<64x128xf32>
    %92 = tpu.matmul %90, %91, %cst_141 {dimension_numbers = #tpu.dot_dimension_numbers<[1], [0], [0], [1], [0, 0, 1, 1], [], []>} : vector<64x1152xbf16>, vector<1152x128xbf16>, vector<64x128xf32> -> vector<64x128xf32>
    %c0_142 = arith.constant 0 : index
    %c0_143 = arith.constant 0 : index
    %93 = vector.load %arg7[%c0_142, %c0_143] : memref<1x128xf32, #tpu.memory_space<vmem>>, vector<1x128xf32>
    %94 = vector.broadcast %93 : vector<1x128xf32> to vector<64x128xf32>
    %95 = arith.mulf %92, %94 : vector<64x128xf32>
    %c0_144 = arith.constant 0 : index
    %c0_145 = arith.constant 0 : index
    %96 = vector.load %arg8[%c0_144, %c0_145] : memref<1x128xf32, #tpu.memory_space<vmem>>, vector<1x128xf32>
    %97 = vector.broadcast %96 : vector<1x128xf32> to vector<64x128xf32>
    %98 = arith.addf %95, %97 : vector<64x128xf32>
    %c0_i32_146 = arith.constant 0 : i32
    %99 = arith.addi %0, %c0_i32_146 : i32
    %c1_i32_147 = arith.constant 1 : i32
    %100 = arith.addi %99, %c1_i32_147 : i32
    %c0_148 = arith.constant 0 : index
    %c3_149 = arith.constant 3 : index
    %101 = arith.index_cast %100 : i32 to index
    %c0_150 = arith.constant 0 : index
    %c0_151 = arith.constant 0 : index
    %102 = vector.load %arg2[%c0_148, %c3_149, %101, %c0_150, %c0_151] : memref<1x4x11x9x128xbf16, #tpu.memory_space<vmem>>, vector<1x1x8x8x128xbf16>
    %103 = vector.shape_cast %102 : vector<1x1x8x8x128xbf16> to vector<8x8x128xbf16>
    %104 = vector.shape_cast %103 : vector<8x8x128xbf16> to vector<64x128xbf16>
    %c0_152 = arith.constant 0 : index
    %c0_153 = arith.constant 0 : index
    %105 = vector.load %arg9[%c0_152, %c0_153] : memref<128x128xbf16, #tpu.memory_space<vmem>>, vector<128x128xbf16>
    %cst_154 = arith.constant dense<0.000000e+00> : vector<64x128xf32>
    %106 = tpu.matmul %104, %105, %cst_154 {dimension_numbers = #tpu.dot_dimension_numbers<[1], [0], [0], [1], [0, 0, 1, 1], [], []>} : vector<64x128xbf16>, vector<128x128xbf16>, vector<64x128xf32> -> vector<64x128xf32>
    %c0_155 = arith.constant 0 : index
    %c0_156 = arith.constant 0 : index
    %107 = vector.load %arg10[%c0_155, %c0_156] : memref<1x128xf32, #tpu.memory_space<vmem>>, vector<1x128xf32>
    %108 = vector.broadcast %107 : vector<1x128xf32> to vector<64x128xf32>
    %109 = arith.mulf %106, %108 : vector<64x128xf32>
    %c0_157 = arith.constant 0 : index
    %c0_158 = arith.constant 0 : index
    %110 = vector.load %arg11[%c0_157, %c0_158] : memref<1x128xf32, #tpu.memory_space<vmem>>, vector<1x128xf32>
    %111 = vector.broadcast %110 : vector<1x128xf32> to vector<64x128xf32>
    %112 = arith.addf %109, %111 : vector<64x128xf32>
    %113 = arith.addf %98, %112 : vector<64x128xf32>
    %cst_159 = arith.constant 0.000000e+00 : f32
    %114 = vector.broadcast %cst_159 : f32 to vector<64x128xf32>
    %115 = arith.maximumf %113, %114 : vector<64x128xf32>
    %116 = vector.shape_cast %115 : vector<64x128xf32> to vector<1x64x128xf32>
    %c0_160 = arith.constant 0 : index
    %c0_161 = arith.constant 0 : index
    %c0_162 = arith.constant 0 : index
    %117 = vector.load %arg12[%c0_160, %c0_161, %c0_162] : memref<1x64x128xf32, #tpu.memory_space<vmem>>, vector<1x64x128xf32>
    tpu.vector_store %arg12[%c0_160, %c0_161, %c0_162], %116 {strides = array<i32>} : memref<1x64x128xf32, #tpu.memory_space<vmem>>, vector<1x64x128xf32>,
    return
  }
  func.func @transform_0(%arg0: i32, %arg1: i32) -> (i32, i32, i32, i32, i32) {
    %c0_i32 = arith.constant 0 : i32
    %c0_i32_0 = arith.constant 0 : i32
    %c0_i32_1 = arith.constant 0 : i32
    %c0_i32_2 = arith.constant 0 : i32
    %c0_i32_3 = arith.constant 0 : i32
    return %arg0, %c0_i32, %c0_i32_0, %c0_i32_1, %c0_i32_2 : i32, i32, i32, i32, i32
  }
  func.func @transform_1(%arg0: i32, %arg1: i32) -> (i32, i32) {
    %c0_i32 = arith.constant 0 : i32
    %c0_i32_0 = arith.constant 0 : i32
    %c0_i32_1 = arith.constant 0 : i32
    return %c0_i32, %c0_i32_0 : i32, i32
  }
  func.func @transform_2(%arg0: i32, %arg1: i32) -> (i32, i32) {
    %c0_i32 = arith.constant 0 : i32
    %c0_i32_0 = arith.constant 0 : i32
    %c0_i32_1 = arith.constant 0 : i32
    return %c0_i32, %c0_i32_0 : i32, i32
  }
  func.func @transform_3(%arg0: i32, %arg1: i32) -> (i32, i32) {
    %c0_i32 = arith.constant 0 : i32
    %c0_i32_0 = arith.constant 0 : i32
    %c0_i32_1 = arith.constant 0 : i32
    return %c0_i32, %c0_i32_0 : i32, i32
  }
  func.func @transform_4(%arg0: i32, %arg1: i32) -> (i32, i32) {
    %c0_i32 = arith.constant 0 : i32
    %c0_i32_0 = arith.constant 0 : i32
    %c0_i32_1 = arith.constant 0 : i32
    return %c0_i32, %c0_i32_0 : i32, i32
  }
  func.func @transform_5(%arg0: i32, %arg1: i32) -> (i32, i32) {
    %c0_i32 = arith.constant 0 : i32
    %c0_i32_0 = arith.constant 0 : i32
    %c0_i32_1 = arith.constant 0 : i32
    return %c0_i32, %c0_i32_0 : i32, i32
  }
  func.func @transform_6(%arg0: i32, %arg1: i32) -> (i32, i32) {
    %c0_i32 = arith.constant 0 : i32
    %c0_i32_0 = arith.constant 0 : i32
    %c0_i32_1 = arith.constant 0 : i32
    return %c0_i32, %c0_i32_0 : i32, i32
  }
  func.func @transform_7(%arg0: i32, %arg1: i32) -> (i32, i32) {
    %c0_i32 = arith.constant 0 : i32
    %c0_i32_0 = arith.constant 0 : i32
    %c0_i32_1 = arith.constant 0 : i32
    return %c0_i32, %c0_i32_0 : i32, i32
  }
  func.func @transform_8(%arg0: i32, %arg1: i32) -> (i32, i32) {
    %c0_i32 = arith.constant 0 : i32
    %c0_i32_0 = arith.constant 0 : i32
    %c0_i32_1 = arith.constant 0 : i32
    return %c0_i32, %c0_i32_0 : i32, i32
  }
  func.func @transform_9(%arg0: i32, %arg1: i32) -> (i32, i32) {
    %c0_i32 = arith.constant 0 : i32
    %c0_i32_0 = arith.constant 0 : i32
    %c0_i32_1 = arith.constant 0 : i32
    return %c0_i32, %c0_i32_0 : i32, i32
  }
  func.func @transform_10(%arg0: i32, %arg1: i32) -> (i32, i32, i32) {
    %c0_i32 = arith.constant 0 : i32
    %c0_i32_0 = arith.constant 0 : i32
    return %arg0, %arg1, %c0_i32 : i32, i32, i32
  }
}

</mosaic_0001>

<bundles_post_ra>
// kernel: tpu_custom_call.1
= control target key start
LH: loop header
LB: loop body
LE: loop exit
PB: predicated region body
PF: predicated region fallthrough
CT: control target
= control target key end

     0   :  { %s7274_s0 = inlined_call_operand.vmem [shape: bf16[2,4,11,9,128], index: 0, kind: input, shape index: {}]   ;;  %s7275_s1 = inlined_call_operand.vmem [shape: bf16[1152,128], index: 1, kind: input, shape index: {}]   ;;  %s7276_s2 = inlined_call_operand.vmem [shape: f32[1,128], index: 2, kind: input, shape index: {}]   ;;  %s7277_s3 = inlined_call_operand.vmem [shape: f32[1,128], index: 3, kind: input, shape index: {}]   ;;  %s7278_s4 = inlined_call_operand.hbm [shape: bf16[1152,128], index: 4, kind: input, shape index: {}]   ;;  %s7279_s5 = inlined_call_operand.vmem [shape: f32[1,128], index: 5, kind: input, shape index: {}]   ;;  %s7280_s6 = inlined_call_operand.vmem [shape: f32[1,128], index: 6, kind: input, shape index: {}]   ;;  %s7281_s7 = inlined_call_operand.vmem [shape: bf16[128,128], index: 7, kind: input, shape index: {}]   ;;  %s7282_s8 = inlined_call_operand.vmem [shape: f32[1,128], index: 8, kind: input, shape index: {}]   ;;  %s7283_s9 = inlined_call_operand.vmem [shape: f32[1,128], index: 9, kind: input, shape index: {}]   ;;  %s7284_s10 = inlined_call_operand.hbm [shape: f32[2,64,128], index: 10, kind: output, shape index: {}]  }
   0x1   :  { %7286 = sst [smem:[#allocation12_spill]] %s7278_s4 }
   0x2   :  { %15 = vsyncpa [#allocation6], 0 }
   0x3   :  { %16 = vsyncpa [#allocation7], 0 }
   0x4   :  { %18 = vsyncpa [#allocation7 + $0x1], 0  ;;  %s6220_s13 = smov 0   ;;  %s6222_s14 = smov 0  }
   0x5   :  { %s6224_s15 = smov 0   ;;  %s6226_s16 = smov 0  }
   0x6   :  { %s6228_s17 = smov 0   ;;  %s6230_s18 = smov 0  }
   0x7 LB: > { %s4637_s19 = sadd.s32 4294967295, %s6157_s18   ;;  %s4638_s20 = sadd.s32 4294967294, %s6157_s18   ;;  %s6157_s18 = sphi %s6230_s18, %s24_s18   ;;  %s6153_s17 = sphi %s6228_s17, %s7306_s17   ;;  %s6149_s16 = sphi %s6226_s16, %s7305_s16   ;;  %s6145_s15 = sphi %s6224_s15, %s7304_s15   ;;  %s6141_s14 = sphi %s6222_s14, %s7303_s14   ;;  %s6137_s13 = sphi %s6220_s13, %s7302_s13  }
   0x8   : > { %s36_s21 = sadd.s32 1, %s6153_s17  ;;  %s260_s22 = sadd.s32 1, %s6145_s15 }
   0x9   : > { %p38_p0 = scmp.ge.s32.totalorder %s36_s21, 2  ;;  %p270_p1 = scmp.ne.s32.totalorder %s6145_s15, %s6141_s14 }
   0xa   : > { %p271_p2 = scmp.eq.s32.totalorder %s4637_s19, 1  ;;  %p276_p3 = scmp.ne.s32.totalorder %s6141_s14, %s6137_s13 }
   0xb   : > { %s7308_s21 = smov (%p38_p0, %s36_s21), 0  ;;  %p277_p5 = scmp.eq.s32.totalorder %s4638_s20, 1 }
   0xc   : > { %7287 = sst [smem:[#allocation11_spill]] %s7308_s21  ;;  %p6260_p4 = por %p271_p2, %p270_p1 }
   0xd   : > { %s255_s24 = ssub.s32 %s6153_s17, %s7308_s21  ;;  %p4639_p6 = scmp.ge.s32.totalorder %s6157_s18, 1 }
   0xe   : > { %p258_p7 = scmp.eq.s32.totalorder %s255_s24, 0  ;;  %p6267_p8 = por %p277_p5, %p276_p3 }
   0xf   : > { %p284_p9 = scmp.lt.s32.totalorder %s6157_s18, 3  ;;  %p5982_p11 = scmp.eq.s32.totalorder %s4637_s19, 0 }
  0x10   : > { %s6273_s26 = scalar_select %p258_p7, %s6145_s15, %s260_s22  }
  0x11   : > { %p285_p10 = pnand %p4639_p6, %p284_p9  ;;  %s7290_s4 = sld [smem:[#allocation12_spill]] }
  0x12   : > { %s6159_s30 = smov [#allocation5]   ;;  %s6160_s12 = smov 64  }
  0x13   : > { %p5974_p12 = pneg %p285_p10  ;;  %s306_s11 = sshll.u32 %s6159_s30, 4  ;;  %s307_s11 = int_to_ptr.vmem [resolvable:$true] %s306_s11 }
  0x14   : > { %s6161_s20 = smov 4   ;;  %345 = sbr.rel (%p285_p10) target bundleno = 761 (0x2f9), region = 60 }
  0x15   : > { %p5975_p13 = pnand %p5982_p11, %p5974_p12 }
  0x17   : > { %s304_s29 = sshll.u32 %s7290_s4, 4  ;;  %s305_s29 = int_to_ptr.hbm [resolvable:$true] %s304_s29 }
  0x18   : > { %5977 = dma.hbm_to_vmem [thread:$0]  (!%p5975_p13), %s305_s29, 9216, %s307_s11, [#allocation6], %s6160_s12, %s6160_s12, %s6161_s20  }
  0x19   : > { %6128 = dma.done.wait (%p5982_p11), [#allocation6], 9216  }
  0x1a   : > { %6130 = vsyncadd (%p5982_p11), [#allocation6], 4294958080  ;;  %p384_p0 = scmp.lt.s32.totalorder %s6149_s16, 1  ;;  %v5773_v0 = vld [vmem:[%s7275_s1 + $0x38] sm:$0xff]  ;;  %v5772_v4 = vld [vmem:[%s7275_s1 + $0x30] sm:$0xff]  ;;  %vm2384_vm3 = vcmask 1043456  }
  0x1b   : > { %v5781_v1 = vld [vmem:[%s7275_s1 + $0x78] sm:$0xff]  ;;  %1930 = vmatpush.bf16.msra.mxu0 %v5773_v0  ;;  %v5780_v5 = vld [vmem:[%s7275_s1 + $0x70] sm:$0xff]  ;;  %v5771_v8 = vld [vmem:[%s7275_s1 + $0x28] sm:$0xff]  ;;  %vm458_vm0 = vsmask.f32 3328  ;;  %vm2390_vm5 = vcmask 1040384  }
  0x1c   : > { %v5789_v2 = vld [vmem:[%s7275_s1 + $0xb8] sm:$0xff]  ;;  %s385_s11 = scalar_select %p384_p0, %s6149_s16, 1  ;;  %1964 = vmatpush.bf16.msra.mxu1 %v5781_v1  ;;  %v5788_v6 = vld [vmem:[%s7275_s1 + $0xb0] sm:$0xff]  ;;  %v5779_v9 = vld [vmem:[%s7275_s1 + $0x68] sm:$0xff]  ;;  %vm459_vm1 = vsmask.f32 7440 }
  0x1d   : > { %v5797_v3 = vld [vmem:[%s7275_s1 + $0xf8] sm:$0xff]  ;;  %1998 = vmatpush.bf16.msra.mxu2 %v5789_v2  ;;  %v5796_v7 = vld [vmem:[%s7275_s1 + $0xf0] sm:$0xff]  ;;  %v5787_v10 = vld [vmem:[%s7275_s1 + $0xa8] sm:$0xff]  ;;  %vm2385_vm4 = vsmask.f32 7938  ;;  %vm2712_vm10 = vcmask 1042432  }
  0x1e   : > { %2032 = vmatpush.bf16.msra.mxu3 %v5797_v3  ;;  %s5967_s30 = smul.u32 352, %s385_s11  ;;  %v5795_v11 = vld [vmem:[%s7275_s1 + $0xe8] sm:$0xff]  ;;  %v5770_v12 = vld [vmem:[%s7275_s1 + $0x20] sm:$0xff]  ;;  %v5769_v19 = vld [vmem:[%s7275_s1 + $0x18] sm:$0xff]  ;;  %vm2391_vm6 = vsmask.f32 256 }
  0x1f   : > { %1931 = vmatpush.bf16.msra.mxu0 %v5772_v4  ;;  %v5778_v13 = vld [vmem:[%s7275_s1 + $0x60] sm:$0xff]  ;;  %v5777_v20 = vld [vmem:[%s7275_s1 + $0x58] sm:$0xff]  ;;  %v5768_v38 = vld [vmem:[%s7275_s1 + $0x10] sm:$0xff]  ;;  %vm2713_vm11 = vcmask 1046532   ;;  %s381_s22 = sand.u32 1, %s6141_s14   ;;  %s5958_s28 = sshll.u32 %s6149_s16, 6 }
  0x20   : > { %1965 = vmatpush.bf16.msra.mxu1 %v5780_v5  ;;  %s6325_s21 = scalar_lea.vmem %s7274_s0, %s5967_s30  ;;  %v5786_v14 = vld [vmem:[%s7275_s1 + $0xa0] sm:$0xff]  ;;  %v5785_v28 = vld [vmem:[%s7275_s1 + $0x98] sm:$0xff]  ;;  %v5776_v39 = vld [vmem:[%s7275_s1 + $0x50] sm:$0xff]  ;;  %s4644_s24 = sshll.u32 %s381_s22, 6 }
  0x21   : > { %1999 = vmatpush.bf16.msra.mxu2 %v5788_v6  ;;  %v5794_v15 = vld [vmem:[%s7275_s1 + $0xe0] sm:$0xff]  ;;  %v396_v17 = vld [vmem:[%s6325_s21 + $0x8] sm:$0xf]  ;;  %v4646_v18 = vld [vmem:[%s6325_s21 + $0x58] sm:$0xf]  ;;  %s7181_s27 = scalar_lea.vmem [#allocation8], %s4644_s24  ;;  %s4520_s11 = scalar_lea.hbm %s7284_s10, %s5958_s28 }
  0x22   : > { %2033 = vmatpush.bf16.msra.mxu3 %v5796_v7  ;;  %v395_v16 = vld [vmem:[%s6325_s21] sm:$0xf]  ;;  %406 = vst [vmem:[#allocation2 + $0x24] sm:$0xf] %v396_v17  ;;  %v439_v23 = vld [vmem:[%s6325_s21 + $0x4] sm:$0x1]  ;;  %vm6370_vm2 = vmor %vm458_vm0, %vm459_vm1 }
  0x23   : > { %1932 = vmatpush.bf16.msra.mxu0 %v5771_v8  ;;  %405 = vst [vmem:[#allocation2] sm:$0xf] %v395_v16  ;;  %v4647_v21 = vld [vmem:[%s6325_s21 + $0x60] sm:$0xf]  ;;  %v440_v24 = vld [vmem:[%s6325_s21 + $0x8] sm:$0xf]  ;;  %vm6783_vm7 = vmand %vm2384_vm3, %vm2385_vm4 }
  0x24   : > { %1966 = vmatpush.bf16.msra.mxu1 %v5779_v9  ;;  %v438_v22 = vld [vmem:[%s6325_s21] sm:$0xf]  ;;  %428 = vst [vmem:[#allocation2 + $0x4] sm:$0xf] %v4646_v18  ;;  %v441_v25 = vld [vmem:[%s6325_s21 + $0xc] sm:$0x1]  ;;  %vm6789_vm8 = vmand %vm2390_vm5, %vm2391_vm6 }
  0x25   : > { %2000 = vmatpush.bf16.msra.mxu2 %v5787_v10  ;;  %429 = vst [vmem:[#allocation2 + $0x28] sm:$0xf] %v4647_v21  ;;  %v462_v26 = vshrl.u32 %v438_v22, 16  ;;  %v465_v27 = vshll.u32 %v438_v22, 16  ;;  %v5793_v29 = vld [vmem:[%s7275_s1 + $0xd8] sm:$0xff]  ;;  %v471_v30 = vshll.u32 %v439_v23, 16  ;;  %vm6809_vm9 = vmand %vm2390_vm5, %vm2385_vm4 }
  0x26   : > { %2034 = vmatpush.bf16.msra.mxu3 %v5795_v11  ;;  %v476_v31 = vshrl.u32 %v440_v24, 16  ;;  %v479_v32 = vshll.u32 %v440_v24, 16  ;;  %v485_v33 = vshll.u32 %v441_v25, 16  ;;  %v4656_v36 = vld [vmem:[%s6325_s21 + $0xb0] sm:$0xf]  ;;  %v5767_v51 = vld [vmem:[%s7275_s1 + $0x8] sm:$0xff]  ;;  %vm6853_vm12 = vmor %vm2712_vm10, %vm2713_vm11 }
  0x27   : > { %1933 = vmatpush.bf16.msra.mxu0 %v5770_v12  ;;  %v464_v34 = vrot.slane %v462_v26, 4  ;;  %v467_v35 = vrot.slane %v465_v27, 5  ;;  %v4657_v37 = vld [vmem:[%s6325_s21 + $0xb8] sm:$0xf]  ;;  %634 = vst [vmem:[#allocation2 + $0xc] sm:$0xf] %v4656_v36 }
  0x28   : > { %1967 = vmatpush.bf16.msra.mxu1 %v5778_v13  ;;  %v478_v40 = vrot.slane %v476_v31, 4  ;;  %v481_v41 = vrot.slane %v479_v32, 5  ;;  %v5784_v42 = vld [vmem:[%s7275_s1 + $0x90] sm:$0xff]  ;;  %v473_v44 = vrot.slane %v471_v30, 5  ;;  %635 = vst [vmem:[#allocation2 + $0x30] sm:$0xf] %v4657_v37 }
  0x29   : > { %2001 = vmatpush.bf16.msra.mxu2 %v5786_v14  ;;  %v468_v43 = vor.u32 %v467_v35, %v464_v34  ;;  %v397_v45 = vld [vmem:[%s6325_s21 + $0x10] sm:$0xf]  ;;  %v487_v49 = vrot.slane %v485_v33, 5  ;;  %v398_v50 = vld [vmem:[%s6325_s21 + $0x18] sm:$0xf]  ;;  %v5775_v52 = vld [vmem:[%s7275_s1 + $0x48] sm:$0xff] }
  0x2a   : > { %2035 = vmatpush.bf16.msra.mxu3 %v5794_v15  ;;  %v5792_v46 = vld [vmem:[%s7275_s1 + $0xd0] sm:$0xff]  ;;  %v482_v48 = vor.u32 %v481_v41, %v478_v40  ;;  %407 = vst [vmem:[#allocation2 + $0x48] sm:$0xf] %v397_v45  ;;  %v5783_v54 = vld [vmem:[%s7275_s1 + $0x88] sm:$0xff]  ;;  %v4738_v61 = vld [vmem:[#allocation2] sm:$0xf] }
  0x2b   : > { %1934 = vmatpush.bf16.msra.mxu0 %v5769_v19  ;;  %v469_v53 = vrot.slane %v468_v43, 4  ;;  %408 = vst [vmem:[#allocation2 + $0x6c] sm:$0xf] %v398_v50  ;;  %v5791_v55 = vld [vmem:[%s7275_s1 + $0xc8] sm:$0xff]  ;;  %v4649_v59 = vld [vmem:[%s6325_s21 + $0x70] sm:$0xf] }
  0x2c   : > { %1968 = vmatpush.bf16.msra.mxu1 %v5777_v20  ;;  %v483_v56 = vrot.slane %v482_v48, 4  ;;  %v4648_v57 = vld [vmem:[%s6325_s21 + $0x68] sm:$0xf]  ;;  %v442_v60 = vld [vmem:[%s6325_s21 + $0x10] sm:$0xf]  ;;  %v5766_v2 = vld [vmem:[%s7275_s1] sm:$0xff] }
  0x2d   : > { %2002 = vmatpush.bf16.msra.mxu2 %v5785_v28  ;;  %v474_v58 = vsel %vm6370_vm2, %v469_v53, %v473_v44  ;;  %430 = vst [vmem:[#allocation2 + $0x4c] sm:$0xf] %v4648_v57  ;;  %v5725_v62 = vld [vmem:[#allocation2 + $0x20] sm:$0xf0]  ;;  %v443_v0 = vld [vmem:[%s6325_s21 + $0x14] sm:$0x1] }
  0x2e   : > { %2036 = vmatpush.bf16.msra.mxu3 %v5793_v29  ;;  %v488_v63 = vsel %vm6370_vm2, %v483_v56, %v487_v49  ;;  %611 = vst [vmem:[#allocation2 + $0x8] sm:$0xf] %v474_v58  ;;  %v444_v1 = vld [vmem:[%s6325_s21 + $0x18] sm:$0xf]  ;;  %v5774_v3 = vld [vmem:[%s7275_s1 + $0x40] sm:$0xff]  ;;  %v490_v7 = vshrl.u32 %v442_v60, 16  ;;  %v4739_v19 = vor.u32 %v5725_v62, %v4738_v61 }
  0x2f   : > { %1935 = vmatpush.bf16.msra.mxu0 %v5768_v38  ;;  %v5721_v4 = vld [vmem:[#allocation2 + $0x4] sm:$0xf]  ;;  %612 = vst [vmem:[#allocation2 + $0x2c] sm:$0xf] %v488_v63  ;;  %v445_v5 = vld [vmem:[%s6325_s21 + $0x1c] sm:$0x1] }
  0x30   : > { %1969 = vmatpush.bf16.msra.mxu1 %v5776_v39  ;;  %v4740_v6 = vld [vmem:[#allocation2 + $0x24] sm:$0xf0]  ;;  %431 = vst [vmem:[#allocation2 + $0x70] sm:$0xf] %v4649_v59  ;;  %v493_v8 = vshll.u32 %v442_v60, 16  ;;  %v5782_v9 = vld [vmem:[%s7275_s1 + $0x80] sm:$0xff] }
  0x31   : > { %2003 = vmatpush.bf16.msra.mxu2 %v5784_v42  ;;  %v5722_v10 = vld [vmem:[#allocation2 + $0xc] sm:$0xf]  ;;  %v499_v11 = vshll.u32 %v443_v0, 16  ;;  %v504_v12 = vshrl.u32 %v444_v1, 16  ;;  %v507_v13 = vshll.u32 %v444_v1, 16  ;;  %v5790_v14 = vld [vmem:[%s7275_s1 + $0xc0] sm:$0xff]  ;;  %v4743_v24 = vor.u32 %v5721_v4, %v4740_v6 }
  0x32   : > { %2037 = vmatpush.bf16.msra.mxu3 %v5792_v46  ;;  %v4748_v15 = vld [vmem:[#allocation2 + $0x2c] sm:$0xf0]  ;;  %v492_v16 = vrot.slane %v490_v7, 4  ;;  %v495_v17 = vrot.slane %v493_v8, 5  ;;  %v513_v18 = vshll.u32 %v445_v5, 16  ;;  %v5805_v20 = vld [vmem:[%s7275_s1 + $0x138] sm:$0xff] }
  0x33   : > { %1936 = vmatpush.bf16.msra.mxu0 %v5767_v51  ;;  %v506_v21 = vrot.slane %v504_v12, 4  ;;  %v509_v22 = vrot.slane %v507_v13, 5  ;;  %v4658_v23 = vld [vmem:[%s6325_s21 + $0xc0] sm:$0xf]  ;;  %v501_v26 = vrot.slane %v499_v11, 5  ;;  %v4751_v30 = vor.u32 %v5722_v10, %v4748_v15  ;;  %v5804_v36 = vld [vmem:[%s7275_s1 + $0x130] sm:$0xff] }
  0x34   : > { %1970 = vmatpush.bf16.msra.mxu1 %v5775_v52  ;;  %v496_v25 = vor.u32 %v495_v17, %v492_v16  ;;  %v515_v27 = vrot.slane %v513_v18, 5  ;;  %v4659_v28 = vld [vmem:[%s6325_s21 + $0xc8] sm:$0xf]  ;;  %636 = vst [vmem:[#allocation2 + $0x54] sm:$0xf] %v4658_v23  ;;  %v5802_v0 = vld [vmem:[%s7275_s1 + $0x120] sm:$0xff] }
  0x35   : > { %2004 = vmatpush.bf16.msra.mxu2 %v5783_v54  ;;  %v4746_v29 = vld [vmem:[#allocation2 + $0x8] sm:$0xf]  ;;  %v510_v31 = vor.u32 %v509_v22, %v506_v21  ;;  %v399_v32 = vld [vmem:[%s6325_s21 + $0x20] sm:$0xf]  ;;  %637 = vst [vmem:[#allocation2 + $0x78] sm:$0xf] %v4659_v28 }
  0x36   : > { %2038 = vmatpush.bf16.msra.mxu3 %v5791_v55  ;;  %v5726_v33 = vld [vmem:[#allocation2 + $0x28] sm:$0xf0]  ;;  %v497_v34 = vrot.slane %v496_v25, 4  ;;  %v400_v38 = vld [vmem:[%s6325_s21 + $0x28] sm:$0xf]  ;;  %s4521_s4 = sshll.u32 %s7181_s27, 4  ;;  %s4522_s4 = int_to_ptr.vmem [resolvable:$true] %s4521_s4 }
  0x37   : > { %1937 = vmatpush.bf16.msra.mxu0 %v5766_v2  ;;  %v4747_v35 = vor.u32 %v5726_v33, %v4746_v29  ;;  %v511_v37 = vrot.slane %v510_v31, 4  ;;  %409 = vst [vmem:[#allocation2 + $0x90] sm:$0xf] %v399_v32  ;;  %v4650_v40 = vld [vmem:[%s6325_s21 + $0x78] sm:$0xf]  ;;  %v5803_v43 = vld [vmem:[%s7275_s1 + $0x128] sm:$0xff] }
  0x38   : > { %1971 = vmatpush.bf16.msra.mxu1 %v5774_v3  ;;  %v502_v39 = vsel %vm6370_vm2, %v497_v34, %v501_v26  ;;  %v4651_v41 = vld [vmem:[%s6325_s21 + $0x80] sm:$0xf]  ;;  %v447_v45 = vld [vmem:[%s6325_s21 + $0x24] sm:$0x1]  ;;  %v448_v46 = vld [vmem:[%s6325_s21 + $0x28] sm:$0xf] }
  0x39   : > { %2005 = vmatpush.bf16.msra.mxu2 %v5782_v9  ;;  %v516_v42 = vsel %vm6370_vm2, %v511_v37, %v515_v27  ;;  %613 = vst [vmem:[#allocation2 + $0x50] sm:$0xf] %v502_v39  ;;  %v446_v44 = vld [vmem:[%s6325_s21 + $0x20] sm:$0xf]  ;;  %v449_v48 = vld [vmem:[%s6325_s21 + $0x2c] sm:$0x1] }
  0x3a   : > { %2039 = vmatpush.bf16.msra.mxu3 %v5790_v14  ;;  %1938 = vmatmul.bf16.vlgmr.msra.gmra.mxu0 %v4739_v19  ;;  %614 = vst [vmem:[#allocation2 + $0x74] sm:$0xf] %v516_v42  ;;  %v518_v49 = vshrl.u32 %v446_v44, 16  ;;  %v521_v50 = vshll.u32 %v446_v44, 16  ;;  %v527_v51 = vshll.u32 %v447_v45, 16  ;;  %v532_v52 = vshrl.u32 %v448_v46, 16 }
  0x3b   : > { %2066 = vmatpush.bf16.msrb.mxu0 %v5805_v20  ;;  %1972 = vmatmul.bf16.vlgmr.msra.gmra.mxu1 %v4743_v24  ;;  %410 = vst [vmem:[#allocation2 + $0xb4] sm:$0xf] %v400_v38  ;;  %v535_v53 = vshll.u32 %v448_v46, 16  ;;  %v541_v54 = vshll.u32 %v449_v48, 16  ;;  %v4660_v59 = vld [vmem:[%s6325_s21 + $0xd0] sm:$0xf] }
  0x3c   : > { %2006 = vmatmul.bf16.vlgmr.msra.gmra.mxu2 %v4747_v35  ;;  %432 = vst [vmem:[#allocation2 + $0x94] sm:$0xf] %v4650_v40  ;;  %v520_v55 = vrot.slane %v518_v49, 4  ;;  %v523_v56 = vrot.slane %v521_v50, 5  ;;  %v534_v57 = vrot.slane %v532_v52, 4  ;;  %v529_v2 = vrot.slane %v527_v51, 5 }
  0x3d   : > { %2040 = vmatmul.bf16.vlgmr.msra.gmra.mxu3 %v4751_v30  ;;  %433 = vst [vmem:[#allocation2 + $0xb8] sm:$0xf] %v4651_v41  ;;  %v537_v58 = vrot.slane %v535_v53, 5  ;;  %v4774_v60 = vld [vmem:[#allocation2 + $0x48] sm:$0xf]  ;;  %v543_v6 = vrot.slane %v541_v54, 5 }
  0x3e   : > { %v5734_v61 = vld [vmem:[#allocation2 + $0x68] sm:$0xf0]  ;;  %v4776_v63 = vld [vmem:[#allocation2 + $0x6c] sm:$0xf0]  ;;  %v524_v1 = vor.u32 %v523_v56, %v520_v55  ;;  %v4661_v3 = vld [vmem:[%s6325_s21 + $0xd8] sm:$0xf] }
  0x3f   : > { %2067 = vmatpush.bf16.msrb.mxu0 %v5804_v36  ;;  %v5730_v62 = vld [vmem:[#allocation2 + $0x4c] sm:$0xf]  ;;  %v5731_v4 = vld [vmem:[#allocation2 + $0x54] sm:$0xf]  ;;  %v538_v5 = vor.u32 %v537_v58, %v534_v57  ;;  %638 = vst [vmem:[#allocation2 + $0x9c] sm:$0xf] %v4660_v59  ;;  %v4775_v16 = vor.u32 %v5734_v61, %v4774_v60 }
  0x40   : > { %v401_v7 = vld [vmem:[%s6325_s21 + $0x30] sm:$0xf]  ;;  %v4784_v8 = vld [vmem:[#allocation2 + $0x74] sm:$0xf0]  ;;  %v525_v9 = vrot.slane %v524_v1, 4  ;;  %v4779_v17 = vor.u32 %v5730_v62, %v4776_v63  ;;  %v5819_v58 = vld [vmem:[%s7275_s1 + $0x1a8] sm:$0xff] }
  0x41   : > { %639 = vst [vmem:[#allocation2 + $0xc0] sm:$0xf] %v4661_v3  ;;  %v4782_v10 = vld [vmem:[#allocation2 + $0x50] sm:$0xf]  ;;  %v5735_v11 = vld [vmem:[#allocation2 + $0x70] sm:$0xf0]  ;;  %v4787_v22 = vor.u32 %v5731_v4, %v4784_v8 }
  0x42   : > { %v539_v12 = vrot.slane %v538_v5, 4  ;;  %v530_v13 = vsel %vm6370_vm2, %v525_v9, %v529_v2  ;;  %v5801_v14 = vld [vmem:[%s7275_s1 + $0x118] sm:$0xff]  ;;  %411 = vst [vmem:[#allocation2 + $0xd8] sm:$0xf] %v401_v7  ;;  %v4652_v19 = vld [vmem:[%s6325_s21 + $0x88] sm:$0xf]  ;;  %v4783_v21 = vor.u32 %v5735_v11, %v4782_v10 }
  0x43   : > { %2068 = vmatpush.bf16.msrb.mxu0 %v5803_v43  ;;  %v402_v15 = vld [vmem:[%s6325_s21 + $0x38] sm:$0xf]  ;;  %615 = vst [vmem:[#allocation2 + $0x98] sm:$0xf] %v530_v13  ;;  %v4653_v20 = vld [vmem:[%s6325_s21 + $0x90] sm:$0xf] }
  0x44   : > { %v544_v18 = vsel %vm6370_vm2, %v539_v12, %v543_v6  ;;  %v450_v23 = vld [vmem:[%s6325_s21 + $0x30] sm:$0xf]  ;;  %v451_v24 = vld [vmem:[%s6325_s21 + $0x34] sm:$0x1]  ;;  %412 = vst [vmem:[#allocation2 + $0xfc] sm:$0xf] %v402_v15 }
  0x45   : > { %616 = vst [vmem:[#allocation2 + $0xbc] sm:$0xf] %v544_v18  ;;  %v452_v25 = vld [vmem:[%s6325_s21 + $0x38] sm:$0xf]  ;;  %v453_v26 = vld [vmem:[%s6325_s21 + $0x3c] sm:$0x1] }
  0x46   : > { %434 = vst [vmem:[#allocation2 + $0xdc] sm:$0xf] %v4652_v19  ;;  %v546_v27 = vshrl.u32 %v450_v23, 16  ;;  %v549_v28 = vshll.u32 %v450_v23, 16  ;;  %v555_v29 = vshll.u32 %v451_v24, 16  ;;  %v560_v30 = vshrl.u32 %v452_v25, 16 }
  0x47   : > { %2069 = vmatpush.bf16.msrb.mxu0 %v5802_v0  ;;  %435 = vst [vmem:[#allocation2 + $0x100] sm:$0xf] %v4653_v20  ;;  %v563_v33 = vshll.u32 %v452_v25, 16  ;;  %v5821_v34 = vld [vmem:[%s7275_s1 + $0x1b8] sm:$0xff]  ;;  %v4662_v35 = vld [vmem:[%s6325_s21 + $0xe0] sm:$0xf] }
  0x48   : > { %v548_v31 = vrot.slane %v546_v27, 4  ;;  %v551_v32 = vrot.slane %v549_v28, 5  ;;  %v562_v36 = vrot.slane %v560_v30, 4  ;;  %v569_v37 = vshll.u32 %v453_v26, 16  ;;  %v5800_v38 = vld [vmem:[%s7275_s1 + $0x110] sm:$0xff]  ;;  %2134 = vmatpush.bf16.msrb.mxu2 %v5821_v34  ;;  %v5813_v43 = vld [vmem:[%s7275_s1 + $0x178] sm:$0xff] }
  0x49   : > { %v557_v40 = vrot.slane %v555_v29, 5  ;;  %v565_v41 = vrot.slane %v563_v33, 5  ;;  %v4663_v42 = vld [vmem:[%s6325_s21 + $0xe8] sm:$0xf]  ;;  %640 = vst [vmem:[#allocation2 + $0xe4] sm:$0xf] %v4662_v35  ;;  %2100 = vmatpush.bf16.msrb.mxu1 %v5813_v43 }
  0x4a   : > { %1943 = vmatmul.bf16.gmra.mxu0 %v4775_v16  ;;  %v552_v39 = vor.u32 %v551_v32, %v548_v31  ;;  %v5829_v44 = vld [vmem:[%s7275_s1 + $0x1f8] sm:$0xff]  ;;  %v571_v48 = vrot.slane %v569_v37, 5  ;;  %641 = vst [vmem:[#allocation2 + $0x108] sm:$0xf] %v4663_v42  ;;  %v5820_v49 = vld [vmem:[%s7275_s1 + $0x1b0] sm:$0xff]  ;;  %v5799_v63 = vld [vmem:[%s7275_s1 + $0x108] sm:$0xff] }
  0x4b   : > { %2070 = vmatpush.bf16.msrb.mxu0 %v5801_v14  ;;  %1977 = vmatmul.bf16.gmra.mxu1 %v4779_v17  ;;  %v566_v46 = vor.u32 %v565_v41, %v562_v36  ;;  %v5812_v50 = vld [vmem:[%s7275_s1 + $0x170] sm:$0xff]  ;;  %v4812_v55 = vld [vmem:[#allocation2 + $0xb4] sm:$0xf0]  ;;  %v5740_v61 = vld [vmem:[#allocation2 + $0x9c] sm:$0xf]  ;;  %s4523_s29 = sshll.u32 %s4520_s11, 4  ;;  %s4524_s29 = int_to_ptr.hbm [resolvable:$true] %s4523_s29 }
  0x4c   : > { %2011 = vmatmul.bf16.gmra.mxu2 %v4783_v21  ;;  %v553_v45 = vrot.slane %v552_v39, 4  ;;  %2168 = vmatpush.bf16.msrb.mxu3 %v5829_v44  ;;  %v5828_v51 = vld [vmem:[%s7275_s1 + $0x1f0] sm:$0xff]  ;;  %v4818_v59 = vld [vmem:[#allocation2 + $0x98] sm:$0xf]  ;;  %v5744_v60 = vld [vmem:[#allocation2 + $0xb8] sm:$0xf0] }
  0x4d   : > { %2045 = vmatmul.bf16.gmra.mxu3 %v4787_v22  ;;  %v4810_v52 = vld [vmem:[#allocation2 + $0x90] sm:$0xf]  ;;  %v5743_v53 = vld [vmem:[#allocation2 + $0xb0] sm:$0xf0]  ;;  %v567_v57 = vrot.slane %v566_v46, 4  ;;  %2135 = vmatpush.bf16.msrb.mxu2 %v5820_v49  ;;  %v5811_v1 = vld [vmem:[%s7275_s1 + $0x168] sm:$0xff]  ;;  %v4819_v13 = vor.u32 %v5744_v60, %v4818_v59 }
  0x4e   : > { %v5739_v54 = vld [vmem:[#allocation2 + $0x94] sm:$0xf]  ;;  %v558_v56 = vsel %vm6370_vm2, %v553_v45, %v557_v40  ;;  %v4820_v62 = vld [vmem:[#allocation2 + $0xbc] sm:$0xf0]  ;;  %2101 = vmatpush.bf16.msrb.mxu1 %v5812_v50  ;;  %v5827_v2 = vld [vmem:[%s7275_s1 + $0x1e8] sm:$0xff]  ;;  %v4811_v8 = vor.u32 %v5743_v53, %v4810_v52  ;;  %s4507_s16 = scalar_lea.sflag [#allocation7], %s381_s22 }
  0x4f   : > { %2071 = vmatpush.bf16.msrb.mxu0 %v5800_v38  ;;  %617 = vst [vmem:[#allocation2 + $0xe0] sm:$0xf] %v558_v56  ;;  %v572_v0 = vsel %vm6370_vm2, %v567_v57, %v571_v48  ;;  %v403_v3 = vld [vmem:[%s6325_s21 + $0x40] sm:$0xf]  ;;  %v404_v4 = vld [vmem:[%s6325_s21 + $0x48] sm:$0xf]  ;;  %v4815_v9 = vor.u32 %v5739_v54, %v4812_v55  ;;  %v4823_v14 = vor.u32 %v5740_v61, %v4820_v62 }
  0x50   : > { %618 = vst [vmem:[#allocation2 + $0x104] sm:$0xf] %v572_v0  ;;  %2169 = vmatpush.bf16.msrb.mxu3 %v5828_v51  ;;  %v4654_v5 = vld [vmem:[%s6325_s21 + $0x98] sm:$0xf]  ;;  %v5818_v6 = vld [vmem:[%s7275_s1 + $0x1a0] sm:$0xff]  ;;  %v5816_v38 = vld [vmem:[%s7275_s1 + $0x190] sm:$0xff] }
  0x51   : > { %2136 = vmatpush.bf16.msrb.mxu2 %v5819_v58  ;;  %413 = vst [vmem:[#allocation2 + $0x120] sm:$0xf] %v403_v3  ;;  %v4655_v7 = vld [vmem:[%s6325_s21 + $0xa0] sm:$0xf]  ;;  %v455_v15 = vld [vmem:[%s6325_s21 + $0x44] sm:$0x1] }
  0x52   : > { %v5810_v10 = vld [vmem:[%s7275_s1 + $0x160] sm:$0xff]  ;;  %414 = vst [vmem:[#allocation2 + $0x144] sm:$0xf] %v404_v4  ;;  %2102 = vmatpush.bf16.msrb.mxu1 %v5811_v1  ;;  %v456_v16 = vld [vmem:[%s6325_s21 + $0x48] sm:$0xf]  ;;  %v583_v20 = vshll.u32 %v455_v15, 16 }
  0x53   : > { %2072 = vmatpush.bf16.msrb.mxu0 %v5799_v63  ;;  %v5826_v11 = vld [vmem:[%s7275_s1 + $0x1e0] sm:$0xff]  ;;  %436 = vst [vmem:[#allocation2 + $0x124] sm:$0xf] %v4654_v5  ;;  %v457_v17 = vld [vmem:[%s6325_s21 + $0x4c] sm:$0x1]  ;;  %v588_v21 = vshrl.u32 %v456_v16, 16 }
  0x54   : > { %v454_v12 = vld [vmem:[%s6325_s21 + $0x40] sm:$0xf]  ;;  %2170 = vmatpush.bf16.msrb.mxu3 %v5827_v2  ;;  %437 = vst [vmem:[#allocation2 + $0x148] sm:$0xf] %v4655_v7  ;;  %v591_v22 = vshll.u32 %v456_v16, 16  ;;  %v597_v23 = vshll.u32 %v457_v17, 16 }
  0x55   : > { %v574_v18 = vshrl.u32 %v454_v12, 16  ;;  %v577_v19 = vshll.u32 %v454_v12, 16  ;;  %2137 = vmatpush.bf16.msrb.mxu2 %v5818_v6  ;;  %v5817_v26 = vld [vmem:[%s7275_s1 + $0x198] sm:$0xff]  ;;  %v4664_v27 = vld [vmem:[%s6325_s21 + $0xf0] sm:$0xf]  ;;  %v590_v28 = vrot.slane %v588_v21, 4 }
  0x56   : > { %v593_v29 = vrot.slane %v591_v22, 5  ;;  %2103 = vmatpush.bf16.msrb.mxu1 %v5810_v10  ;;  %v585_v31 = vrot.slane %v583_v20, 5  ;;  %v4665_v32 = vld [vmem:[%s6325_s21 + $0xf8] sm:$0xf]  ;;  %642 = vst [vmem:[#allocation2 + $0x12c] sm:$0xf] %v4664_v27 }
  0x57   : > { %v576_v24 = vrot.slane %v574_v18, 4  ;;  %v579_v25 = vrot.slane %v577_v19, 5  ;;  %v599_v34 = vrot.slane %v597_v23, 5  ;;  %643 = vst [vmem:[#allocation2 + $0x150] sm:$0xf] %v4665_v32  ;;  %v5809_v35 = vld [vmem:[%s7275_s1 + $0x158] sm:$0xff] }
  0x58   : > { %2171 = vmatpush.bf16.msrb.mxu3 %v5826_v11  ;;  %v594_v33 = vor.u32 %v593_v29, %v590_v28  ;;  %v5825_v36 = vld [vmem:[%s7275_s1 + $0x1d8] sm:$0xff]  ;;  %v5798_v39 = vld [vmem:[%s7275_s1 + $0x100] sm:$0xff]  ;;  %v5808_v42 = vld [vmem:[%s7275_s1 + $0x150] sm:$0xff]  ;;  %s6089_s12 = sshra.s32 %s4524_s29, 4  ;;  %s6095_s28 = scalar_lea.hbm %s7284_s10, 128  ;;  %s6090_s12 = int_to_ptr.hbm [resolvable:$true] %s6089_s12 }
  0x59   : > { %v580_v30 = vor.u32 %v579_v25, %v576_v24  ;;  %2138 = vmatpush.bf16.msrb.mxu2 %v5817_v26  ;;  %v5824_v43 = vld [vmem:[%s7275_s1 + $0x1d0] sm:$0xff]  ;;  %v4846_v44 = vld [vmem:[#allocation2 + $0xd8] sm:$0xf]  ;;  %v5752_v45 = vld [vmem:[#allocation2 + $0xf8] sm:$0xf0]  ;;  %2073 = vmatpush.bf16.msrb.mxu0 %v5798_v39  ;;  %s6091_s20 = scalar_lea.hbm %s6090_s12, 64  ;;  %p6096_p5 = scmp.lt.s32.totalorder %s6090_s12, %s7284_s10 }
  0x5a   : > { %1948 = vmatmul.bf16.gmra.mxu0 %v4811_v8  ;;  %v595_v40 = vrot.slane %v594_v33, 4  ;;  %2104 = vmatpush.bf16.msrb.mxu1 %v5809_v35  ;;  %v5748_v46 = vld [vmem:[#allocation2 + $0xdc] sm:$0xf]  ;;  %v4848_v48 = vld [vmem:[#allocation2 + $0xfc] sm:$0xf0]  ;;  %v5815_v54 = vld [vmem:[%s7275_s1 + $0x188] sm:$0xff]  ;;  %v4847_v0 = vor.u32 %v5752_v45, %v4846_v44  ;;  %p6092_p1 = scmp.ne.s32.totalorder %s6090_s12, %s6091_s20  ;;  %p6097_p6 = scmp.lt.s32.totalorder %s6095_s28, %s6091_s20 }
  0x5b   : > { %1982 = vmatmul.bf16.gmra.mxu1 %v4815_v9  ;;  %v581_v37 = vrot.slane %v580_v30, 4  ;;  %v4854_v49 = vld [vmem:[#allocation2 + $0xe0] sm:$0xf]  ;;  %v5753_v50 = vld [vmem:[#allocation2 + $0x100] sm:$0xf0]  ;;  %v5807_v57 = vld [vmem:[%s7275_s1 + $0x148] sm:$0xff]  ;;  %v4851_v1 = vor.u32 %v5748_v46, %v4848_v48 }
  0x5c   : > { %2016 = vmatmul.bf16.gmra.mxu2 %v4819_v13  ;;  %2172 = vmatpush.bf16.msrb.mxu3 %v5825_v36  ;;  %v5749_v51 = vld [vmem:[#allocation2 + $0xe4] sm:$0xf]  ;;  %v4856_v52 = vld [vmem:[#allocation2 + $0x104] sm:$0xf0]  ;;  %v600_v53 = vsel %vm6370_vm2, %v595_v40, %v599_v34  ;;  %v4667_v56 = vld [vmem:[%s6325_s21 + $0x110] sm:$0xf]  ;;  %v4855_v2 = vor.u32 %v5753_v50, %v4854_v49  ;;  %p6093_p2 = pnand %p6092_p1, %p6260_p4  ;;  %p6098_p7 = por %p6097_p6, %p6096_p5 }
  0x5d   : > { %2050 = vmatmul.bf16.gmra.mxu3 %v4823_v14  ;;  %v586_v41 = vsel %vm6370_vm2, %v581_v37, %v585_v31  ;;  %2139 = vmatpush.bf16.msrb.mxu2 %v5816_v38  ;;  %620 = vst [vmem:[#allocation2 + $0x14c] sm:$0xf] %v600_v53  ;;  %v4666_v55 = vld [vmem:[%s6325_s21 + $0x108] sm:$0xf]  ;;  %v5814_v60 = vld [vmem:[%s7275_s1 + $0x180] sm:$0xff]  ;;  %v4859_v3 = vor.u32 %v5749_v51, %v4856_v52  ;;  %v5837_v20 = vld [vmem:[%s7275_s1 + $0x238] sm:$0xff] }
  0x5e   : > { %619 = vst [vmem:[#allocation2 + $0x128] sm:$0xf] %v586_v41  ;;  %v4696_v58 = vld [vmem:[%s6325_s21 + $0x8] sm:$0xf]  ;;  %2105 = vmatpush.bf16.msrb.mxu1 %v5808_v42  ;;  %v4697_v61 = vld [vmem:[%s6325_s21 + $0x10] sm:$0xf]  ;;  %2202 = vmatpush.bf16.msra.mxu0 %v5837_v20  ;;  %p6094_p3 = pneg %p6093_p2 }
  0x5f   : > { %657 = vst [vmem:[#allocation2 + $0x10] sm:$0xf] %v4666_v55  ;;  %v5823_v59 = vld [vmem:[%s7275_s1 + $0x1c8] sm:$0xff]  ;;  %v4676_v62 = vld [vmem:[%s6325_s21 + $0xb0] sm:$0xf]  ;;  %v5806_v11 = vld [vmem:[%s7275_s1 + $0x140] sm:$0xff] }
  0x60   : > { %2173 = vmatpush.bf16.msrb.mxu3 %v5824_v43  ;;  %658 = vst [vmem:[#allocation2 + $0x34] sm:$0xf] %v4667_v56  ;;  %v4677_v63 = vld [vmem:[%s6325_s21 + $0xb4] sm:$0x1]  ;;  %v4678_v4 = vld [vmem:[%s6325_s21 + $0xb8] sm:$0xf]  ;;  %p6099_p9 = pnand %p6098_p7, %p6094_p3 }
  0x61   : > { %2140 = vmatpush.bf16.msrb.mxu2 %v5815_v54  ;;  %861 = vst [vmem:[#allocation2 + $0x18] sm:$0xf] %v4696_v58  ;;  %v4679_v5 = vld [vmem:[%s6325_s21 + $0xbc] sm:$0x1]  ;;  %v688_v6 = vshrl.u32 %v4676_v62, 16  ;;  %v691_v7 = vshll.u32 %v4676_v62, 16 }
  0x62   : > { %862 = vst [vmem:[#allocation2 + $0x3c] sm:$0xf] %v4697_v61  ;;  %v697_v8 = vshll.u32 %v4677_v63, 16  ;;  %v702_v9 = vshrl.u32 %v4678_v4, 16  ;;  %v4706_v10 = vld [vmem:[%s6325_s21 + $0x60] sm:$0xf]  ;;  %2106 = vmatpush.bf16.msrb.mxu1 %v5807_v57 }
  0x63   : > { %v5822_v12 = vld [vmem:[%s7275_s1 + $0x1c0] sm:$0xff]  ;;  %v705_v13 = vshll.u32 %v4678_v4, 16  ;;  %v711_v14 = vshll.u32 %v4679_v5, 16  ;;  %v4707_v15 = vld [vmem:[%s6325_s21 + $0x68] sm:$0xf]  ;;  %v690_v16 = vrot.slane %v688_v6, 4 }
  0x64   : > { %2174 = vmatpush.bf16.msrb.mxu3 %v5823_v59  ;;  %v693_v17 = vrot.slane %v691_v7, 5  ;;  %v704_v18 = vrot.slane %v702_v9, 4  ;;  %884 = vst [vmem:[#allocation2 + $0x1c] sm:$0xf] %v4706_v10  ;;  %v699_v22 = vrot.slane %v697_v8, 5  ;;  %v5836_v28 = vld [vmem:[%s7275_s1 + $0x230] sm:$0xff] }
  0x65   : > { %2141 = vmatpush.bf16.msrb.mxu2 %v5814_v60  ;;  %v707_v19 = vrot.slane %v705_v13, 5  ;;  %885 = vst [vmem:[#allocation2 + $0x40] sm:$0xf] %v4707_v15  ;;  %v713_v24 = vrot.slane %v711_v14, 5  ;;  %v4668_v25 = vld [vmem:[%s6325_s21 + $0x118] sm:$0xf]  ;;  %2203 = vmatpush.bf16.msra.mxu0 %v5836_v28 }
  0x66   : > { %v694_v21 = vor.u32 %v693_v17, %v690_v16  ;;  %2107 = vmatpush.bf16.msrb.mxu1 %v5806_v11  ;;  %v4669_v26 = vld [vmem:[%s6325_s21 + $0x120] sm:$0xf]  ;;  %659 = vst [vmem:[#allocation2 + $0x58] sm:$0xf] %v4668_v25  ;;  %v4681_v32 = vld [vmem:[%s6325_s21 + $0xc4] sm:$0x1] }
  0x67   : > { %v708_v23 = vor.u32 %v707_v19, %v704_v18  ;;  %660 = vst [vmem:[#allocation2 + $0x7c] sm:$0xf] %v4669_v26  ;;  %v4680_v30 = vld [vmem:[%s6325_s21 + $0xc0] sm:$0xf]  ;;  %v4682_v33 = vld [vmem:[%s6325_s21 + $0xc8] sm:$0xf] }
  0x68   : > { %2175 = vmatpush.bf16.msrb.mxu3 %v5822_v12  ;;  %v695_v27 = vrot.slane %v694_v21, 4  ;;  %v4698_v35 = vld [vmem:[%s6325_s21 + $0x18] sm:$0xf]  ;;  %v4699_v36 = vld [vmem:[%s6325_s21 + $0x20] sm:$0xf]  ;;  %v716_v43 = vshrl.u32 %v4680_v30, 16 }
  0x69   : > { %v709_v29 = vrot.slane %v708_v23, 4  ;;  %v4882_v37 = vld [vmem:[#allocation2 + $0x120] sm:$0xf]  ;;  %v5761_v38 = vld [vmem:[#allocation2 + $0x140] sm:$0xf0]  ;;  %v719_v44 = vshll.u32 %v4680_v30, 16 }
  0x6a   : > { %1953 = vmatmul.bf16.gmra.mxu0 %v4847_v0  ;;  %v700_v31 = vsel %vm6370_vm2, %v695_v27, %v699_v22  ;;  %v5757_v39 = vld [vmem:[#allocation2 + $0x124] sm:$0xf]  ;;  %v4884_v40 = vld [vmem:[#allocation2 + $0x144] sm:$0xf0]  ;;  %v5758_v41 = vld [vmem:[#allocation2 + $0x12c] sm:$0xf]  ;;  %v4883_v60 = vor.u32 %v5761_v38, %v4882_v37 }
  0x6b   : > { %1987 = vmatmul.bf16.gmra.mxu1 %v4851_v1  ;;  %v714_v34 = vsel %vm6370_vm2, %v709_v29, %v713_v24  ;;  %837 = vst [vmem:[#allocation2 + $0x14] sm:$0xf] %v700_v31  ;;  %v4683_v42 = vld [vmem:[%s6325_s21 + $0xcc] sm:$0x1]  ;;  %v4892_v45 = vld [vmem:[#allocation2 + $0x14c] sm:$0xf0]  ;;  %v4887_v61 = vor.u32 %v5757_v39, %v4884_v40 }
  0x6c   : > { %2021 = vmatmul.bf16.gmra.mxu2 %v4855_v2  ;;  %838 = vst [vmem:[#allocation2 + $0x38] sm:$0xf] %v714_v34  ;;  %v725_v46 = vshll.u32 %v4681_v32, 16  ;;  %v730_v48 = vshrl.u32 %v4682_v33, 16  ;;  %v718_v49 = vrot.slane %v716_v43, 4  ;;  %v721_v50 = vrot.slane %v719_v44, 5 }
  0x6d   : > { %2055 = vmatmul.bf16.gmra.mxu3 %v4859_v3  ;;  %863 = vst [vmem:[#allocation2 + $0x60] sm:$0xf] %v4698_v35  ;;  %v733_v51 = vshll.u32 %v4682_v33, 16  ;;  %v4890_v52 = vld [vmem:[#allocation2 + $0x128] sm:$0xf]  ;;  %v739_v55 = vshll.u32 %v4683_v42, 16  ;;  %v4895_v62 = vor.u32 %v5758_v41, %v4892_v45 }
  0x6e   : > { %864 = vst [vmem:[#allocation2 + $0x84] sm:$0xf] %v4699_v36  ;;  %v5762_v53 = vld [vmem:[#allocation2 + $0x148] sm:$0xf0]  ;;  %v732_v54 = vrot.slane %v730_v48, 4  ;;  %v722_v56 = vor.u32 %v721_v50, %v718_v49  ;;  %v727_v57 = vrot.slane %v725_v46, 5 }
  0x6f   : > { %v735_v58 = vrot.slane %v733_v51, 5  ;;  %v4708_v59 = vld [vmem:[%s6325_s21 + $0x70] sm:$0xf]  ;;  %v4709_v63 = vld [vmem:[%s6325_s21 + $0x78] sm:$0xf]  ;;  %v4891_v0 = vor.u32 %v5762_v53, %v4890_v52  ;;  %v741_v3 = vrot.slane %v739_v55, 5 }
  0x70   : > { %886 = vst [vmem:[#allocation2 + $0x64] sm:$0xf] %v4708_v59  ;;  %v723_v1 = vrot.slane %v722_v56, 4  ;;  %v4684_v6 = vld [vmem:[%s6325_s21 + $0xd0] sm:$0xf]  ;;  %v5835_v9 = vld [vmem:[%s7275_s1 + $0x228] sm:$0xff] }
  0x71   : > { %v736_v2 = vor.u32 %v735_v58, %v732_v54  ;;  %887 = vst [vmem:[#allocation2 + $0x88] sm:$0xf] %v4709_v63  ;;  %v4686_v7 = vld [vmem:[%s6325_s21 + $0xd8] sm:$0xf]  ;;  %v4670_v10 = vld [vmem:[%s6325_s21 + $0x128] sm:$0xf]  ;;  %2204 = vmatpush.bf16.msra.mxu0 %v5835_v9 }
  0x72   : > { %v728_v4 = vsel %vm6370_vm2, %v723_v1, %v727_v57  ;;  %v744_v11 = vshrl.u32 %v4684_v6, 16  ;;  %v747_v12 = vshll.u32 %v4684_v6, 16  ;;  %v4671_v13 = vld [vmem:[%s6325_s21 + $0x130] sm:$0xf]  ;;  %v758_v14 = vshrl.u32 %v4686_v7, 16  ;;  %v5834_v16 = vld [vmem:[%s7275_s1 + $0x220] sm:$0xff] }
  0x73   : > { %v737_v5 = vrot.slane %v736_v2, 4  ;;  %839 = vst [vmem:[#allocation2 + $0x5c] sm:$0xf] %v728_v4  ;;  %v761_v15 = vshll.u32 %v4686_v7, 16  ;;  %v4685_v17 = vld [vmem:[%s6325_s21 + $0xd4] sm:$0x1] }
  0x74   : > { %661 = vst [vmem:[#allocation2 + $0xa0] sm:$0xf] %v4670_v10  ;;  %v4687_v18 = vld [vmem:[%s6325_s21 + $0xdc] sm:$0x1]  ;;  %v746_v19 = vrot.slane %v744_v11, 4  ;;  %v749_v20 = vrot.slane %v747_v12, 5 }
  0x75   : > { %v742_v8 = vsel %vm6370_vm2, %v737_v5, %v741_v3  ;;  %662 = vst [vmem:[#allocation2 + $0xc4] sm:$0xf] %v4671_v13  ;;  %v753_v21 = vshll.u32 %v4685_v17, 16  ;;  %v4700_v22 = vld [vmem:[%s6325_s21 + $0x28] sm:$0xf]  ;;  %v760_v24 = vrot.slane %v758_v14, 4  ;;  %2205 = vmatpush.bf16.msra.mxu0 %v5834_v16 }
  0x76   : > { %840 = vst [vmem:[#allocation2 + $0x80] sm:$0xf] %v742_v8  ;;  %v4701_v23 = vld [vmem:[%s6325_s21 + $0x30] sm:$0xf]  ;;  %v763_v25 = vrot.slane %v761_v15, 5  ;;  %v750_v29 = vor.u32 %v749_v20, %v746_v19  ;;  %v767_v31 = vshll.u32 %v4687_v18, 16 }
  0x77   : > { %v4754_v26 = vld [vmem:[#allocation2 + $0x10] sm:$0xf]  ;;  %v5727_v27 = vld [vmem:[#allocation2 + $0x30] sm:$0xf0]  ;;  %865 = vst [vmem:[#allocation2 + $0xa8] sm:$0xf] %v4700_v22 }
  0x78   : > { %v5723_v28 = vld [vmem:[#allocation2 + $0x14] sm:$0xf]  ;;  %v755_v30 = vrot.slane %v753_v21, 5  ;;  %v4762_v32 = vld [vmem:[#allocation2 + $0x18] sm:$0xf]  ;;  %v764_v35 = vor.u32 %v763_v25, %v760_v24  ;;  %v751_v39 = vrot.slane %v750_v29, 4  ;;  %v4755_v44 = vor.u32 %v5727_v27, %v4754_v26 }
  0x79   : > { %v5728_v33 = vld [vmem:[#allocation2 + $0x38] sm:$0xf0]  ;;  %866 = vst [vmem:[#allocation2 + $0xcc] sm:$0xf] %v4701_v23  ;;  %v4710_v36 = vld [vmem:[%s6325_s21 + $0x80] sm:$0xf] }
  0x7a   : > { %1958 = vmatmul.bf16.gmra.mxu0 %v4883_v60  ;;  %v5724_v34 = vld [vmem:[#allocation2 + $0x1c] sm:$0xf]  ;;  %v4711_v37 = vld [vmem:[%s6325_s21 + $0x88] sm:$0xf]  ;;  %v4756_v38 = vld [vmem:[#allocation2 + $0x34] sm:$0xf0]  ;;  %v756_v43 = vsel %vm6370_vm2, %v751_v39, %v755_v30  ;;  %v4763_v48 = vor.u32 %v5728_v33, %v4762_v32 }
  0x7b   : > { %1992 = vmatmul.bf16.gmra.mxu1 %v4887_v61  ;;  %v769_v40 = vrot.slane %v767_v31, 5  ;;  %888 = vst [vmem:[#allocation2 + $0xac] sm:$0xf] %v4710_v36  ;;  %v4764_v41 = vld [vmem:[#allocation2 + $0x3c] sm:$0xf0]  ;;  %v765_v42 = vrot.slane %v764_v35, 4  ;;  %v4759_v45 = vor.u32 %v5723_v28, %v4756_v38 }
  0x7c   : > { %2026 = vmatmul.bf16.gmra.mxu2 %v4891_v0  ;;  %889 = vst [vmem:[#allocation2 + $0xd0] sm:$0xf] %v4711_v37  ;;  %v4767_v49 = vor.u32 %v5724_v34, %v4764_v41  ;;  %v4688_v50 = vld [vmem:[%s6325_s21 + $0xe0] sm:$0xf]  ;;  %v4690_v51 = vld [vmem:[%s6325_s21 + $0xe8] sm:$0xf] }
  0x7d   : > { %2060 = vmatmul.bf16.gmra.mxu3 %v4895_v62  ;;  %v770_v46 = vsel %vm6370_vm2, %v765_v42, %v769_v40  ;;  %841 = vst [vmem:[#allocation2 + $0xa4] sm:$0xf] %v756_v43  ;;  %v772_v52 = vshrl.u32 %v4688_v50, 16  ;;  %v775_v53 = vshll.u32 %v4688_v50, 16  ;;  %v786_v54 = vshrl.u32 %v4690_v51, 16  ;;  %v5833_v55 = vld [vmem:[%s7275_s1 + $0x218] sm:$0xff] }
  0x7e   : > { %842 = vst [vmem:[#allocation2 + $0xc8] sm:$0xf] %v770_v46  ;;  %v789_v56 = vshll.u32 %v4690_v51, 16  ;;  %2206 = vmatpush.bf16.msra.mxu0 %v5833_v55  ;;  %v4689_v60 = vld [vmem:[%s6325_s21 + $0xe4] sm:$0x1]  ;;  %v5832_v32 = vld [vmem:[%s7275_s1 + $0x210] sm:$0xff] }
  0x7f   : > { %v774_v57 = vrot.slane %v772_v52, 4  ;;  %v777_v58 = vrot.slane %v775_v53, 5  ;;  %v788_v59 = vrot.slane %v786_v54, 4  ;;  %v4691_v61 = vld [vmem:[%s6325_s21 + $0xec] sm:$0x1]  ;;  %v781_v63 = vshll.u32 %v4689_v60, 16 }
  0x80   : > { %v791_v0 = vrot.slane %v789_v56, 5  ;;  %v795_v1 = vshll.u32 %v4691_v61, 16  ;;  %v4672_v2 = vld [vmem:[%s6325_s21 + $0x138] sm:$0xf]  ;;  %v4673_v3 = vld [vmem:[%s6325_s21 + $0x140] sm:$0xf] }
  0x81   : > { %v778_v62 = vor.u32 %v777_v58, %v774_v57  ;;  %v4702_v4 = vld [vmem:[%s6325_s21 + $0x38] sm:$0xf]  ;;  %v5736_v7 = vld [vmem:[#allocation2 + $0x78] sm:$0xf0]  ;;  %663 = vst [vmem:[#allocation2 + $0xe8] sm:$0xf] %v4672_v2 }
  0x82   : > { %v792_v5 = vor.u32 %v791_v0, %v788_v59  ;;  %v4790_v6 = vld [vmem:[#allocation2 + $0x58] sm:$0xf]  ;;  %v4703_v8 = vld [vmem:[%s6325_s21 + $0x40] sm:$0xf]  ;;  %v783_v10 = vrot.slane %v781_v63, 5  ;;  %v797_v15 = vrot.slane %v795_v1, 5  ;;  %2207 = vmatpush.bf16.msra.mxu0 %v5832_v32 }
  0x83   : > { %v779_v9 = vrot.slane %v778_v62, 4  ;;  %v4798_v11 = vld [vmem:[#allocation2 + $0x60] sm:$0xf]  ;;  %v5737_v12 = vld [vmem:[#allocation2 + $0x80] sm:$0xf0]  ;;  %v4791_v23 = vor.u32 %v5736_v7, %v4790_v6 }
  0x84   : > { %v5733_v13 = vld [vmem:[#allocation2 + $0x64] sm:$0xf]  ;;  %664 = vst [vmem:[#allocation2 + $0x10c] sm:$0xf] %v4673_v3  ;;  %v793_v14 = vrot.slane %v792_v5, 4  ;;  %v4799_v25 = vor.u32 %v5737_v12, %v4798_v11  ;;  %v5831_v5 = vld [vmem:[%s7275_s1 + $0x208] sm:$0xff] }
  0x85   : > { %v5732_v16 = vld [vmem:[#allocation2 + $0x5c] sm:$0xf]  ;;  %v4792_v17 = vld [vmem:[#allocation2 + $0x7c] sm:$0xf0]  ;;  %867 = vst [vmem:[#allocation2 + $0xf0] sm:$0xf] %v4702_v4  ;;  %v784_v18 = vsel %vm6370_vm2, %v779_v9, %v783_v10 }
  0x86   : > { %v4800_v19 = vld [vmem:[#allocation2 + $0x84] sm:$0xf0]  ;;  %868 = vst [vmem:[#allocation2 + $0x114] sm:$0xf] %v4703_v8  ;;  %v798_v20 = vsel %vm6370_vm2, %v793_v14, %v797_v15  ;;  %v4712_v21 = vld [vmem:[%s6325_s21 + $0x90] sm:$0xf]  ;;  %v4795_v24 = vor.u32 %v5732_v16, %v4792_v17  ;;  %2208 = vmatpush.bf16.msra.mxu0 %v5831_v5 }
  0x87   : > { %843 = vst [vmem:[#allocation2 + $0xec] sm:$0xf] %v784_v18  ;;  %v4713_v22 = vld [vmem:[%s6325_s21 + $0x98] sm:$0xf]  ;;  %v4803_v26 = vor.u32 %v5733_v13, %v4800_v19  ;;  %v4692_v27 = vld [vmem:[%s6325_s21 + $0xf0] sm:$0xf] }
  0x88   : > { %844 = vst [vmem:[#allocation2 + $0x110] sm:$0xf] %v798_v20  ;;  %v4694_v28 = vld [vmem:[%s6325_s21 + $0xf8] sm:$0xf]  ;;  %v800_v29 = vshrl.u32 %v4692_v27, 16  ;;  %v803_v30 = vshll.u32 %v4692_v27, 16 }
  0x89   : > { %890 = vst [vmem:[#allocation2 + $0xf4] sm:$0xf] %v4712_v21  ;;  %v814_v31 = vshrl.u32 %v4694_v28, 16  ;;  %v817_v33 = vshll.u32 %v4694_v28, 16  ;;  %v4693_v37 = vld [vmem:[%s6325_s21 + $0xf4] sm:$0x1] }
  0x8a   : > { %2074 = vmatmul.bf16.vlgmr.msrb.gmra.mxu0 %v4755_v44  ;;  %891 = vst [vmem:[#allocation2 + $0x118] sm:$0xf] %v4713_v22  ;;  %v802_v34 = vrot.slane %v800_v29, 4  ;;  %v805_v35 = vrot.slane %v803_v30, 5  ;;  %v4695_v38 = vld [vmem:[%s6325_s21 + $0xfc] sm:$0x1] }
  0x8b   : > { %2108 = vmatmul.bf16.vlgmr.msrb.gmra.mxu1 %v4759_v45  ;;  %v816_v36 = vrot.slane %v814_v31, 4  ;;  %v809_v40 = vshll.u32 %v4693_v37, 16  ;;  %v819_v41 = vrot.slane %v817_v33, 5  ;;  %v823_v42 = vshll.u32 %v4695_v38, 16  ;;  %v4674_v43 = vld [vmem:[%s6325_s21 + $0x148] sm:$0xf] }
  0x8c   : > { %2142 = vmatmul.bf16.vlgmr.msrb.gmra.mxu2 %v4763_v48  ;;  %v806_v39 = vor.u32 %v805_v35, %v802_v34  ;;  %v4675_v44 = vld [vmem:[%s6325_s21 + $0x150] sm:$0xf]  ;;  %v4704_v45 = vld [vmem:[%s6325_s21 + $0x48] sm:$0xf]  ;;  %v4826_v48 = vld [vmem:[#allocation2 + $0xa0] sm:$0xf] }
  0x8d   : > { %2176 = vmatmul.bf16.vlgmr.msrb.gmra.mxu3 %v4767_v49  ;;  %v820_v46 = vor.u32 %v819_v41, %v816_v36  ;;  %v5745_v49 = vld [vmem:[#allocation2 + $0xc0] sm:$0xf0]  ;;  %665 = vst [vmem:[#allocation2 + $0x130] sm:$0xf] %v4674_v43  ;;  %v4705_v50 = vld [vmem:[%s6325_s21 + $0x50] sm:$0xf] }
  0x8e   : > { %v807_v51 = vrot.slane %v806_v39, 4  ;;  %v811_v52 = vrot.slane %v809_v40, 5  ;;  %v4834_v53 = vld [vmem:[#allocation2 + $0xa8] sm:$0xf]  ;;  %v5746_v54 = vld [vmem:[#allocation2 + $0xc8] sm:$0xf0]  ;;  %v4827_v1 = vor.u32 %v5745_v49, %v4826_v48 }
  0x8f   : > { %v5742_v55 = vld [vmem:[#allocation2 + $0xac] sm:$0xf]  ;;  %666 = vst [vmem:[#allocation2 + $0x154] sm:$0xf] %v4675_v44  ;;  %v821_v56 = vrot.slane %v820_v46, 4  ;;  %v825_v57 = vrot.slane %v823_v42, 5  ;;  %v4835_v3 = vor.u32 %v5746_v54, %v4834_v53 }
  0x90   : > { %v5741_v58 = vld [vmem:[#allocation2 + $0xa4] sm:$0xf]  ;;  %v4828_v59 = vld [vmem:[#allocation2 + $0xc4] sm:$0xf0]  ;;  %869 = vst [vmem:[#allocation2 + $0x138] sm:$0xf] %v4704_v45  ;;  %v812_v60 = vsel %vm6370_vm2, %v807_v51, %v811_v52 }
  0x91   : > { %v4836_v61 = vld [vmem:[#allocation2 + $0xcc] sm:$0xf0]  ;;  %870 = vst [vmem:[#allocation2 + $0x15c] sm:$0xf] %v4705_v50  ;;  %v826_v62 = vsel %vm6370_vm2, %v821_v56, %v825_v57  ;;  %v4714_v63 = vld [vmem:[%s6325_s21 + $0xa0] sm:$0xf]  ;;  %v4831_v2 = vor.u32 %v5741_v58, %v4828_v59 }
  0x92   : > { %845 = vst [vmem:[#allocation2 + $0x134] sm:$0xf] %v812_v60  ;;  %v4715_v0 = vld [vmem:[%s6325_s21 + $0xa8] sm:$0xf]  ;;  %v4839_v4 = vor.u32 %v5742_v55, %v4836_v61  ;;  %v4718_v7 = vld [vmem:[%s6325_s21 + $0x10] sm:$0xf] }
  0x93   : > { %846 = vst [vmem:[#allocation2 + $0x158] sm:$0xf] %v826_v62  ;;  %v4716_v6 = vld [vmem:[%s6325_s21 + $0x8] sm:$0xf]  ;;  %v929_v10 = vshrl.u32 %v4718_v7, 16  ;;  %v932_v11 = vshll.u32 %v4718_v7, 16 }
  0x94   : > { %892 = vst [vmem:[#allocation2 + $0x13c] sm:$0xf] %v4714_v63  ;;  %v915_v8 = vshrl.u32 %v4716_v6, 16  ;;  %v918_v9 = vshll.u32 %v4716_v6, 16  ;;  %v4717_v12 = vld [vmem:[%s6325_s21 + $0xc] sm:$0x1] }
  0x95   : > { %893 = vst [vmem:[#allocation2 + $0x160] sm:$0xf] %v4715_v0  ;;  %v4719_v13 = vld [vmem:[%s6325_s21 + $0x14] sm:$0x1]  ;;  %v924_v16 = vshll.u32 %v4717_v12, 16  ;;  %v931_v17 = vrot.slane %v929_v10, 4 }
  0x96   : > { %v917_v14 = vrot.slane %v915_v8, 4  ;;  %v920_v15 = vrot.slane %v918_v9, 5  ;;  %v934_v18 = vrot.slane %v932_v11, 5  ;;  %v938_v19 = vshll.u32 %v4719_v13, 16  ;;  %v5754_v28 = vld [vmem:[#allocation2 + $0x108] sm:$0xf0] }
  0x97   : > { %v926_v21 = vrot.slane %v924_v16, 5  ;;  %v4870_v29 = vld [vmem:[#allocation2 + $0xf0] sm:$0xf]  ;;  %v5755_v30 = vld [vmem:[#allocation2 + $0x110] sm:$0xf0] }
  0x98   : > { %v921_v20 = vor.u32 %v920_v15, %v917_v14  ;;  %v935_v22 = vor.u32 %v934_v18, %v931_v17  ;;  %v5750_v32 = vld [vmem:[#allocation2 + $0xec] sm:$0xf]  ;;  %v4864_v33 = vld [vmem:[#allocation2 + $0x10c] sm:$0xf0]  ;;  %v5751_v35 = vld [vmem:[#allocation2 + $0xf4] sm:$0xf]  ;;  %v4871_v41 = vor.u32 %v5755_v30, %v4870_v29 }
  0x99   : > { %v4872_v36 = vld [vmem:[#allocation2 + $0x114] sm:$0xf0]  ;;  %v4867_v38 = vor.u32 %v5750_v32, %v4864_v33  ;;  %v4722_v44 = vld [vmem:[%s6325_s21 + $0x20] sm:$0xf]  ;;  %v4721_v54 = vld [vmem:[%s6325_s21 + $0x1c] sm:$0x1] }
  0x9a   : > { %2079 = vmatmul.bf16.gmra.mxu0 %v4791_v23  ;;  %v940_v23 = vrot.slane %v938_v19, 5  ;;  %v936_v27 = vrot.slane %v935_v22, 4  ;;  %v4875_v42 = vor.u32 %v5751_v35, %v4872_v36  ;;  %v4720_v43 = vld [vmem:[%s6325_s21 + $0x18] sm:$0xf]  ;;  %v957_v49 = vshrl.u32 %v4722_v44, 16 }
  0x9b   : > { %2113 = vmatmul.bf16.gmra.mxu1 %v4795_v24  ;;  %v922_v24 = vrot.slane %v921_v20, 4  ;;  %v943_v46 = vshrl.u32 %v4720_v43, 16  ;;  %v946_v48 = vshll.u32 %v4720_v43, 16  ;;  %v960_v50 = vshll.u32 %v4722_v44, 16  ;;  %v4723_v55 = vld [vmem:[%s6325_s21 + $0x24] sm:$0x1] }
  0x9c   : > { %2147 = vmatmul.bf16.gmra.mxu2 %v4799_v25  ;;  %v4862_v25 = vld [vmem:[#allocation2 + $0xe8] sm:$0xf]  ;;  %v941_v34 = vsel %vm6370_vm2, %v936_v27, %v940_v23  ;;  %v959_v53 = vrot.slane %v957_v49, 4  ;;  %v952_v57 = vshll.u32 %v4721_v54, 16  ;;  %v966_v59 = vshll.u32 %v4723_v55, 16 }
  0x9d   : > { %2181 = vmatmul.bf16.gmra.mxu3 %v4803_v26  ;;  %v5830_v26 = vld [vmem:[%s7275_s1 + $0x200] sm:$0xff]  ;;  %v927_v31 = vsel %vm6370_vm2, %v922_v24, %v926_v21  ;;  %1065 = vst [vmem:[#allocation2 + $0x44] sm:$0xf] %v941_v34  ;;  %v4863_v37 = vor.u32 %v5754_v28, %v4862_v25  ;;  %v945_v51 = vrot.slane %v943_v46, 4  ;;  %v948_v52 = vrot.slane %v946_v48, 5 }
  0x9e   : > { %2209 = vmatpush.bf16.msra.mxu0 %v5830_v26  ;;  %1064 = vst [vmem:[#allocation2 + $0x20] sm:$0xf] %v927_v31  ;;  %v962_v58 = vrot.slane %v960_v50, 5  ;;  %v954_v63 = vrot.slane %v952_v57, 5  ;;  %v4898_v8 = vld [vmem:[#allocation2 + $0x130] sm:$0xf] }
  0x9f   : > { %v949_v56 = vor.u32 %v948_v52, %v945_v51  ;;  %v5763_v9 = vld [vmem:[#allocation2 + $0x150] sm:$0xf0]  ;;  %v4906_v10 = vld [vmem:[#allocation2 + $0x138] sm:$0xf]  ;;  %v5764_v14 = vld [vmem:[#allocation2 + $0x158] sm:$0xf0] }
  0xa0   : > { %v963_v0 = vor.u32 %v962_v58, %v959_v53  ;;  %v5759_v12 = vld [vmem:[#allocation2 + $0x134] sm:$0xf]  ;;  %v4900_v13 = vld [vmem:[#allocation2 + $0x154] sm:$0xf0]  ;;  %v5760_v15 = vld [vmem:[#allocation2 + $0x13c] sm:$0xf]  ;;  %v4899_v19 = vor.u32 %v5763_v9, %v4898_v8  ;;  %v4907_v23 = vor.u32 %v5764_v14, %v4906_v10 }
  0xa1   : > { %v950_v62 = vrot.slane %v949_v56, 4  ;;  %v4908_v16 = vld [vmem:[#allocation2 + $0x15c] sm:$0xf0]  ;;  %v4903_v20 = vor.u32 %v5759_v12, %v4900_v13  ;;  %v4724_v25 = vld [vmem:[%s6325_s21 + $0x28] sm:$0xf] }
  0xa2   : > { %v964_v6 = vrot.slane %v963_v0, 4  ;;  %v4911_v24 = vor.u32 %v5760_v15, %v4908_v16  ;;  %v4726_v26 = vld [vmem:[%s6325_s21 + $0x30] sm:$0xf]  ;;  %v971_v28 = vshrl.u32 %v4724_v25, 16  ;;  %v974_v29 = vshll.u32 %v4724_v25, 16 }
  0xa3   : > { %v955_v5 = vsel %vm6370_vm2, %v950_v62, %v954_v63  ;;  %v985_v30 = vshrl.u32 %v4726_v26, 16  ;;  %v988_v31 = vshll.u32 %v4726_v26, 16  ;;  %v4725_v35 = vld [vmem:[%s6325_s21 + $0x2c] sm:$0x1]  ;;  %v4727_v36 = vld [vmem:[%s6325_s21 + $0x34] sm:$0x1] }
  0xa4   : > { %1066 = vst [vmem:[#allocation2 + $0x68] sm:$0xf] %v955_v5  ;;  %v973_v32 = vrot.slane %v971_v28, 4  ;;  %v976_v33 = vrot.slane %v974_v29, 5  ;;  %v5729_v56 = vld [vmem:[#allocation2 + $0x40] sm:$0xf0] }
  0xa5   : > { %v987_v34 = vrot.slane %v985_v30, 4  ;;  %v4770_v55 = vld [vmem:[#allocation2 + $0x20] sm:$0xf]  ;;  %v4728_v62 = vld [vmem:[%s6325_s21 + $0x38] sm:$0xf] }
  0xa6   : > { %v4730_v63 = vld [vmem:[%s6325_s21 + $0x40] sm:$0xf]  ;;  %v4731_v12 = vld [vmem:[%s6325_s21 + $0x44] sm:$0x1] }
  0xa7   : > { %v1013_v5 = vshrl.u32 %v4730_v63, 16  ;;  %v1022_v16 = vshll.u32 %v4731_v12, 16 }
  0xa9   : > { %v1015_v10 = vrot.slane %v1013_v5, 4 }
  0xaa   : > { %2084 = vmatmul.bf16.gmra.mxu0 %v4827_v1 }
  0xab   : > { %2118 = vmatmul.bf16.gmra.mxu1 %v4831_v2 }
  0xac   : > { %2152 = vmatmul.bf16.gmra.mxu2 %v4835_v3 }
  0xad   : > { %2186 = vmatmul.bf16.gmra.mxu3 %v4839_v4  ;;  %v968_v4 = vrot.slane %v966_v59, 5  ;;  %v4771_v59 = vor.u32 %v5729_v56, %v4770_v55 }
  0xaf   : > { %v969_v11 = vsel %vm6370_vm2, %v964_v6, %v968_v4  ;;  %v1002_v4 = vshll.u32 %v4728_v62, 16  ;;  %v1016_v6 = vshll.u32 %v4730_v63, 16 }
  0xb0   : > { %1067 = vst [vmem:[#allocation2 + $0x8c] sm:$0xf] %v969_v11  ;;  %v4729_v11 = vld [vmem:[%s6325_s21 + $0x3c] sm:$0x1] }
  0xb1   : > { %v1004_v9 = vrot.slane %v1002_v4, 5  ;;  %v1018_v13 = vrot.slane %v1016_v6, 5  ;;  %v1008_v15 = vshll.u32 %v4729_v11, 16 }
  0xb7   : > { %v1939_v39 = vpop.f32.mrf.mxu0 }
  0xb8   : > { %v1973_v40 = vpop.f32.mrf.mxu1 }
  0xb9   : > { %v1974_v45 = vadd.f32 %v1973_v40, %v1939_v39  ;;  %v980_v39 = vshll.u32 %v4725_v35, 16  ;;  %v994_v40 = vshll.u32 %v4727_v36, 16 }
  0xba   : > { %2089 = vmatmul.bf16.gmra.mxu0 %v4863_v37  ;;  %v990_v37 = vrot.slane %v988_v31, 5 }
  0xbb   : > { %2123 = vmatmul.bf16.gmra.mxu1 %v4867_v38  ;;  %v977_v38 = vor.u32 %v976_v33, %v973_v32  ;;  %v996_v46 = vrot.slane %v994_v40, 5  ;;  %v4806_v32 = vld [vmem:[#allocation2 + $0x68] sm:$0xf]  ;;  %v5738_v33 = vld [vmem:[#allocation2 + $0x88] sm:$0xf0] }
  0xbc   : > { %2157 = vmatmul.bf16.gmra.mxu2 %v4871_v41  ;;  %v991_v41 = vor.u32 %v990_v37, %v987_v34  ;;  %v4807_v36 = vor.u32 %v5738_v33, %v4806_v32  ;;  %v4734_v40 = vld [vmem:[%s6325_s21 + $0x50] sm:$0xf] }
  0xbd   : > { %2191 = vmatmul.bf16.gmra.mxu3 %v4875_v42  ;;  %v978_v44 = vrot.slane %v977_v38, 4 }
  0xbe   : > { %v992_v51 = vrot.slane %v991_v41, 4 }
  0xbf   : > { %v2007_v60 = vpop.f32.mrf.mxu2  ;;  %v6659_v2 = vpop.f32.mrf.mxu0 }
  0xc0   : > { %v2041_v61 = vpop.f32.mrf.mxu3  ;;  %v2008_v1 = vadd.f32 %v2007_v60, %v1974_v45  ;;  %v6661_v3 = vpop.f32.mrf.mxu1  ;;  %v982_v45 = vrot.slane %v980_v39, 5  ;;  %v997_v54 = vsel %vm6370_vm2, %v992_v51, %v996_v46  ;;  %v4732_v39 = vld [vmem:[%s6325_s21 + $0x48] sm:$0xf] }
  0xc1   : > { %1069 = vst [vmem:[#allocation2 + $0xd4] sm:$0xf] %v997_v54  ;;  %v4735_v54 = vld [vmem:[%s6325_s21 + $0x54] sm:$0x1] }
  0xc2   : > { %v6665_v7 = vadd.f32 %v2041_v61, %v2008_v1  ;;  %v983_v52 = vsel %vm6370_vm2, %v978_v44, %v982_v45  ;;  %v999_v1 = vshrl.u32 %v4728_v62, 16  ;;  %v1041_v44 = vshrl.u32 %v4734_v40, 16 }
  0xc3   : > { %1068 = vst [vmem:[#allocation2 + $0xb0] sm:$0xf] %v983_v52  ;;  %v1044_v45 = vshll.u32 %v4734_v40, 16  ;;  %v4733_v52 = vld [vmem:[%s6325_s21 + $0x4c] sm:$0x1] }
  0xc4   : > { %v1001_v8 = vrot.slane %v999_v1, 4  ;;  %v1043_v51 = vrot.slane %v1041_v44, 4 }
  0xc5   : > { %v1046_v55 = vrot.slane %v1044_v45, 5 }
  0xc6   : > { %v1005_v14 = vor.u32 %v1004_v9, %v1001_v8 }
  0xc7   : > { %v6669_v17 = vpop.f32.mrf.mxu2  ;;  %v1944_v21 = vpop.f32.mrf.mxu0 }
  0xc8   : > { %v6671_v18 = vpop.f32.mrf.mxu3  ;;  %v1978_v22 = vpop.f32.mrf.mxu1 }
  0xc9   : > { %v1979_v27 = vadd.f32 %v1978_v22, %v1944_v21  ;;  %v1006_v22 = vrot.slane %v1005_v14, 4  ;;  %v5747_v14 = vld [vmem:[#allocation2 + $0xd0] sm:$0xf0] }
  0xca   : > { %2094 = vmatmul.bf16.gmra.mxu0 %v4899_v19  ;;  %v1019_v19 = vor.u32 %v1018_v13, %v1015_v10  ;;  %v4842_v13 = vld [vmem:[#allocation2 + $0xb0] sm:$0xf] }
  0xcb   : > { %2128 = vmatmul.bf16.gmra.mxu1 %v4903_v20 }
  0xcc   : > { %2162 = vmatmul.bf16.gmra.mxu2 %v4907_v23  ;;  %v1010_v23 = vrot.slane %v1008_v15, 5  ;;  %v1020_v28 = vrot.slane %v1019_v19, 4  ;;  %v4843_v19 = vor.u32 %v5747_v14, %v4842_v13 }
  0xcd   : > { %2196 = vmatmul.bf16.gmra.mxu3 %v4911_v24  ;;  %v1024_v24 = vrot.slane %v1022_v16, 5 }
  0xce   : > { %v1011_v29 = vsel %vm6370_vm2, %v1006_v22, %v1010_v23 }
  0xcf   : > { %v2012_v42 = vpop.f32.mrf.mxu2  ;;  %v6677_v49 = vpop.f32.mrf.mxu0  ;;  %v1025_v31 = vsel %vm6370_vm2, %v1020_v28, %v1024_v24  ;;  %1070 = vst [vmem:[#allocation2 + $0xf8] sm:$0xf] %v1011_v29 }
  0xd0   : > { %v2046_v43 = vpop.f32.mrf.mxu3  ;;  %v2013_v48 = vadd.f32 %v2012_v42, %v1979_v27  ;;  %v6679_v50 = vpop.f32.mrf.mxu1  ;;  %1071 = vst [vmem:[#allocation2 + $0x11c] sm:$0xf] %v1025_v31  ;;  %v1027_v42 = vshrl.u32 %v4732_v39, 16 }
  0xd2   : > { %v6683_v53 = vadd.f32 %v2046_v43, %v2013_v48  ;;  %v1030_v43 = vshll.u32 %v4732_v39, 16  ;;  %v1029_v46 = vrot.slane %v1027_v42, 4 }
  0xd4   : > { %v1032_v48 = vrot.slane %v1030_v43, 5 }
  0xd6   : > { %v1033_v56 = vor.u32 %v1032_v48, %v1029_v46  ;;  %v4878_v31 = vld [vmem:[#allocation2 + $0xf8] sm:$0xf]  ;;  %v5889_v46 = vld [vmem:[#allocation5 + $0x78] sm:$0xff] }
  0xd7   : > { %v6687_v57 = vpop.f32.mrf.mxu2  ;;  %v1949_v60 = vpop.f32.mrf.mxu0  ;;  %v5756_v32 = vld [vmem:[#allocation2 + $0x118] sm:$0xf0]  ;;  %4074 = vmatpush.bf16.msra.mxu2 %v5889_v46 }
  0xd8   : > { %v6689_v58 = vpop.f32.mrf.mxu3  ;;  %v1983_v61 = vpop.f32.mrf.mxu1  ;;  %v4879_v33 = vor.u32 %v5756_v32, %v4878_v31  ;;  %v5895_v31 = vld [vmem:[#allocation5 + $0xa8] sm:$0xff] }
  0xd9   : > { %v1984_v0 = vadd.f32 %v1983_v61, %v1949_v60  ;;  %v1050_v60 = vshll.u32 %v4735_v54, 16  ;;  %v1047_v61 = vor.u32 %v1046_v55, %v1043_v51  ;;  %v5897_v51 = vld [vmem:[#allocation5 + $0xb8] sm:$0xff] }
  0xda   : > { %2210 = vmatmul.bf16.vlgmr.msra.gmra.mxu0 %v4771_v59  ;;  %v1036_v59 = vshll.u32 %v4733_v52, 16  ;;  %4103 = vmatpush.bf16.msra.mxu3 %v5897_v51  ;;  %v5888_v52 = vld [vmem:[#allocation5 + $0x70] sm:$0xff] }
  0xdb   : > { %v1052_v4 = vrot.slane %v1050_v60, 5  ;;  %v1048_v9 = vrot.slane %v1047_v61, 4  ;;  %4075 = vmatpush.bf16.msra.mxu2 %v5888_v52 }
  0xdc   : > { %v1038_v1 = vrot.slane %v1036_v59, 5 }
  0xdd   : > { %v1053_v12 = vsel %vm6370_vm2, %v1048_v9, %v1052_v4 }
  0xde   : > { %1073 = vst [vmem:[#allocation2 + $0x164] sm:$0xf] %v1053_v12 }
  0xdf   : > { %v2017_v20 = vpop.f32.mrf.mxu2  ;;  %v6695_v26 = vpop.f32.mrf.mxu0 }
  0xe0   : > { %v2051_v21 = vpop.f32.mrf.mxu3  ;;  %v2018_v25 = vadd.f32 %v2017_v20, %v1984_v0  ;;  %v6697_v27 = vpop.f32.mrf.mxu1  ;;  %v1034_v0 = vrot.slane %v1033_v56, 4 }
  0xe2   : > { %v6701_v30 = vadd.f32 %v2051_v21, %v2018_v25  ;;  %v1039_v10 = vsel %vm6370_vm2, %v1034_v0, %v1038_v1 }
  0xe3   : > { %1072 = vst [vmem:[#allocation2 + $0x140] sm:$0xf] %v1039_v10  ;;  %v1976_v10 = vadd.f32 %v6661_v3, %v6659_v2  ;;  %v6759_v2 = vld [vmem:[%s7276_s2] ss:$0 sm:$0xff] }
  0xe5   : > { %v5765_v40 = vld [vmem:[#allocation2 + $0x160] sm:$0xf0]  ;;  %v2010_v12 = vadd.f32 %v6669_v17, %v1976_v10  ;;  %v5893_v10 = vld [vmem:[#allocation5 + $0x98] sm:$0xff] }
  0xe7   : > { %v6705_v34 = vpop.f32.mrf.mxu2  ;;  %v1954_v37 = vpop.f32.mrf.mxu0 }
  0xe8   : > { %v6707_v35 = vpop.f32.mrf.mxu3  ;;  %v1988_v38 = vpop.f32.mrf.mxu1 }
  0xe9   : > { %v1989_v41 = vadd.f32 %v1988_v38, %v1954_v37 }
  0xea   : > { %2215 = vmatmul.bf16.gmra.mxu0 %v4807_v36  ;;  %v4914_v39 = vld [vmem:[#allocation2 + $0x140] sm:$0xf] }
  0xef   : > { %v2022_v62 = vpop.f32.mrf.mxu2  ;;  %v6713_v6 = vpop.f32.mrf.mxu0 }
  0xf0   : > { %v2056_v63 = vpop.f32.mrf.mxu3  ;;  %v2023_v5 = vadd.f32 %v2022_v62, %v1989_v41  ;;  %v6715_v8 = vpop.f32.mrf.mxu1  ;;  %v4915_v41 = vor.u32 %v5765_v40, %v4914_v39 }
  0xf2   : > { %v2057_v11 = vadd.f32 %v2056_v63, %v2023_v5 }
  0xf7   : > { %v6721_v15 = vpop.f32.mrf.mxu2  ;;  %v1959_v20 = vpop.f32.mrf.mxu0 }
  0xf8   : > { %v6723_v16 = vpop.f32.mrf.mxu3  ;;  %v1993_v21 = vpop.f32.mrf.mxu1 }
  0xf9   : > { %v1994_v22 = vadd.f32 %v1993_v21, %v1959_v20  ;;  %v5881_v20 = vld [vmem:[#allocation5 + $0x38] sm:$0xff]  ;;  %v2044_v21 = vadd.f32 %v6671_v18, %v2010_v12 }
  0xfa   : > { %2220 = vmatmul.bf16.gmra.mxu0 %v4843_v19  ;;  %5959 = vmatpush.bf16.msra.mxu1 %v5881_v20 }
  0xfb   : > { %4045 = vmatpush.bf16.msrb.mxu0 %v5881_v20 }
  0xff   : > { %v2027_v23 = vpop.f32.mrf.mxu2  ;;  %v6725_v28 = vpop.f32.mrf.mxu0 }
 0x100   : > { %v2061_v24 = vpop.f32.mrf.mxu3  ;;  %v2028_v25 = vadd.f32 %v2027_v23, %v1994_v22  ;;  %v6738_v54 = vpop.f32.mrf.mxu1 }
 0x102   : > { %v2062_v29 = vadd.f32 %v2061_v24, %v2028_v25  ;;  %v5880_v24 = vld [vmem:[#allocation5 + $0x30] sm:$0xff] }
 0x103   : > { %4046 = vmatpush.bf16.msrb.mxu0 %v5880_v24  ;;  %5960 = vmatpush.bf16.msra.mxu1 %v5880_v24 }
 0x107   : > { %v2075_v36 = vpop.f32.mrf.mxu0  ;;  %v6740_v55 = vpop.f32.mrf.mxu2 }
 0x108   : > { %v2076_v37 = vadd.f32 %v2075_v36, %v6665_v7  ;;  %v6742_v56 = vpop.f32.mrf.mxu3  ;;  %v6764_v36 = vld [vmem:[%s7277_s3] ss:$0 sm:$0xff] }
 0x10a   : > { %2225 = vmatmul.bf16.gmra.mxu0 %v4879_v33 }
 0x10f   : > { %v2077_v38 = vpop.f32.mrf.mxu0  ;;  %v2143_v61 = vpop.f32.mrf.mxu2 }
 0x110   : > { %v2177_v63 = vpop.f32.mrf.mxu3  ;;  %v2078_v23 = vadd.f32 %v2077_v38, %v2044_v21  ;;  %v5886_v21 = vld [vmem:[#allocation5 + $0x60] sm:$0xff] }
 0x117   : > { %v2080_v42 = vpop.f32.mrf.mxu0  ;;  %v2145_v1 = vpop.f32.mrf.mxu2 }
 0x118   : > { %v6729_v43 = vadd.f32 %v2080_v42, %v6683_v53  ;;  %v5896_v53 = vld [vmem:[#allocation5 + $0xb0] sm:$0xff]  ;;  %v2179_v9 = vpop.f32.mrf.mxu3 }
 0x119   : > { %4104 = vmatpush.bf16.msra.mxu3 %v5896_v53 }
 0x11a   : > { %2230 = vmatmul.bf16.gmra.mxu0 %v4915_v41  ;;  %v1981_v41 = vadd.f32 %v6679_v50, %v6677_v49 }
 0x11c   : > { %v2015_v46 = vadd.f32 %v6687_v57, %v1981_v41 }
 0x11d   : > { %4105 = vmatpush.bf16.msra.mxu3 %v5895_v31 }
 0x11e   : > { %v2049_v49 = vadd.f32 %v6689_v58, %v2015_v46 }
 0x11f   : > { %v6731_v44 = vpop.f32.mrf.mxu0  ;;  %v2148_v19 = vpop.f32.mrf.mxu2 }
 0x120   : > { %v2182_v25 = vpop.f32.mrf.mxu3 }
 0x127   : > { %v2085_v45 = vpop.f32.mrf.mxu0  ;;  %v6766_v39 = vpop.f32.mrf.mxu2 }
 0x128   : > { %v6734_v48 = vadd.f32 %v2085_v45, %v6701_v30  ;;  %v2109_v30 = vpop.f32.mrf.mxu1  ;;  %v5878_v45 = vld [vmem:[#allocation5 + $0x20] sm:$0xff] }
 0x12f   : > { %v6736_v7 = vpop.f32.mrf.mxu0  ;;  %v6779_v12 = vpop.f32.mrf.mxu2 }
 0x130   : > { %v2111_v0 = vpop.f32.mrf.mxu1 }
 0x131   : > { %v2112_v17 = vadd.f32 %v2111_v0, %v2078_v23  ;;  %v5876_v23 = vld [vmem:[#allocation5 + $0x10] sm:$0xff] }
 0x133   : > { %v2146_v38 = vadd.f32 %v2145_v1, %v2112_v17  ;;  %v5877_v1 = vld [vmem:[#allocation5 + $0x18] sm:$0xff] }
 0x135   : > { %v2180_v51 = vadd.f32 %v2179_v9, %v2146_v38 }
 0x137   : > { %v2090_v59 = vpop.f32.mrf.mxu0 }
 0x138   : > { %v6744_v60 = vadd.f32 %v2090_v59, %v2057_v11  ;;  %v2114_v13 = vpop.f32.mrf.mxu1  ;;  %v2110_v11 = vadd.f32 %v2109_v30, %v2076_v37  ;;  %v5879_v37 = vld [vmem:[#allocation5 + $0x28] sm:$0xff]  ;;  %v6774_v59 = vpop.f32.mrf.mxu3 }
 0x139   : > { %4047 = vmatpush.bf16.msrb.mxu0 %v5879_v37  ;;  %5961 = vmatpush.bf16.msra.mxu1 %v5879_v37  ;;  %v2115_v53 = vadd.f32 %v2114_v13, %v6729_v43  ;;  %v2083_v43 = vadd.f32 %v6731_v44, %v2049_v49  ;;  %v2393_v44 = vld [vmem:[#allocation3 + $0x4] sm:$0x1] }
 0x13a   : > { %v2144_v22 = vadd.f32 %v2143_v61, %v2110_v11  ;;  %v5894_v61 = vld [vmem:[#allocation5 + $0xa0] sm:$0xff] }
 0x13b   : > { %v2149_v50 = vadd.f32 %v2148_v19, %v2115_v53  ;;  %4106 = vmatpush.bf16.msra.mxu3 %v5894_v61  ;;  %v2387_v19 = vld [vmem:[#allocation3] sm:$0xf]  ;;  %v5891_v53 = vld [vmem:[#allocation5 + $0x88] sm:$0xff] }
 0x13c   : > { %v2178_v32 = vadd.f32 %v2177_v63, %v2144_v22 }
 0x13d   : > { %4048 = vmatpush.bf16.msrb.mxu0 %v5878_v45  ;;  %5962 = vmatpush.bf16.msra.mxu1 %v5878_v45  ;;  %v2183_v24 = vadd.f32 %v2182_v25, %v2149_v50  ;;  %v5885_v25 = vld [vmem:[#allocation5 + $0x58] sm:$0xff]  ;;  %v5884_v50 = vld [vmem:[#allocation5 + $0x50] sm:$0xff] }
 0x13f   : > { %v6746_v62 = vpop.f32.mrf.mxu0  ;;  %4107 = vmatpush.bf16.msra.mxu3 %v5893_v10 }
 0x140   : > { %v2116_v18 = vpop.f32.mrf.mxu1  ;;  %v6797_v45 = vpop.f32.mrf.mxu3 }
 0x141   : > { %4049 = vmatpush.bf16.msrb.mxu0 %v5877_v1  ;;  %5963 = vmatpush.bf16.msra.mxu1 %v5877_v1  ;;  %v5874_v1 = vld [vmem:[#allocation5] sm:$0xff] }
 0x145   : > { %4050 = vmatpush.bf16.msrb.mxu0 %v5876_v23  ;;  %5964 = vmatpush.bf16.msra.mxu1 %v5876_v23  ;;  %v5929_v23 = vld [vmem:[#allocation5 + $0x1b8] sm:$0xff] }
 0x147   : > { %v2095_v4 = vpop.f32.mrf.mxu0 }
 0x148   : > { %v6748_v5 = vadd.f32 %v2095_v4, %v2062_v29  ;;  %v5887_v29 = vld [vmem:[#allocation5 + $0x68] sm:$0xff]  ;;  %v2119_v57 = vpop.f32.mrf.mxu1 }
 0x149   : > { %4076 = vmatpush.bf16.msra.mxu2 %v5887_v29 }
 0x14d   : > { %4077 = vmatpush.bf16.msra.mxu2 %v5886_v21 }
 0x14f   : > { %v6753_v14 = vpop.f32.mrf.mxu0 }
 0x151   : > { %4078 = vmatpush.bf16.msra.mxu2 %v5885_v25  ;;  %v2405_v25 = vld [vmem:[#allocation3 + $0x14] sm:$0x1] }
 0x155   : > { %4079 = vmatpush.bf16.msra.mxu2 %v5884_v50 }
 0x157   : > { %v2211_v3 = vpop.f32.mrf.mxu0 }
 0x158   : > { %v2212_v33 = vadd.f32 %v2211_v3, %v2178_v32  ;;  %v2117_v3 = vadd.f32 %v2116_v18, %v2083_v43 }
 0x15a   : > { %v2240_v40 = vmul.f32 %v6759_v2, %v2212_v33  ;;  %v5892_v33 = vld [vmem:[#allocation5 + $0x90] sm:$0xff]  ;;  %v2151_v18 = vadd.f32 %v6766_v39, %v2117_v3  ;;  %v2396_v39 = vld [vmem:[#allocation3 + $0x8] sm:$0xf] }
 0x15b   : > { %4108 = vmatpush.bf16.msra.mxu3 %v5892_v33 }
 0x15c   : > { %v2254_v42 = vadd.f32 %v6764_v36, %v2240_v40 }
 0x15e   : > { %v2264_v52 = vmax.f32 %v2254_v42, 0.0  ;;  %v5875_v42 = vld [vmem:[#allocation5 + $0x8] sm:$0xff] }
 0x15f   : > { %v2213_v30 = vpop.f32.mrf.mxu0  ;;  %4051 = vmatpush.bf16.msrb.mxu0 %v5875_v42  ;;  %5965 = vmatpush.bf16.msra.mxu1 %v5875_v42 }
 0x160   : > { %v2274_v63 = vpack.c.bf16 %v2264_v52, %v2264_v52  ;;  %v2214_v0 = vadd.f32 %v2213_v30, %v2180_v51  ;;  %v1986_v52 = vadd.f32 %v6697_v27, %v6695_v26  ;;  %v2121_v30 = vpop.f32.mrf.mxu1  ;;  %4109 = vmatpush.bf16.msra.mxu3 %v5891_v53  ;;  %v2120_v27 = vadd.f32 %v2119_v57, %v6734_v48 }
 0x162   : > { %v2285_v4 = vshrl.u32 %v2274_v63, 16  ;;  %v2241_v9 = vmul.f32 %v6759_v2, %v2214_v0  ;;  %v2288_v11 = vshll.u32 %v2274_v63, 16  ;;  %v2020_v49 = vadd.f32 %v6705_v34, %v1986_v52  ;;  %v5890_v34 = vld [vmem:[#allocation5 + $0x80] sm:$0xff] }
 0x163   : > { %4052 = vmatpush.bf16.msrb.mxu0 %v5874_v1  ;;  %5966 = vmatpush.bf16.msra.mxu1 %v5874_v1 }
 0x164   : > { %v2287_v13 = vrot.slane %v2285_v4, 7  ;;  %v2255_v20 = vadd.f32 %v6764_v36, %v2241_v9  ;;  %v2185_v4 = vadd.f32 %v6774_v59, %v2151_v18  ;;  %v2155_v9 = vpop.f32.mrf.mxu2  ;;  %v2054_v48 = vadd.f32 %v6707_v35, %v2020_v49  ;;  %4110 = vmatpush.bf16.msra.mxu3 %v5890_v34  ;;  %v2189_v35 = vpop.f32.mrf.mxu3  ;;  %v5882_v18 = vld [vmem:[#allocation5 + $0x40] sm:$0xff] }
 0x166   : > { %v2290_v29 = vor.u32 %v2288_v11, %v2287_v13  ;;  %v2291_v31 = vrot.slane %v2287_v13, 4  ;;  %v2265_v32 = vmax.f32 %v2255_v20, 0.0  ;;  %v2399_v20 = vld [vmem:[#allocation3 + $0xc] sm:$0x1]  ;;  %v2088_v33 = vadd.f32 %v6736_v7, %v2054_v48 }
 0x167   : > { %v2216_v17 = vpop.f32.mrf.mxu0  ;;  %4219 = vmatpush.bf16.msra.mxu0 %v5929_v23 }
 0x168   : > { %v2388_v37 = vsel %vm6783_vm7, %v2290_v29, %v2387_v19  ;;  %v2394_v38 = vsel %vm6789_vm8, %v2291_v31, %v2393_v44  ;;  %v2275_v40 = vpack.c.bf16 %v2265_v32, %v2265_v32  ;;  %v2217_v41 = vadd.f32 %v2216_v17, %v2183_v24  ;;  %v5883_v29 = vld [vmem:[#allocation5 + $0x48] sm:$0xff] }
 0x169   : > { %2389 = vst [vmem:[#allocation3] sm:$0xf] %v2388_v37  ;;  %v2154_v31 = vadd.f32 %v6779_v12, %v2120_v27  ;;  %4080 = vmatpush.bf16.msra.mxu2 %v5883_v29 }
 0x16a   : > { %2395 = vst [vmem:[#allocation3 + $0x4] sm:$0x1] %v2394_v38  ;;  %v2293_v46 = vshrl.u32 %v2275_v40, 16  ;;  %v2242_v51 = vmul.f32 %v6759_v2, %v2217_v41  ;;  %v2296_v63 = vshll.u32 %v2275_v40, 16  ;;  %v6162_v38 = vmov 0  }
 0x16b   : > { %v2402_v41 = vld [vmem:[#allocation3 + $0x10] sm:$0xf]  ;;  %v2188_v7 = vadd.f32 %v6797_v45, %v2154_v31  ;;  %v2411_v31 = vld [vmem:[#allocation3 + $0x1c] sm:$0x1] }
 0x16c   : > { %v2295_v61 = vrot.slane %v2293_v46, 7  ;;  %v2256_v0 = vadd.f32 %v6764_v36, %v2242_v51  ;;  %v2124_v46 = vpop.f32.mrf.mxu1 }
 0x16d   : > { %4081 = vmatpush.bf16.msra.mxu2 %v5882_v18 }
 0x16e   : > { %v2298_v43 = vor.u32 %v2296_v63, %v2295_v61  ;;  %v2266_v26 = vmax.f32 %v2256_v0, 0.0  ;;  %v2299_v13 = vrot.slane %v2295_v61, 4  ;;  %v2122_v61 = vadd.f32 %v2121_v30, %v2088_v33  ;;  %v2158_v0 = vpop.f32.mrf.mxu2 }
 0x16f   : > { %v2218_v11 = vpop.f32.mrf.mxu0 }
 0x170   : > { %v2450_v19 = vld [vmem:[#allocation3] sm:$0x1]  ;;  %v2397_v59 = vsel %vm6783_vm7, %v2298_v43, %v2396_v39  ;;  %v2276_v21 = vpack.c.bf16 %v2266_v26, %v2266_v26  ;;  %v2219_v44 = vadd.f32 %v2218_v11, %v2185_v4  ;;  %v2400_v37 = vsel %vm6789_vm8, %v2299_v13, %v2399_v20 }
 0x171   : > { %v2451_v57 = vsel %vm6789_vm8, 0, %v2450_v19  ;;  %v2481_v24 = vld [vmem:[#allocation3 + $0x4] sm:$0x1]  ;;  %2398 = vst [vmem:[#allocation3 + $0x8] sm:$0xf] %v2397_v59  ;;  %v2156_v43 = vadd.f32 %v2155_v9, %v2122_v61  ;;  %v1991_v13 = vadd.f32 %v6715_v8, %v6713_v6  ;;  %v1996_v61 = vadd.f32 %v6738_v54, %v6725_v28 }
 0x172   : > { %2452 = vst [vmem:[#allocation3] sm:$0x1] %v2451_v57  ;;  %v2482_v32 = vsel %vm6809_vm9, 0, %v2481_v24  ;;  %v2301_v3 = vshrl.u32 %v2276_v21, 16  ;;  %v2243_v17 = vmul.f32 %v6759_v2, %v2219_v44  ;;  %v2304_v40 = vshll.u32 %v2276_v21, 16  ;;  %v5928_v26 = vld [vmem:[#allocation5 + $0x1b0] sm:$0xff]  ;;  %v2192_v44 = vpop.f32.mrf.mxu3 }
 0x173   : > { %2483 = vst [vmem:[#allocation3 + $0x4] sm:$0x1] %v2482_v32  ;;  %4220 = vmatpush.bf16.msra.mxu0 %v5928_v26  ;;  %v2408_v59 = vld [vmem:[#allocation3 + $0x18] sm:$0xf]  ;;  %v2025_v20 = vadd.f32 %v6721_v15, %v1991_v13  ;;  %v2190_v21 = vadd.f32 %v2189_v35, %v2156_v43  ;;  %v2030_v28 = vadd.f32 %v6740_v55, %v1996_v61 }
 0x174   : > { %2515 = vst [vmem:[#allocation3] sm:$0xf] %v6162_v38  ;;  %v2303_v12 = vrot.slane %v2301_v3, 7  ;;  %v2257_v42 = vadd.f32 %v6764_v36, %v2243_v17  ;;  %v2125_v3 = vadd.f32 %v2124_v46, %v6744_v60  ;;  %v2126_v15 = vpop.f32.mrf.mxu1 }
 0x175   : > { %2516 = vst [vmem:[#allocation3 + $0x4] sm:$0x1] %v6162_v38 }
 0x176   : > { %2401 = vst [vmem:[#allocation3 + $0xc] sm:$0x1] %v2400_v37  ;;  %v2306_v51 = vor.u32 %v2304_v40, %v2303_v12  ;;  %v2307_v52 = vrot.slane %v2303_v12, 4  ;;  %v2267_v53 = vmax.f32 %v2257_v42, 0.0  ;;  %v2059_v42 = vadd.f32 %v6723_v16, %v2025_v20  ;;  %v2160_v18 = vpop.f32.mrf.mxu2 }
 0x177   : > { %v2221_v63 = vpop.f32.mrf.mxu0 }
 0x178   : > { %v2453_v1 = vld [vmem:[#allocation3 + $0x8] sm:$0x1]  ;;  %v2403_v49 = vsel %vm6783_vm7, %v2306_v51, %v2402_v41  ;;  %v2406_v39 = vsel %vm6789_vm8, %v2307_v52, %v2405_v25  ;;  %v2277_v50 = vpack.c.bf16 %v2267_v53, %v2267_v53  ;;  %v2222_v4 = vadd.f32 %v2221_v63, %v2188_v7 }
 0x179   : > { %v2454_v45 = vsel %vm6789_vm8, 0, %v2453_v1  ;;  %2404 = vst [vmem:[#allocation3 + $0x10] sm:$0xf] %v2403_v49  ;;  %v2159_v25 = vadd.f32 %v2158_v0, %v2125_v3  ;;  %v2093_v63 = vadd.f32 %v6746_v62, %v2059_v42  ;;  %v2414_v0 = vld [vmem:[#allocation3 + $0x20] sm:$0xf] }
 0x17a   : > { %2455 = vst [vmem:[#allocation3 + $0x8] sm:$0x1] %v2454_v45  ;;  %v2309_v30 = vshrl.u32 %v2277_v50, 16  ;;  %v2244_v27 = vmul.f32 %v6759_v2, %v2222_v4  ;;  %v2312_v19 = vshll.u32 %v2277_v50, 16  ;;  %v2194_v54 = vpop.f32.mrf.mxu3 }
 0x17b   : > { %2407 = vst [vmem:[#allocation3 + $0x14] sm:$0x1] %v2406_v39  ;;  %v2520_v11 = vld [vmem:[#allocation3] sm:$0xf]  ;;  %v2193_v45 = vadd.f32 %v2192_v44, %v2159_v25  ;;  %v2420_v25 = vld [vmem:[#allocation3 + $0x28] sm:$0xf] }
 0x17c   : > { %v2311_v34 = vrot.slane %v2309_v30, 7  ;;  %v2258_v9 = vadd.f32 %v6764_v36, %v2244_v27  ;;  %2528 = vst [vmem:[#allocation4] sm:$0xf] %v2520_v11  ;;  %v2680_v48 = vld [vmem:[#allocation3] sm:$0xe]  ;;  %v2129_v55 = vpop.f32.mrf.mxu1 }
 0x17d   : > { %v2484_v23 = vld [vmem:[#allocation3 + $0xc] sm:$0x1]  ;;  %v2681_v29 = vld [vmem:[#allocation3 + $0x4] sm:$0x1]  ;;  %v5204_v40 = vrot.slane %v2680_v48, 9 }
 0x17e   : > { %v2485_v57 = vsel %vm6809_vm9, 0, %v2484_v23  ;;  %v2314_v24 = vor.u32 %v2312_v19, %v2311_v34  ;;  %v2315_v6 = vrot.slane %v2311_v34, 4  ;;  %v2268_v8 = vmax.f32 %v2258_v9, 0.0  ;;  %v2536_v52 = vld [vmem:[#allocation3] sm:$0xf] }
 0x17f   : > { %2486 = vst [vmem:[#allocation3 + $0xc] sm:$0x1] %v2485_v57  ;;  %v2223_v32 = vpop.f32.mrf.mxu0  ;;  %v2717_v41 = vrot.slane %v2681_v29, 5  ;;  %v2553_v43 = vshrl.u32 %v2536_v52, 16  ;;  %v2682_v30 = vld [vmem:[#allocation3 + $0x8] sm:$0xe] }
 0x180   : > { %v2456_v17 = vld [vmem:[#allocation3 + $0x10] sm:$0x1]  ;;  %v2409_v33 = vsel %vm6783_vm7, %v2314_v24, %v2408_v59  ;;  %v2278_v35 = vpack.c.bf16 %v2268_v8, %v2268_v8  ;;  %v2224_v37 = vadd.f32 %v2223_v32, %v2190_v21  ;;  %v2412_v60 = vsel %vm6789_vm8, %v2315_v6, %v2411_v31  ;;  %v2417_v11 = vld [vmem:[#allocation3 + $0x24] sm:$0x1] }
 0x181   : > { %v2457_v12 = vsel %vm6789_vm8, 0, %v2456_v17  ;;  %2410 = vst [vmem:[#allocation3 + $0x18] sm:$0xf] %v2409_v33  ;;  %v2521_v49 = vld [vmem:[#allocation3 + $0x8] sm:$0xf]  ;;  %v2718_v4 = vsel %vm6853_vm12, %v5204_v40, %v2717_v41  ;;  %v2556_v27 = vshll.u32 %v2536_v52, 16  ;;  %v2127_v59 = vadd.f32 %v2126_v15, %v2093_v63  ;;  %v2163_v33 = vpop.f32.mrf.mxu2 }
 0x182   : > { %2458 = vst [vmem:[#allocation3 + $0x10] sm:$0x1] %v2457_v12  ;;  %v2487_v7 = vld [vmem:[#allocation3 + $0x14] sm:$0x1]  ;;  %v2245_v46 = vmul.f32 %v6759_v2, %v2224_v37  ;;  %v2317_v16 = vshrl.u32 %v2278_v35, 16  ;;  %v2320_v50 = vshll.u32 %v2278_v35, 16  ;;  %v2064_v40 = vadd.f32 %v6742_v56, %v2030_v28 }
 0x183   : > { %v2488_v53 = vsel %vm6809_vm9, 0, %v2487_v7  ;;  %2413 = vst [vmem:[#allocation3 + $0x1c] sm:$0x1] %v2412_v60  ;;  %v5205_v23 = vrot.slane %v2682_v30, 9  ;;  %v2537_v48 = vld [vmem:[#allocation3 + $0x4] sm:$0x1]  ;;  %v2161_v6 = vadd.f32 %v2160_v18, %v2127_v59  ;;  %v2197_v30 = vpop.f32.mrf.mxu3 }
 0x184   : > { %2489 = vst [vmem:[#allocation3 + $0x14] sm:$0x1] %v2488_v53  ;;  %v2259_v1 = vadd.f32 %v6764_v36, %v2245_v46  ;;  %v2319_v39 = vrot.slane %v2317_v16, 7  ;;  %v2555_v57 = vrot.slane %v2553_v43, 4  ;;  %v2558_v24 = vrot.slane %v2556_v27, 5  ;;  %v5926_v59 = vld [vmem:[#allocation5 + $0x1a0] sm:$0xff] }
 0x185   : > { %2529 = vst [vmem:[#allocation4 + $0x24] sm:$0xf] %v2521_v49  ;;  %v6870_v31 = vld [vmem:[#allocation3 + $0x8] sm:$0xf]  ;;  %v2423_v35 = vld [vmem:[#allocation3 + $0x2c] sm:$0x1]  ;;  %v2195_v60 = vadd.f32 %v2194_v54, %v2161_v6  ;;  %v2130_v46 = vadd.f32 %v2129_v55, %v6748_v5 }
 0x186   : > { %v2269_v26 = vmax.f32 %v2259_v1, 0.0  ;;  %v2322_v62 = vor.u32 %v2320_v50, %v2319_v39  ;;  %v2323_v13 = vrot.slane %v2319_v39, 4  ;;  %v2683_v19 = vld [vmem:[#allocation3 + $0xc] sm:$0x1]  ;;  %2755 = vst [vmem:[#allocation4 + $0x8] sm:$0xf] %v2718_v4  ;;  %v2559_v7 = vor.u32 %v2558_v24, %v2555_v57 }
 0x187   : > { %v2226_v34 = vpop.f32.mrf.mxu0  ;;  %v2721_v21 = vrot.slane %v2683_v19, 5  ;;  %v5230_v37 = vld [vmem:[#allocation4] sm:$0xf]  ;;  %v2562_v12 = vshll.u32 %v2537_v48, 16  ;;  %v2567_v1 = vshrl.u32 %v6870_v31, 16  ;;  %v5913_v5 = vld [vmem:[#allocation5 + $0x138] sm:$0xff] }
 0x188   : > { %v2279_v9 = vpack.c.bf16 %v2269_v26, %v2269_v26  ;;  %v2227_v20 = vadd.f32 %v2226_v34, %v2193_v45  ;;  %v2415_v44 = vsel %vm6783_vm7, %v2322_v62, %v2414_v0  ;;  %v2459_v8 = vld [vmem:[#allocation3 + $0x18] sm:$0x1]  ;;  %v2418_v29 = vsel %vm6789_vm8, %v2323_v13, %v2417_v11  ;;  %v6883_v50 = vld [vmem:[#allocation3 + $0xc] sm:$0x1]  ;;  %4161 = vmatpush.bf16.msrb.mxu2 %v5913_v5  ;;  %v2426_v57 = vld [vmem:[#allocation3 + $0x30] sm:$0xf] }
 0x189   : > { %v2460_v32 = vsel %vm6789_vm8, 0, %v2459_v8  ;;  %2416 = vst [vmem:[#allocation3 + $0x20] sm:$0xf] %v2415_v44  ;;  %v2722_v17 = vsel %vm6853_vm12, %v5205_v23, %v2721_v21  ;;  %v2560_v4 = vrot.slane %v2559_v7, 4  ;;  %v2564_v43 = vrot.slane %v2562_v12, 5  ;;  %v5927_v45 = vld [vmem:[#allocation5 + $0x1a8] sm:$0xff]  ;;  %v2131_v23 = vpop.f32.mrf.mxu1 }
 0x18a   : > { %v2325_v3 = vshrl.u32 %v2279_v9, 16  ;;  %v2246_v15 = vmul.f32 %v6759_v2, %v2227_v20  ;;  %2461 = vst [vmem:[#allocation3 + $0x18] sm:$0x1] %v2460_v32  ;;  %v2490_v41 = vld [vmem:[#allocation3 + $0x1c] sm:$0x1]  ;;  %v2328_v53 = vshll.u32 %v2279_v9, 16  ;;  %v2164_v26 = vadd.f32 %v2163_v33, %v2130_v46  ;;  %4221 = vmatpush.bf16.msra.mxu0 %v5927_v45  ;;  %v2165_v33 = vpop.f32.mrf.mxu2 }
 0x18b   : > { %2419 = vst [vmem:[#allocation3 + $0x24] sm:$0x1] %v2418_v29  ;;  %v2491_v52 = vsel %vm6809_vm9, 0, %v2490_v41  ;;  %v2570_v62 = vshll.u32 %v6870_v31, 16  ;;  %v2098_v13 = vadd.f32 %v6753_v14, %v2064_v40  ;;  %v6892_v9 = vld [vmem:[#allocation3 + $0x8] sm:$0xe]  ;;  %v2565_v6 = vsel %vm6370_vm2, %v2560_v4, %v2564_v43  ;;  %v2199_v45 = vpop.f32.mrf.mxu3 }
 0x18c   : > { %v2327_v42 = vrot.slane %v2325_v3, 7  ;;  %v2260_v18 = vadd.f32 %v6764_v36, %v2246_v15  ;;  %v5842_v16 = vld [vmem:[#allocation4 + $0x20] sm:$0xf0]  ;;  %2756 = vst [vmem:[#allocation4 + $0x2c] sm:$0xf] %v2722_v17  ;;  %v2569_v44 = vrot.slane %v2567_v1, 4  ;;  %v2198_v17 = vadd.f32 %v2197_v30, %v2164_v26 }
 0x18d   : > { %2492 = vst [vmem:[#allocation3 + $0x1c] sm:$0x1] %v2491_v52  ;;  %v5231_v56 = vor.u32 %v5842_v16, %v5230_v37  ;;  %v5238_v54 = vld [vmem:[#allocation4 + $0x8] sm:$0xf]  ;;  %v2576_v14 = vshll.u32 %v6883_v50, 16  ;;  %v2572_v15 = vrot.slane %v2570_v62, 5  ;;  %v2132_v41 = vadd.f32 %v2131_v23, %v2098_v13 }
 0x18e   : > { %v2331_v61 = vrot.slane %v2327_v42, 4  ;;  %v2270_v63 = vmax.f32 %v2260_v18, 0.0  ;;  %v2330_v49 = vor.u32 %v2328_v53, %v2327_v42  ;;  %v2522_v55 = vld [vmem:[#allocation3 + $0x10] sm:$0xf]  ;;  %v2429_v32 = vld [vmem:[#allocation3 + $0x34] sm:$0x1]  ;;  %4222 = vmatpush.bf16.msra.mxu0 %v5926_v59 }
 0x18f   : > { %v2228_v0 = vpop.f32.mrf.mxu0  ;;  %4053 = vmatmul.bf16.vlgmr.msrb.gmra.mxu0 %v5231_v56  ;;  %v5921_v12 = vld [vmem:[#allocation5 + $0x178] sm:$0xff]  ;;  %v2573_v18 = vor.u32 %v2572_v15, %v2569_v44  ;;  %2672 = vst [vmem:[#allocation4 + $0x4] sm:$0xf] %v2565_v6  ;;  %v5212_v52 = vrot.slane %v6892_v9, 9  ;;  %v5924_v15 = vld [vmem:[#allocation5 + $0x190] sm:$0xff] }
 0x190   : > { %v2229_v39 = vadd.f32 %v2228_v0, %v2195_v60  ;;  %v2424_v27 = vsel %vm6789_vm8, %v2331_v61, %v2423_v35  ;;  %v2280_v28 = vpack.c.bf16 %v2270_v63, %v2270_v63  ;;  %v2462_v11 = vld [vmem:[#allocation3 + $0x20] sm:$0x1]  ;;  %v2421_v34 = vsel %vm6783_vm7, %v2330_v49, %v2420_v25  ;;  %v5925_v40 = vld [vmem:[#allocation5 + $0x198] sm:$0xff]  ;;  %2530 = vst [vmem:[#allocation4 + $0x48] sm:$0xf] %v2522_v55 }
 0x191   : > { %2425 = vst [vmem:[#allocation3 + $0x2c] sm:$0x1] %v2424_v27  ;;  %v2463_v20 = vsel %vm6789_vm8, 0, %v2462_v11  ;;  %v2523_v60 = vld [vmem:[#allocation3 + $0x18] sm:$0xf]  ;;  %v5912_v61 = vld [vmem:[#allocation5 + $0x130] sm:$0xff]  ;;  %v2166_v63 = vadd.f32 %v2165_v33, %v2132_v41  ;;  %4190 = vmatpush.bf16.msrb.mxu3 %v5921_v12 }
 0x192   : > { %v2247_v19 = vmul.f32 %v6759_v2, %v2229_v39  ;;  %2422 = vst [vmem:[#allocation3 + $0x28] sm:$0xf] %v2421_v34  ;;  %v2333_v21 = vshrl.u32 %v2280_v28, 16  ;;  %v2493_v48 = vld [vmem:[#allocation3 + $0x24] sm:$0x1]  ;;  %v2336_v31 = vshll.u32 %v2280_v28, 16  ;;  %4162 = vmatpush.bf16.msrb.mxu2 %v5912_v61  ;;  %4223 = vmatpush.bf16.msra.mxu0 %v5925_v40 }
 0x193   : > { %2464 = vst [vmem:[#allocation3 + $0x20] sm:$0x1] %v2463_v20  ;;  %v2494_v8 = vsel %vm6809_vm9, 0, %v2493_v48  ;;  %v5843_v3 = vld [vmem:[#allocation4 + $0x28] sm:$0xf0]  ;;  %v2574_v1 = vrot.slane %v2573_v18, 4  ;;  %v2200_v59 = vadd.f32 %v2199_v45, %v2166_v63 }
 0x194   : > { %v2261_v24 = vadd.f32 %v6764_v36, %v2247_v19  ;;  %v2335_v29 = vrot.slane %v2333_v21, 7  ;;  %2495 = vst [vmem:[#allocation3 + $0x24] sm:$0x1] %v2494_v8  ;;  %v5239_v37 = vor.u32 %v5843_v3, %v5238_v54  ;;  %v6902_v46 = vld [vmem:[#allocation3 + $0x8] sm:$0xf]  ;;  %v2578_v49 = vrot.slane %v2576_v14, 5 }
 0x195   : > { %2531 = vst [vmem:[#allocation4 + $0x6c] sm:$0xf] %v2523_v60  ;;  %v2797_v26 = vshrl.u32 %v6902_v46, 16  ;;  %v2432_v27 = vld [vmem:[#allocation3 + $0x38] sm:$0xf]  ;;  %v5920_v3 = vld [vmem:[#allocation5 + $0x170] sm:$0xff] }
 0x196   : > { %v2271_v35 = vmax.f32 %v2261_v24, 0.0  ;;  %v2338_v42 = vor.u32 %v2336_v31, %v2335_v29  ;;  %v2339_v25 = vrot.slane %v2335_v29, 4  ;;  %4111 = vmatmul.bf16.vlgmr.msra.gmra.mxu3 %v5239_v37  ;;  %v2579_v28 = vsel %vm6370_vm2, %v2574_v1, %v2578_v49  ;;  %v2684_v11 = vld [vmem:[#allocation3 + $0x10] sm:$0xe]  ;;  %v2435_v34 = vld [vmem:[#allocation3 + $0x3c] sm:$0x1]  ;;  %4224 = vmatpush.bf16.msra.mxu0 %v5924_v15 }
 0x197   : > { %v2231_v7 = vpop.f32.mrf.mxu0  ;;  %v2685_v19 = vld [vmem:[#allocation3 + $0x14] sm:$0x1]  ;;  %2673 = vst [vmem:[#allocation4 + $0x28] sm:$0xf] %v2579_v28  ;;  %v2686_v14 = vld [vmem:[#allocation3 + $0x18] sm:$0xe]  ;;  %4191 = vmatpush.bf16.msrb.mxu3 %v5920_v3 }
 0x198   : > { %v2281_v53 = vpack.c.bf16 %v2271_v35, %v2271_v35  ;;  %v2232_v16 = vadd.f32 %v2231_v7, %v2198_v17  ;;  %v2496_v56 = vld [vmem:[#allocation3 + $0x2c] sm:$0x1]  ;;  %v2427_v0 = vsel %vm6783_vm7, %v2338_v42, %v2426_v57  ;;  %v2430_v4 = vsel %vm6789_vm8, %v2339_v25, %v2429_v32  ;;  %v5266_v23 = vld [vmem:[#allocation4 + $0x48] sm:$0xf]  ;;  %v2687_v57 = vld [vmem:[#allocation3 + $0x1c] sm:$0x1] }
 0x199   : > { %v2465_v39 = vld [vmem:[#allocation3 + $0x28] sm:$0x1]  ;;  %v2497_v50 = vsel %vm6809_vm9, 0, %v2496_v56  ;;  %2428 = vst [vmem:[#allocation3 + $0x30] sm:$0xf] %v2427_v0  ;;  %v5206_v24 = vrot.slane %v2684_v11, 9 }
 0x19a   : > { %v2341_v43 = vshrl.u32 %v2281_v53, 16  ;;  %v2248_v5 = vmul.f32 %v6759_v2, %v2232_v16  ;;  %v2466_v30 = vsel %vm6789_vm8, 0, %v2465_v39  ;;  %2498 = vst [vmem:[#allocation3 + $0x2c] sm:$0x1] %v2497_v50  ;;  %v2344_v62 = vshll.u32 %v2281_v53, 16  ;;  %v5911_v7 = vld [vmem:[#allocation5 + $0x128] sm:$0xff] }
 0x19b   : > { %2467 = vst [vmem:[#allocation3 + $0x28] sm:$0x1] %v2466_v30  ;;  %v2725_v6 = vrot.slane %v2685_v19, 5  ;;  %v5838_v33 = vld [vmem:[#allocation4 + $0x4] sm:$0xf]  ;;  %v5207_v12 = vrot.slane %v2686_v14, 9  ;;  %4163 = vmatpush.bf16.msrb.mxu2 %v5911_v7 }
 0x19c   : > { %v2343_v54 = vrot.slane %v2341_v43, 7  ;;  %v2262_v13 = vadd.f32 %v6764_v36, %v2248_v5  ;;  %2431 = vst [vmem:[#allocation3 + $0x34] sm:$0x1] %v2430_v4  ;;  %v5851_v31 = vld [vmem:[#allocation4 + $0x68] sm:$0xf0]  ;;  %v2729_v40 = vrot.slane %v2687_v57, 5 }
 0x19d   : > { %v5267_v35 = vor.u32 %v5851_v31, %v5266_v23  ;;  %v2726_v37 = vsel %vm6853_vm12, %v5206_v24, %v2725_v6  ;;  %v2438_v60 = vld [vmem:[#allocation3 + $0x40] sm:$0xf]  ;;  %v2540_v16 = vld [vmem:[#allocation3 + $0x10] sm:$0xf]  ;;  %v2541_v61 = vld [vmem:[#allocation3 + $0x14] sm:$0x1] }
 0x19e   : > { %v2346_v20 = vor.u32 %v2344_v62, %v2343_v54  ;;  %v2347_v21 = vrot.slane %v2343_v54, 4  ;;  %v2272_v44 = vmax.f32 %v2262_v13, 0.0  ;;  %v2730_v53 = vsel %vm6853_vm12, %v5207_v12, %v2729_v40  ;;  %v2441_v0 = vld [vmem:[#allocation3 + $0x44] sm:$0x1]  ;;  %2757 = vst [vmem:[#allocation4 + $0x50] sm:$0xf] %v2726_v37 }
 0x19f   : > { %v2233_v48 = vpop.f32.mrf.mxu0  ;;  %4058 = vmatmul.bf16.gmra.mxu0 %v5267_v35  ;;  %v2581_v49 = vshrl.u32 %v2540_v16, 16  ;;  %v5232_v39 = vld [vmem:[#allocation4 + $0x24] sm:$0xf0]  ;;  %2758 = vst [vmem:[#allocation4 + $0x74] sm:$0xf] %v2730_v53  ;;  %v2584_v50 = vshll.u32 %v2540_v16, 16 }
 0x1a0   : > { %v2433_v55 = vsel %vm6783_vm7, %v2346_v20, %v2432_v27  ;;  %v2436_v8 = vsel %vm6789_vm8, %v2347_v21, %v2435_v34  ;;  %v2282_v29 = vpack.c.bf16 %v2272_v44, %v2272_v44  ;;  %v2234_v32 = vadd.f32 %v2233_v48, %v2200_v59  ;;  %v2468_v17 = vld [vmem:[#allocation3 + $0x30] sm:$0x1]  ;;  %v2542_v30 = vld [vmem:[#allocation3 + $0x18] sm:$0xf]  ;;  %v2543_v27 = vld [vmem:[#allocation3 + $0x1c] sm:$0x1] }
 0x1a1   : > { %2434 = vst [vmem:[#allocation3 + $0x38] sm:$0xf] %v2433_v55  ;;  %v2469_v41 = vsel %vm6789_vm8, 0, %v2468_v17  ;;  %v5235_v4 = vor.u32 %v5838_v33, %v5232_v39  ;;  %v2583_v28 = vrot.slane %v2581_v49, 4  ;;  %v2586_v54 = vrot.slane %v2584_v50, 5  ;;  %v5923_v21 = vld [vmem:[#allocation5 + $0x188] sm:$0xff] }
 0x1a2   : > { %2437 = vst [vmem:[#allocation3 + $0x3c] sm:$0x1] %v2436_v8  ;;  %v2349_v42 = vshrl.u32 %v2282_v29, 16  ;;  %v2352_v25 = vshll.u32 %v2282_v29, 16  ;;  %v2249_v18 = vmul.f32 %v6759_v2, %v2234_v32  ;;  %v2590_v62 = vshll.u32 %v2541_v61, 16  ;;  %v5919_v44 = vld [vmem:[#allocation5 + $0x168] sm:$0xff]  ;;  %4225 = vmatpush.bf16.msra.mxu0 %v5923_v21 }
 0x1a3   : > { %2470 = vst [vmem:[#allocation3 + $0x30] sm:$0x1] %v2469_v41  ;;  %v2499_v63 = vld [vmem:[#allocation3 + $0x34] sm:$0x1]  ;;  %v2800_v13 = vshll.u32 %v6902_v46, 16  ;;  %4082 = vmatmul.bf16.vlgmr.msra.gmra.mxu2 %v5235_v4  ;;  %v2598_v20 = vshll.u32 %v2542_v30, 16  ;;  %v2587_v57 = vor.u32 %v2586_v54, %v2583_v28  ;;  %4192 = vmatpush.bf16.msrb.mxu3 %v5919_v44 }
 0x1a4   : > { %v2351_v56 = vrot.slane %v2349_v42, 7  ;;  %v2263_v1 = vadd.f32 %v6764_v36, %v2249_v18  ;;  %v2500_v2 = vsel %vm6809_vm9, 0, %v2499_v63  ;;  %v2595_v36 = vshrl.u32 %v2542_v30, 16  ;;  %v6933_v11 = vld [vmem:[#allocation3 + $0x10] sm:$0xe]  ;;  %v5905_v49 = vld [vmem:[#allocation5 + $0xf8] sm:$0xff] }
 0x1a5   : > { %2501 = vst [vmem:[#allocation3 + $0x34] sm:$0x1] %v2500_v2  ;;  %v2592_v24 = vrot.slane %v2590_v62, 5  ;;  %v6941_v6 = vld [vmem:[#allocation3 + $0x10] sm:$0xf]  ;;  %v2588_v17 = vrot.slane %v2587_v57, 4  ;;  %4132 = vmatpush.bf16.msrb.mxu1 %v5905_v49 }
 0x1a6   : > { %v2354_v43 = vor.u32 %v2352_v25, %v2351_v56  ;;  %v2355_v5 = vrot.slane %v2351_v56, 4  ;;  %v2273_v45 = vmax.f32 %v2263_v1, 0.0  ;;  %v2597_v31 = vrot.slane %v2595_v36, 4  ;;  %v2444_v32 = vld [vmem:[#allocation3 + $0x48] sm:$0xf]  ;;  %v5922_v18 = vld [vmem:[#allocation5 + $0x180] sm:$0xff] }
 0x1a7   : > { %v2447_v3 = vld [vmem:[#allocation3 + $0x4c] sm:$0x1]  ;;  %v5274_v15 = vld [vmem:[#allocation4 + $0x50] sm:$0xf]  ;;  %v2600_v33 = vrot.slane %v2598_v20, 5  ;;  %v2604_v12 = vshll.u32 %v2543_v27, 16  ;;  %v2593_v42 = vsel %vm6370_vm2, %v2588_v17, %v2592_v24  ;;  %4226 = vmatpush.bf16.msra.mxu0 %v5922_v18 }
 0x1a8   : > { %v2471_v34 = vld [vmem:[#allocation3 + $0x38] sm:$0x1]  ;;  %v2439_v19 = vsel %vm6783_vm7, %v2354_v43, %v2438_v60  ;;  %v2283_v59 = vpack.c.bf16 %v2273_v45, %v2273_v45  ;;  %v2442_v48 = vsel %vm6789_vm8, %v2355_v5, %v2441_v0  ;;  %v5852_v37 = vld [vmem:[#allocation4 + $0x70] sm:$0xf0]  ;;  %v5213_v40 = vrot.slane %v6933_v11, 9  ;;  %v5918_v50 = vld [vmem:[#allocation5 + $0x160] sm:$0xff] }
 0x1a9   : > { %v2472_v14 = vsel %vm6789_vm8, 0, %v2471_v34  ;;  %v2502_v23 = vld [vmem:[#allocation3 + $0x3c] sm:$0x1]  ;;  %2440 = vst [vmem:[#allocation3 + $0x40] sm:$0xf] %v2439_v19  ;;  %v5275_v41 = vor.u32 %v5852_v37, %v5274_v15  ;;  %v2601_v25 = vor.u32 %v2600_v33, %v2597_v31  ;;  %v6950_v53 = vrot.slane %v2797_v26, 4  ;;  %4193 = vmatpush.bf16.msrb.mxu3 %v5918_v50 }
 0x1aa   : > { %2473 = vst [vmem:[#allocation3 + $0x38] sm:$0x1] %v2472_v14  ;;  %v2503_v55 = vsel %vm6809_vm9, 0, %v2502_v23  ;;  %v2357_v8 = vshrl.u32 %v2283_v59, 16  ;;  %v2360_v29 = vshll.u32 %v2283_v59, 16  ;;  %v6952_v16 = vrot.slane %v2800_v13, 5 }
 0x1ab   : > { %2504 = vst [vmem:[#allocation3 + $0x3c] sm:$0x1] %v2503_v55  ;;  %v2524_v7 = vld [vmem:[#allocation3 + $0x20] sm:$0xf]  ;;  %v2525_v60 = vld [vmem:[#allocation3 + $0x28] sm:$0xf]  ;;  %4116 = vmatmul.bf16.gmra.mxu3 %v5275_v41 }
 0x1ac   : > { %2443 = vst [vmem:[#allocation3 + $0x44] sm:$0x1] %v2442_v48  ;;  %v2359_v35 = vrot.slane %v2357_v8, 7  ;;  %v2811_v56 = vshrl.u32 %v6941_v6, 16  ;;  %v2602_v0 = vrot.slane %v2601_v25, 4  ;;  %v2606_v1 = vrot.slane %v2604_v12, 5 }
 0x1ad   : > { %2674 = vst [vmem:[#allocation4 + $0x4c] sm:$0xf] %v2593_v42  ;;  %v5910_v26 = vld [vmem:[#allocation5 + $0x120] sm:$0xff]  ;;  %v2688_v45 = vld [vmem:[#allocation3 + $0x20] sm:$0xe]  ;;  %v2814_v36 = vshll.u32 %v6941_v6, 16 }
 0x1ae   : > { %v2362_v61 = vor.u32 %v2360_v29, %v2359_v35  ;;  %v2363_v63 = vrot.slane %v2359_v35, 4  ;;  %2532 = vst [vmem:[#allocation4 + $0x90] sm:$0xf] %v2524_v7  ;;  %v2607_v43 = vsel %vm6370_vm2, %v2602_v0, %v2606_v1  ;;  %v3005_v5 = vld [vmem:[#allocation3 + $0x10] sm:$0xf]  ;;  %v5904_v30 = vld [vmem:[#allocation5 + $0xf0] sm:$0xff]  ;;  %4164 = vmatpush.bf16.msrb.mxu2 %v5910_v26 }
 0x1af   : > { %2533 = vst [vmem:[#allocation4 + $0xb4] sm:$0xf] %v2525_v60  ;;  %v3006_v58 = vld [vmem:[#allocation3 + $0x18] sm:$0xf]  ;;  %v2689_v27 = vld [vmem:[#allocation3 + $0x24] sm:$0x1]  ;;  %4133 = vmatpush.bf16.msrb.mxu1 %v5904_v30 }
 0x1b0   : > { %v2474_v2 = vld [vmem:[#allocation3 + $0x40] sm:$0x1]  ;;  %v2445_v39 = vsel %vm6783_vm7, %v2362_v61, %v2444_v32  ;;  %v2448_v46 = vsel %vm6789_vm8, %v2363_v63, %v2447_v3  ;;  %v2690_v28 = vld [vmem:[#allocation3 + $0x28] sm:$0xe]  ;;  %v2691_v62 = vld [vmem:[#allocation3 + $0x2c] sm:$0x1] }
 0x1b1   : > { %v2475_v4 = vsel %vm6789_vm8, 0, %v2474_v2  ;;  %2446 = vst [vmem:[#allocation3 + $0x48] sm:$0xf] %v2445_v39  ;;  %v5208_v34 = vrot.slane %v2688_v45, 9  ;;  %v2733_v19 = vrot.slane %v2689_v27, 5  ;;  %v6966_v59 = vrot.slane %v2811_v56, 4 }
 0x1b2   : > { %2476 = vst [vmem:[#allocation3 + $0x40] sm:$0x1] %v2475_v4  ;;  %v5209_v20 = vrot.slane %v2690_v28, 9  ;;  %v2737_v21 = vrot.slane %v2691_v62, 5  ;;  %v5903_v44 = vld [vmem:[#allocation5 + $0xe8] sm:$0xff]  ;;  %v6977_v42 = vrot.slane %v2814_v36, 5 }
 0x1b3   : > { %v2505_v54 = vld [vmem:[#allocation3 + $0x44] sm:$0x1]  ;;  %2449 = vst [vmem:[#allocation3 + $0x4c] sm:$0x1] %v2448_v46  ;;  %v2734_v23 = vsel %vm6853_vm12, %v5208_v34, %v2733_v19  ;;  %v2544_v48 = vld [vmem:[#allocation3 + $0x20] sm:$0xf]  ;;  %4134 = vmatpush.bf16.msrb.mxu1 %v5903_v44 }
 0x1b4   : > { %v2506_v13 = vsel %vm6809_vm9, 0, %v2505_v54  ;;  %2675 = vst [vmem:[#allocation4 + $0x70] sm:$0xf] %v2607_v43  ;;  %v2738_v24 = vsel %vm6853_vm12, %v5209_v20, %v2737_v21  ;;  %v2545_v6 = vld [vmem:[#allocation3 + $0x24] sm:$0x1]  ;;  %v2609_v15 = vshrl.u32 %v2544_v48, 16 }
 0x1b5   : > { %2507 = vst [vmem:[#allocation3 + $0x44] sm:$0x1] %v2506_v13  ;;  %v5302_v14 = vld [vmem:[#allocation4 + $0x90] sm:$0xf]  ;;  %v2546_v29 = vld [vmem:[#allocation3 + $0x28] sm:$0xf] }
 0x1b6   : > { %3013 = vst [vmem:[#allocation4 + $0x18] sm:$0xf] %v3005_v5  ;;  %v5860_v57 = vld [vmem:[#allocation4 + $0xb0] sm:$0xf0]  ;;  %v5847_v32 = vld [vmem:[#allocation4 + $0x4c] sm:$0xf] }
 0x1b7   : > { %3014 = vst [vmem:[#allocation4 + $0x3c] sm:$0xf] %v3006_v58  ;;  %v5303_v8 = vor.u32 %v5860_v57, %v5302_v14  ;;  %v2547_v3 = vld [vmem:[#allocation3 + $0x2c] sm:$0x1]  ;;  %v2612_v33 = vshll.u32 %v2544_v48, 16  ;;  %v2618_v35 = vshll.u32 %v2545_v6, 16 }
 0x1b8   : > { %v2477_v55 = vld [vmem:[#allocation3 + $0x48] sm:$0x1]  ;;  %2759 = vst [vmem:[#allocation4 + $0x98] sm:$0xf] %v2734_v23  ;;  %v2611_v41 = vrot.slane %v2609_v15, 4  ;;  %v2623_v18 = vshrl.u32 %v2546_v29, 16 }
 0x1b9   : > { %v2478_v31 = vsel %vm6789_vm8, 0, %v2477_v55  ;;  %2760 = vst [vmem:[#allocation4 + $0xbc] sm:$0xf] %v2738_v24  ;;  %4063 = vmatmul.bf16.vlgmr.msra.gmra.mxu1 %v5303_v8  ;;  %v2614_v25 = vrot.slane %v2612_v33, 5  ;;  %v5909_v7 = vld [vmem:[#allocation5 + $0x118] sm:$0xff]  ;;  %v2626_v61 = vshll.u32 %v2546_v29, 16  ;;  %v2803_v8 = vor.u32 %v6952_v16, %v6950_v53 }
 0x1ba   : > { %2479 = vst [vmem:[#allocation3 + $0x48] sm:$0x1] %v2478_v31  ;;  %v2508_v17 = vld [vmem:[#allocation3 + $0x4c] sm:$0x1]  ;;  %v2632_v63 = vshll.u32 %v2547_v3, 16  ;;  %v2620_v0 = vrot.slane %v2618_v35, 5  ;;  %4165 = vmatpush.bf16.msrb.mxu2 %v5909_v7 }
 0x1bb   : > { %v2509_v37 = vsel %vm6809_vm9, 0, %v2508_v17  ;;  %2518 = vst [vmem:[#allocation3 + $0x48] sm:$0xf] %v6162_v38  ;;  %v5268_v12 = vld [vmem:[#allocation4 + $0x6c] sm:$0xf0]  ;;  %v2615_v10 = vor.u32 %v2614_v25, %v2611_v41  ;;  %v2625_v1 = vrot.slane %v2623_v18, 4 }
 0x1bc   : > { %2510 = vst [vmem:[#allocation3 + $0x4c] sm:$0x1] %v2509_v37  ;;  %v5271_v22 = vor.u32 %v5847_v32, %v5268_v12  ;;  %v5917_v49 = vld [vmem:[#allocation5 + $0x158] sm:$0xff]  ;;  %v5902_v2 = vld [vmem:[#allocation5 + $0xe0] sm:$0xff]  ;;  %v2628_v26 = vrot.slane %v2626_v61, 5  ;;  %v2634_v50 = vrot.slane %v2632_v63, 5 }
 0x1bd   : > { %2519 = vst [vmem:[#allocation3 + $0x4c] sm:$0x1] %v6162_v38  ;;  %v5254_v60 = vld [vmem:[#allocation4 + $0x18] sm:$0xf]  ;;  %v2526_v4 = vld [vmem:[#allocation3 + $0x30] sm:$0xf]  ;;  %4194 = vmatpush.bf16.msrb.mxu3 %v5917_v49  ;;  %4135 = vmatpush.bf16.msrb.mxu1 %v5902_v2 }
 0x1be   : > { %4087 = vmatmul.bf16.gmra.mxu2 %v5271_v22  ;;  %v5845_v56 = vld [vmem:[#allocation4 + $0x38] sm:$0xf0]  ;;  %v2616_v5 = vrot.slane %v2615_v10, 4  ;;  %v2527_v38 = vld [vmem:[#allocation3 + $0x38] sm:$0xf]  ;;  %v2629_v58 = vor.u32 %v2628_v26, %v2625_v1  ;;  %v5908_v62 = vld [vmem:[#allocation5 + $0x110] sm:$0xff] }
 0x1bf   : > { %v5255_v39 = vor.u32 %v5845_v56, %v5254_v60  ;;  %v5310_v46 = vld [vmem:[#allocation4 + $0x98] sm:$0xf]  ;;  %2534 = vst [vmem:[#allocation4 + $0xd8] sm:$0xf] %v2526_v4  ;;  %v3007_v27 = vld [vmem:[#allocation3 + $0x20] sm:$0xf]  ;;  %4166 = vmatpush.bf16.msrb.mxu2 %v5908_v62 }
 0x1c0   : > { %v5861_v43 = vld [vmem:[#allocation4 + $0xb8] sm:$0xf0]  ;;  %v3008_v28 = vld [vmem:[#allocation3 + $0x28] sm:$0xf]  ;;  %v2621_v54 = vsel %vm6370_vm2, %v2616_v5, %v2620_v0  ;;  %2535 = vst [vmem:[#allocation4 + $0xfc] sm:$0xf] %v2527_v38 }
 0x1c1   : > { %v5901_v45 = vld [vmem:[#allocation5 + $0xd8] sm:$0xff]  ;;  %4227 = vmatmul.bf16.vlgmr.msra.gmra.mxu0 %v5255_v39  ;;  %v5311_v30 = vor.u32 %v5861_v43, %v5310_v46  ;;  %v2692_v36 = vld [vmem:[#allocation3 + $0x30] sm:$0xe]  ;;  %v5916_v13 = vld [vmem:[#allocation5 + $0x150] sm:$0xff]  ;;  %v2630_v34 = vrot.slane %v2629_v58, 4  ;;  %v6990_v7 = vrot.slane %v2803_v8, 4 }
 0x1c2   : > { %2676 = vst [vmem:[#allocation4 + $0x94] sm:$0xf] %v2621_v54  ;;  %v2693_v19 = vld [vmem:[#allocation3 + $0x34] sm:$0x1]  ;;  %v5210_v20 = vrot.slane %v2692_v36, 9  ;;  %4136 = vmatpush.bf16.msrb.mxu1 %v5901_v45  ;;  %4195 = vmatpush.bf16.msrb.mxu3 %v5916_v13  ;;  %v5900_v24 = vld [vmem:[#allocation5 + $0xd0] sm:$0xff] }
 0x1c3   : > { %4121 = vmatmul.bf16.gmra.mxu3 %v5311_v30  ;;  %3015 = vst [vmem:[#allocation4 + $0x60] sm:$0xf] %v3007_v27  ;;  %v2694_v21 = vld [vmem:[#allocation3 + $0x38] sm:$0xe]  ;;  %v2695_v44 = vld [vmem:[#allocation3 + $0x3c] sm:$0x1]  ;;  %v2635_v14 = vsel %vm6370_vm2, %v2630_v34, %v2634_v50  ;;  %v2817_v34 = vor.u32 %v6977_v42, %v6966_v59 }
 0x1c4   : > { %3016 = vst [vmem:[#allocation4 + $0x84] sm:$0xf] %v3008_v28  ;;  %v2741_v23 = vrot.slane %v2693_v19, 5  ;;  %v5211_v48 = vrot.slane %v2694_v21, 9  ;;  %v2745_v57 = vrot.slane %v2695_v44, 5  ;;  %v5899_v18 = vld [vmem:[#allocation5 + $0xc8] sm:$0xff] }
 0x1c5   : > { %2677 = vst [vmem:[#allocation4 + $0xb8] sm:$0xf] %v2635_v14  ;;  %v2548_v6 = vld [vmem:[#allocation3 + $0x30] sm:$0xf]  ;;  %v2549_v55 = vld [vmem:[#allocation3 + $0x34] sm:$0x1] }
 0x1c6   : > { %v2742_v29 = vsel %vm6853_vm12, %v5210_v20, %v2741_v23  ;;  %v2746_v31 = vsel %vm6853_vm12, %v5211_v48, %v2745_v57  ;;  %v2550_v32 = vld [vmem:[#allocation3 + $0x38] sm:$0xf]  ;;  %v2551_v3 = vld [vmem:[#allocation3 + $0x3c] sm:$0x1]  ;;  %v2637_v15 = vshrl.u32 %v2548_v6, 16  ;;  %v2640_v17 = vshll.u32 %v2548_v6, 16  ;;  %4137 = vmatpush.bf16.msrb.mxu1 %v5900_v24 }
 0x1c7   : > { %v5338_v33 = vld [vmem:[#allocation4 + $0xd8] sm:$0xf]  ;;  %2761 = vst [vmem:[#allocation4 + $0xe0] sm:$0xf] %v2742_v29  ;;  %v2646_v35 = vshll.u32 %v2549_v55, 16  ;;  %v2651_v37 = vshrl.u32 %v2550_v32, 16 }
 0x1c8   : > { %v5869_v12 = vld [vmem:[#allocation4 + $0xf8] sm:$0xf0]  ;;  %2762 = vst [vmem:[#allocation4 + $0x104] sm:$0xf] %v2746_v31  ;;  %v2639_v41 = vrot.slane %v2637_v15, 4  ;;  %v2642_v22 = vrot.slane %v2640_v17, 5 }
 0x1c9   : > { %v5339_v53 = vor.u32 %v5869_v12, %v5338_v33  ;;  %v2653_v16 = vrot.slane %v2651_v37, 4  ;;  %v2654_v25 = vshll.u32 %v2550_v32, 16  ;;  %v5856_v60 = vld [vmem:[#allocation4 + $0x94] sm:$0xf]  ;;  %v2648_v63 = vrot.slane %v2646_v35, 5  ;;  %v5907_v10 = vld [vmem:[#allocation5 + $0x108] sm:$0xff] }
 0x1ca   : > { %v2643_v61 = vor.u32 %v2642_v22, %v2639_v41  ;;  %v2660_v56 = vshll.u32 %v2551_v3, 16  ;;  %v5915_v0 = vld [vmem:[#allocation5 + $0x148] sm:$0xff]  ;;  %v5290_v1 = vld [vmem:[#allocation4 + $0x60] sm:$0xf]  ;;  %v2764_v46 = vld [vmem:[#allocation3 + $0x8] sm:$0xf]  ;;  %4138 = vmatpush.bf16.msrb.mxu1 %v5899_v18  ;;  %4167 = vmatpush.bf16.msrb.mxu2 %v5907_v10 }
 0x1cb   : > { %4068 = vmatmul.bf16.gmra.mxu1 %v5339_v53  ;;  %v5854_v49 = vld [vmem:[#allocation4 + $0x80] sm:$0xf0]  ;;  %v2656_v2 = vrot.slane %v2654_v25, 5  ;;  %v2765_v43 = vld [vmem:[#allocation3 + $0x10] sm:$0xf]  ;;  %4196 = vmatpush.bf16.msrb.mxu3 %v5915_v0  ;;  %v5945_v19 = vld [vmem:[#allocation5 + $0x238] sm:$0xff] }
 0x1cc   : > { %v5898_v39 = vld [vmem:[#allocation5 + $0xc0] sm:$0xff]  ;;  %v5304_v26 = vld [vmem:[#allocation4 + $0xb4] sm:$0xf0]  ;;  %v2644_v50 = vrot.slane %v2643_v61, 4  ;;  %v2662_v4 = vrot.slane %v2660_v56, 5  ;;  %v5291_v27 = vor.u32 %v5854_v49, %v5290_v1  ;;  %v2818_v8 = vrot.slane %v2817_v34, 4 }
 0x1cd   : > { %v5307_v5 = vor.u32 %v5856_v60, %v5304_v26  ;;  %v2657_v38 = vor.u32 %v2656_v2, %v2653_v16  ;;  %2772 = vst [vmem:[#allocation4 + $0xc] sm:$0xf] %v2764_v46  ;;  %v5914_v45 = vld [vmem:[#allocation5 + $0x140] sm:$0xff]  ;;  %v3010_v62 = vld [vmem:[#allocation3 + $0x38] sm:$0xf]  ;;  %v5937_v31 = vld [vmem:[#allocation5 + $0x1f8] sm:$0xff] }
 0x1ce   : > { %v3009_v30 = vld [vmem:[#allocation3 + $0x30] sm:$0xf]  ;;  %v2649_v54 = vsel %vm6370_vm2, %v2644_v50, %v2648_v63  ;;  %2773 = vst [vmem:[#allocation4 + $0x30] sm:$0xf] %v2765_v43  ;;  %4139 = vmatpush.bf16.msrb.mxu1 %v5898_v39  ;;  %v2925_v21 = vld [vmem:[#allocation3 + $0xc] sm:$0x1] }
 0x1cf   : > { %v5906_v58 = vld [vmem:[#allocation5 + $0x100] sm:$0xff]  ;;  %4092 = vmatmul.bf16.gmra.mxu2 %v5307_v5  ;;  %v2658_v13 = vrot.slane %v2657_v38, 4  ;;  %2678 = vst [vmem:[#allocation4 + $0xdc] sm:$0xf] %v2649_v54  ;;  %4197 = vmatpush.bf16.msrb.mxu3 %v5914_v45  ;;  %v2958_v23 = vrot.slane %v2925_v21, 5  ;;  %v5944_v15 = vld [vmem:[#allocation5 + $0x230] sm:$0xff] }
 0x1d0   : > { %v5346_v28 = vld [vmem:[#allocation4 + $0xe0] sm:$0xf]  ;;  %v5870_v36 = vld [vmem:[#allocation4 + $0x100] sm:$0xf0]  ;;  %3017 = vst [vmem:[#allocation4 + $0xa8] sm:$0xf] %v3009_v30  ;;  %4168 = vmatpush.bf16.msrb.mxu2 %v5906_v58 }
 0x1d1   : > { %4232 = vmatmul.bf16.gmra.mxu0 %v5291_v27  ;;  %v5347_v20 = vor.u32 %v5870_v36, %v5346_v28  ;;  %v2927_v44 = vld [vmem:[#allocation3 + $0x14] sm:$0x1]  ;;  %v2663_v14 = vsel %vm6370_vm2, %v2658_v13, %v2662_v4  ;;  %3018 = vst [vmem:[#allocation4 + $0xcc] sm:$0xf] %v3010_v62  ;;  %v2781_v57 = vld [vmem:[#allocation3 + $0xc] sm:$0x1]  ;;  %v2959_v6 = vsel %vm6853_vm12, %v5212_v52, %v2958_v23 }
 0x1d2   : > { %v2962_v48 = vrot.slane %v2927_v44, 5  ;;  %2679 = vst [vmem:[#allocation4 + $0x100] sm:$0xf] %v2663_v14  ;;  %v2783_v24 = vld [vmem:[#allocation3 + $0x14] sm:$0x1]  ;;  %v2806_v59 = vshll.u32 %v2781_v57, 16  ;;  %4248 = vmatpush.bf16.msra.mxu1 %v5937_v31 }
 0x1d3   : > { %4126 = vmatmul.bf16.gmra.mxu3 %v5347_v20  ;;  %v5957_v42 = vld [vmem:[%s7281_s7 + $0x38] sm:$0xff]  ;;  %v2820_v29 = vshll.u32 %v2783_v24, 16  ;;  %v2766_v32 = vld [vmem:[#allocation3 + $0x18] sm:$0xf]  ;;  %2996 = vst [vmem:[#allocation4 + $0x14] sm:$0xf] %v2959_v6 }
 0x1d4   : > { %4277 = vmatpush.bf16.msra.mxu2 %v5945_v19  ;;  %v2963_v55 = vsel %vm6853_vm12, %v5213_v40, %v2962_v48  ;;  %v2808_v3 = vrot.slane %v2806_v59, 5  ;;  %4429 = vmatpush.bf16.msra.mxu3 %v5957_v42  ;;  %v5956_v9 = vld [vmem:[%s7281_s7 + $0x30] sm:$0xff]  ;;  %v2767_v40 = vld [vmem:[#allocation3 + $0x20] sm:$0xf]  ;;  %2774 = vst [vmem:[#allocation4 + $0x54] sm:$0xf] %v2766_v32 }
 0x1d5   : > { %2997 = vst [vmem:[#allocation4 + $0x38] sm:$0xf] %v2963_v55  ;;  %v2822_v17 = vrot.slane %v2820_v29, 5  ;;  %v5240_v52 = vld [vmem:[#allocation4 + $0x2c] sm:$0xf0]  ;;  %v5943_v27 = vld [vmem:[#allocation5 + $0x228] sm:$0xff] }
 0x1d6   : > { %v2809_v11 = vsel %vm6370_vm2, %v6990_v7, %v2808_v3  ;;  %v5839_v33 = vld [vmem:[#allocation4 + $0xc] sm:$0xf]  ;;  %v3011_v37 = vld [vmem:[#allocation3 + $0x40] sm:$0xf]  ;;  %v5865_v12 = vld [vmem:[#allocation4 + $0xdc] sm:$0xf] }
 0x1d7   : > { %v2823_v35 = vsel %vm6370_vm2, %v2818_v8, %v2822_v17  ;;  %2916 = vst [vmem:[#allocation4 + $0x10] sm:$0xf] %v2809_v11  ;;  %v3012_v41 = vld [vmem:[#allocation3 + $0x48] sm:$0xf]  ;;  %v2928_v22 = vld [vmem:[#allocation3 + $0x18] sm:$0xe]  ;;  %v5243_v16 = vor.u32 %v5839_v33, %v5240_v52 }
 0x1d8   : > { %4278 = vmatpush.bf16.msra.mxu2 %v5944_v15  ;;  %2917 = vst [vmem:[#allocation4 + $0x34] sm:$0xf] %v2823_v35  ;;  %4430 = vmatpush.bf16.msra.mxu3 %v5956_v9  ;;  %v2929_v25 = vld [vmem:[#allocation3 + $0x1c] sm:$0x1]  ;;  %v2930_v18 = vld [vmem:[#allocation3 + $0x20] sm:$0xe] }
 0x1d9   : > { %v5340_v53 = vld [vmem:[#allocation4 + $0xfc] sm:$0xf0]  ;;  %2775 = vst [vmem:[#allocation4 + $0x78] sm:$0xf] %v2767_v40  ;;  %v2931_v7 = vld [vmem:[#allocation3 + $0x24] sm:$0x1] }
 0x1da   : > { %3019 = vst [vmem:[#allocation4 + $0xf0] sm:$0xf] %v3011_v37  ;;  %v5343_v60 = vor.u32 %v5865_v12, %v5340_v53  ;;  %v5863_v61 = vld [vmem:[#allocation4 + $0xc8] sm:$0xf0]  ;;  %v5214_v63 = vrot.slane %v2928_v22, 9  ;;  %v2966_v56 = vrot.slane %v2929_v25, 5 }
 0x1db   : > { %4140 = vmatmul.bf16.vlgmr.msrb.gmra.mxu1 %v5243_v16  ;;  %3020 = vst [vmem:[#allocation4 + $0x114] sm:$0xf] %v3012_v41  ;;  %v5215_v10 = vrot.slane %v2930_v18, 9  ;;  %v2970_v0 = vrot.slane %v2931_v7, 5  ;;  %v5936_v1 = vld [vmem:[#allocation5 + $0x1f0] sm:$0xff]  ;;  %v5935_v20 = vld [vmem:[#allocation5 + $0x1e8] sm:$0xff] }
 0x1dc   : > { %v5326_v49 = vld [vmem:[#allocation4 + $0xa8] sm:$0xf]  ;;  %v5248_v2 = vld [vmem:[#allocation4 + $0x34] sm:$0xf0]  ;;  %v2967_v39 = vsel %vm6853_vm12, %v5214_v63, %v2966_v56  ;;  %v5840_v50 = vld [vmem:[#allocation4 + $0x14] sm:$0xf]  ;;  %4249 = vmatpush.bf16.msra.mxu1 %v5936_v1  ;;  %4279 = vmatpush.bf16.msra.mxu2 %v5943_v27 }
 0x1dd   : > { %v2784_v46 = vld [vmem:[#allocation3 + $0x18] sm:$0xf]  ;;  %v5327_v26 = vor.u32 %v5863_v61, %v5326_v49  ;;  %v2971_v4 = vsel %vm6853_vm12, %v5215_v10, %v2970_v0  ;;  %2998 = vst [vmem:[#allocation4 + $0x5c] sm:$0xf] %v2967_v39  ;;  %v2786_v43 = vld [vmem:[#allocation3 + $0x20] sm:$0xf]  ;;  %v5251_v45 = vor.u32 %v5840_v50, %v5248_v2 }
 0x1de   : > { %2999 = vst [vmem:[#allocation4 + $0x80] sm:$0xf] %v2971_v4  ;;  %v2785_v5 = vld [vmem:[#allocation3 + $0x1c] sm:$0x1]  ;;  %v2787_v38 = vld [vmem:[#allocation3 + $0x24] sm:$0x1] }
 0x1df   : > { %4097 = vmatmul.bf16.gmra.mxu2 %v5343_v60  ;;  %v2825_v30 = vshrl.u32 %v2784_v46, 16  ;;  %v2828_v58 = vshll.u32 %v2784_v46, 16  ;;  %v2839_v28 = vshrl.u32 %v2786_v43, 16  ;;  %v2842_v54 = vshll.u32 %v2786_v43, 16  ;;  %v5955_v62 = vld [vmem:[%s7281_s7 + $0x28] sm:$0xff]  ;;  %v5942_v48 = vld [vmem:[#allocation5 + $0x220] sm:$0xff] }
 0x1e0   : > { %v2834_v34 = vshll.u32 %v2785_v5, 16  ;;  %v2848_v19 = vshll.u32 %v2787_v38, 16  ;;  %v7024_v21 = vld [vmem:[#allocation3 + $0x10] sm:$0xf]  ;;  %4431 = vmatpush.bf16.msra.mxu3 %v5955_v62  ;;  %v2768_v23 = vld [vmem:[#allocation3 + $0x28] sm:$0xf]  ;;  %4250 = vmatpush.bf16.msra.mxu1 %v5935_v20 }
 0x1e1   : > { %4237 = vmatmul.bf16.gmra.mxu0 %v5327_v26  ;;  %v2827_v36 = vrot.slane %v2825_v30, 4  ;;  %v2830_v13 = vrot.slane %v2828_v58, 5  ;;  %v2841_v44 = vrot.slane %v2839_v28, 4  ;;  %v2844_v14 = vrot.slane %v2842_v54, 5  ;;  %v2769_v24 = vld [vmem:[#allocation3 + $0x30] sm:$0xf]  ;;  %4280 = vmatpush.bf16.msra.mxu2 %v5942_v48 }
 0x1e2   : > { %2776 = vst [vmem:[#allocation4 + $0x9c] sm:$0xf] %v2768_v23  ;;  %v2932_v59 = vld [vmem:[#allocation3 + $0x28] sm:$0xe]  ;;  %v2933_v55 = vld [vmem:[#allocation3 + $0x2c] sm:$0x1] }
 0x1e3   : > { %4198 = vmatmul.bf16.vlgmr.msrb.gmra.mxu3 %v5251_v45  ;;  %v2831_v57 = vor.u32 %v2830_v13, %v2827_v36  ;;  %v5276_v42 = vld [vmem:[#allocation4 + $0x74] sm:$0xf0]  ;;  %v2845_v6 = vor.u32 %v2844_v14, %v2841_v44  ;;  %2777 = vst [vmem:[#allocation4 + $0xc0] sm:$0xf] %v2769_v24  ;;  %v5848_v8 = vld [vmem:[#allocation4 + $0x54] sm:$0xf] }
 0x1e4   : > { %v2836_v31 = vrot.slane %v2834_v34, 5  ;;  %v2850_v32 = vrot.slane %v2848_v19, 5  ;;  %v2934_v3 = vld [vmem:[#allocation3 + $0x30] sm:$0xe]  ;;  %v2935_v17 = vld [vmem:[#allocation3 + $0x34] sm:$0x1]  ;;  %v5279_v16 = vor.u32 %v5848_v8, %v5276_v42 }
 0x1e5   : > { %v2832_v29 = vrot.slane %v2831_v57, 4  ;;  %v2846_v15 = vrot.slane %v2845_v6, 4  ;;  %v5216_v9 = vrot.slane %v2932_v59, 9  ;;  %v2974_v52 = vrot.slane %v2933_v55, 5  ;;  %v5954_v11 = vld [vmem:[%s7281_s7 + $0x20] sm:$0xff]  ;;  %v5934_v41 = vld [vmem:[#allocation5 + $0x1e0] sm:$0xff] }
 0x1e6   : > { %v3038_v40 = vshrl.u32 %v7024_v21, 16  ;;  %v5844_v33 = vld [vmem:[#allocation4 + $0x30] sm:$0xf0]  ;;  %v5217_v37 = vrot.slane %v2934_v3, 9  ;;  %v2978_v12 = vrot.slane %v2935_v17, 5  ;;  %4432 = vmatpush.bf16.msra.mxu3 %v5954_v11  ;;  %4251 = vmatpush.bf16.msra.mxu1 %v5934_v41  ;;  %v3041_v46 = vshll.u32 %v7024_v21, 16 }
 0x1e7   : > { %v2837_v35 = vsel %vm6370_vm2, %v2832_v29, %v2836_v31  ;;  %v2788_v22 = vld [vmem:[#allocation3 + $0x28] sm:$0xf]  ;;  %v7032_v53 = vld [vmem:[#allocation3 + $0x18] sm:$0xf]  ;;  %v2851_v25 = vsel %vm6370_vm2, %v2846_v15, %v2850_v32  ;;  %v2975_v18 = vsel %vm6853_vm12, %v5216_v9, %v2974_v52  ;;  %v2789_v7 = vld [vmem:[#allocation3 + $0x2c] sm:$0x1] }
 0x1e8   : > { %2918 = vst [vmem:[#allocation4 + $0x58] sm:$0xf] %v2837_v35  ;;  %v2790_v60 = vld [vmem:[#allocation3 + $0x30] sm:$0xf]  ;;  %v5246_v61 = vld [vmem:[#allocation4 + $0x10] sm:$0xf]  ;;  %v2979_v56 = vsel %vm6853_vm12, %v5217_v37, %v2978_v12 }
 0x1e9   : > { %v5872_v63 = vld [vmem:[#allocation4 + $0x110] sm:$0xf0]  ;;  %2919 = vst [vmem:[#allocation4 + $0x7c] sm:$0xf] %v2851_v25  ;;  %v2853_v10 = vshrl.u32 %v2788_v22, 16  ;;  %v2856_v0 = vshll.u32 %v2788_v22, 16  ;;  %v5247_v43 = vor.u32 %v5844_v33, %v5246_v61 }
 0x1ea   : > { %v5362_v1 = vld [vmem:[#allocation4 + $0xf0] sm:$0xf]  ;;  %3000 = vst [vmem:[#allocation4 + $0xa4] sm:$0xf] %v2975_v18  ;;  %v2791_v49 = vld [vmem:[#allocation3 + $0x34] sm:$0x1] }
 0x1eb   : > { %4145 = vmatmul.bf16.gmra.mxu1 %v5279_v16  ;;  %v2867_v2 = vshrl.u32 %v2790_v60, 16  ;;  %v2870_v39 = vshll.u32 %v2790_v60, 16  ;;  %3001 = vst [vmem:[#allocation4 + $0xc8] sm:$0xf] %v2979_v56  ;;  %v2855_v26 = vrot.slane %v2853_v10, 4  ;;  %v2858_v50 = vrot.slane %v2856_v0, 5 }
 0x1ec   : > { %v2862_v4 = vshll.u32 %v2789_v7, 16  ;;  %v5849_v5 = vld [vmem:[#allocation4 + $0x5c] sm:$0xf]  ;;  %v5284_v38 = vld [vmem:[#allocation4 + $0x7c] sm:$0xf0]  ;;  %v3052_v27 = vshrl.u32 %v7032_v53, 16  ;;  %v5363_v28 = vor.u32 %v5872_v63, %v5362_v1 }
 0x1ed   : > { %v2869_v45 = vrot.slane %v2867_v2, 4  ;;  %v2872_v30 = vrot.slane %v2870_v39, 5  ;;  %v2770_v58 = vld [vmem:[#allocation3 + $0x38] sm:$0xf]  ;;  %v2859_v54 = vor.u32 %v2858_v50, %v2855_v26  ;;  %v2876_v62 = vshll.u32 %v2791_v49, 16  ;;  %v5941_v19 = vld [vmem:[#allocation5 + $0x218] sm:$0xff] }
 0x1ee   : > { %v2771_v36 = vld [vmem:[#allocation3 + $0x40] sm:$0xf]  ;;  %2778 = vst [vmem:[#allocation4 + $0xe4] sm:$0xf] %v2770_v58  ;;  %v3055_v13 = vshll.u32 %v7032_v53, 16  ;;  %v5953_v20 = vld [vmem:[%s7281_s7 + $0x18] sm:$0xff]  ;;  %v5287_v44 = vor.u32 %v5849_v5, %v5284_v38  ;;  %4281 = vmatpush.bf16.msra.mxu2 %v5941_v19 }
 0x1ef   : > { %4169 = vmatmul.bf16.vlgmr.msrb.gmra.mxu2 %v5247_v43  ;;  %v2873_v34 = vor.u32 %v2872_v30, %v2869_v45  ;;  %v5933_v21 = vld [vmem:[#allocation5 + $0x1d8] sm:$0xff]  ;;  %2779 = vst [vmem:[#allocation4 + $0x108] sm:$0xf] %v2771_v36  ;;  %v2860_v14 = vrot.slane %v2859_v54, 4  ;;  %v2864_v23 = vrot.slane %v2862_v4, 5  ;;  %v2878_v57 = vrot.slane %v2876_v62, 5  ;;  %4433 = vmatpush.bf16.msra.mxu3 %v5953_v20 }
 0x1f0   : > { %v5940_v24 = vld [vmem:[#allocation5 + $0x210] sm:$0xff]  ;;  %v2936_v59 = vld [vmem:[#allocation3 + $0x38] sm:$0xe]  ;;  %v3040_v42 = vrot.slane %v3038_v40, 4  ;;  %v3043_v6 = vrot.slane %v3041_v46, 5  ;;  %4252 = vmatpush.bf16.msra.mxu1 %v5933_v21  ;;  %v3054_v31 = vrot.slane %v3052_v27, 4 }
 0x1f1   : > { %4242 = vmatmul.bf16.gmra.mxu0 %v5363_v28  ;;  %v2874_v48 = vrot.slane %v2873_v34, 4  ;;  %v2865_v55 = vsel %vm6370_vm2, %v2860_v14, %v2864_v23  ;;  %v2937_v8 = vld [vmem:[#allocation3 + $0x3c] sm:$0x1]  ;;  %v2938_v29 = vld [vmem:[#allocation3 + $0x40] sm:$0xe]  ;;  %v3057_v32 = vrot.slane %v3055_v13, 5 }
 0x1f2   : > { %2920 = vst [vmem:[#allocation4 + $0xa0] sm:$0xf] %v2865_v55  ;;  %v2939_v15 = vld [vmem:[#allocation3 + $0x44] sm:$0x1]  ;;  %v5218_v17 = vrot.slane %v2936_v59, 9  ;;  %v2982_v9 = vrot.slane %v2937_v8, 5  ;;  %4282 = vmatpush.bf16.msra.mxu2 %v5940_v24  ;;  %v3044_v16 = vor.u32 %v3043_v6, %v3040_v42 }
 0x1f3   : > { %4203 = vmatmul.bf16.gmra.mxu3 %v5287_v44  ;;  %v2879_v3 = vsel %vm6370_vm2, %v2874_v48, %v2878_v57  ;;  %v5952_v52 = vld [vmem:[%s7281_s7 + $0x10] sm:$0xff]  ;;  %v5219_v11 = vrot.slane %v2938_v29, 9  ;;  %v2986_v40 = vrot.slane %v2939_v15, 5  ;;  %v5932_v33 = vld [vmem:[#allocation5 + $0x1d0] sm:$0xff]  ;;  %v2792_v35 = vld [vmem:[#allocation3 + $0x38] sm:$0xf]  ;;  %v3058_v63 = vor.u32 %v3057_v32, %v3054_v31 }
 0x1f4   : > { %2921 = vst [vmem:[#allocation4 + $0xc4] sm:$0xf] %v2879_v3  ;;  %v5857_v37 = vld [vmem:[#allocation4 + $0x9c] sm:$0xf]  ;;  %v5312_v12 = vld [vmem:[#allocation4 + $0xbc] sm:$0xf0]  ;;  %v2983_v41 = vsel %vm6853_vm12, %v5218_v17, %v2982_v9  ;;  %4434 = vmatpush.bf16.msra.mxu3 %v5952_v52  ;;  %4253 = vmatpush.bf16.msra.mxu1 %v5932_v33 }
 0x1f5   : > { %v2793_v22 = vld [vmem:[#allocation3 + $0x3c] sm:$0x1]  ;;  %v2794_v53 = vld [vmem:[#allocation3 + $0x40] sm:$0xf]  ;;  %v5853_v25 = vld [vmem:[#allocation4 + $0x78] sm:$0xf0]  ;;  %v2987_v18 = vsel %vm6853_vm12, %v5219_v11, %v2986_v40  ;;  %v5315_v49 = vor.u32 %v5857_v37, %v5312_v12 }
 0x1f6   : > { %3002 = vst [vmem:[#allocation4 + $0xec] sm:$0xf] %v2983_v41  ;;  %v2795_v7 = vld [vmem:[#allocation3 + $0x44] sm:$0x1]  ;;  %v2881_v60 = vshrl.u32 %v2792_v35, 16  ;;  %v2884_v61 = vshll.u32 %v2792_v35, 16 }
 0x1f7   : > { %3003 = vst [vmem:[#allocation4 + $0x110] sm:$0xf] %v2987_v18  ;;  %v2890_v56 = vshll.u32 %v2793_v22, 16  ;;  %v2895_v10 = vshrl.u32 %v2794_v53, 16  ;;  %v2898_v0 = vshll.u32 %v2794_v53, 16  ;;  %v2904_v1 = vshll.u32 %v2795_v7, 16 }
 0x1f8   : > { %v2883_v2 = vrot.slane %v2881_v60, 4  ;;  %v2886_v39 = vrot.slane %v2884_v61, 5  ;;  %v3022_v46 = vld [vmem:[#allocation3 + $0x14] sm:$0x1]  ;;  %v3024_v26 = vld [vmem:[#allocation3 + $0x1c] sm:$0x1] }
 0x1f9   : > { %v3165_v50 = vld [vmem:[#allocation3 + $0x10] sm:$0xe]  ;;  %v2897_v4 = vrot.slane %v2895_v10, 4  ;;  %v2900_v43 = vrot.slane %v2898_v0, 5  ;;  %v3045_v5 = vrot.slane %v3044_v16, 4  ;;  %v3047_v58 = vshll.u32 %v3022_v46, 16 }
 0x1fa   : > { %v3167_v38 = vld [vmem:[#allocation3 + $0x18] sm:$0xe]  ;;  %v5282_v45 = vld [vmem:[#allocation4 + $0x58] sm:$0xf]  ;;  %v2887_v30 = vor.u32 %v2886_v39, %v2883_v2  ;;  %v3061_v27 = vshll.u32 %v3024_v26, 16  ;;  %v2892_v62 = vrot.slane %v2890_v56, 5 }
 0x1fb   : > { %4150 = vmatmul.bf16.gmra.mxu1 %v5315_v49  ;;  %v3166_v28 = vld [vmem:[#allocation3 + $0x14] sm:$0x1]  ;;  %v5283_v54 = vor.u32 %v5853_v25, %v5282_v45  ;;  %v2901_v36 = vor.u32 %v2900_v43, %v2897_v4  ;;  %v3059_v13 = vrot.slane %v3058_v63, 4  ;;  %v3168_v34 = vld [vmem:[#allocation3 + $0x1c] sm:$0x1]  ;;  %v2906_v44 = vrot.slane %v2904_v1, 5 }
 0x1fc   : > { %v3025_v19 = vld [vmem:[#allocation3 + $0x20] sm:$0xf]  ;;  %v5320_v20 = vld [vmem:[#allocation4 + $0xc4] sm:$0xf0]  ;;  %v2888_v21 = vrot.slane %v2887_v30, 4  ;;  %v3049_v14 = vrot.slane %v3047_v58, 5 }
 0x1fd   : > { %v3199_v23 = vrot.slane %v3166_v28, 5  ;;  %v5858_v48 = vld [vmem:[#allocation4 + $0xa4] sm:$0xf]  ;;  %v2902_v57 = vrot.slane %v2901_v36, 4  ;;  %v3063_v24 = vrot.slane %v3061_v27, 5  ;;  %v3203_v59 = vrot.slane %v3168_v34, 5 }
 0x1fe   : > { %v3066_v42 = vshrl.u32 %v3025_v19, 16  ;;  %v5220_v6 = vrot.slane %v3165_v50, 9  ;;  %v2893_v55 = vsel %vm6370_vm2, %v2888_v21, %v2892_v62  ;;  %v5931_v8 = vld [vmem:[#allocation5 + $0x1c8] sm:$0xff]  ;;  %v3050_v31 = vsel %vm6370_vm2, %v3045_v5, %v3049_v14  ;;  %v3026_v32 = vld [vmem:[#allocation3 + $0x24] sm:$0x1]  ;;  %v5930_v40 = vld [vmem:[#allocation5 + $0x1c0] sm:$0xff] }
 0x1ff   : > { %4174 = vmatmul.bf16.gmra.mxu2 %v5283_v54  ;;  %v5939_v29 = vld [vmem:[#allocation5 + $0x208] sm:$0xff]  ;;  %v5221_v3 = vrot.slane %v3167_v38, 9  ;;  %v5323_v15 = vor.u32 %v5858_v48, %v5320_v20  ;;  %v2907_v17 = vsel %vm6370_vm2, %v2902_v57, %v2906_v44  ;;  %2922 = vst [vmem:[#allocation4 + $0xe8] sm:$0xf] %v2893_v55  ;;  %v5951_v9 = vld [vmem:[%s7281_s7 + $0x8] sm:$0xff]  ;;  %v3064_v52 = vsel %vm6370_vm2, %v3059_v13, %v3063_v24  ;;  %v5938_v33 = vld [vmem:[#allocation5 + $0x200] sm:$0xff] }
 0x200   : > { %v3027_v11 = vld [vmem:[#allocation3 + $0x28] sm:$0xf]  ;;  %2923 = vst [vmem:[#allocation4 + $0x10c] sm:$0xf] %v2907_v17  ;;  %4254 = vmatpush.bf16.msra.mxu1 %v5931_v8  ;;  %4283 = vmatpush.bf16.msra.mxu2 %v5939_v29  ;;  %v3200_v35 = vsel %vm6853_vm12, %v5220_v6, %v3199_v23  ;;  %v3068_v37 = vrot.slane %v3066_v42, 4  ;;  %v3069_v12 = vshll.u32 %v3025_v19, 16 }
 0x201   : > { %3157 = vst [vmem:[#allocation4 + $0x1c] sm:$0xf] %v3050_v31  ;;  %v3204_v41 = vsel %vm6853_vm12, %v5221_v3, %v3203_v59  ;;  %v3028_v22 = vld [vmem:[#allocation3 + $0x2c] sm:$0x1]  ;;  %4435 = vmatpush.bf16.msra.mxu3 %v5951_v9  ;;  %v5950_v53 = vld [vmem:[%s7281_s7] sm:$0xff]  ;;  %v3075_v25 = vshll.u32 %v3026_v32, 16 }
 0x202   : > { %3158 = vst [vmem:[#allocation4 + $0x40] sm:$0xf] %v3064_v52  ;;  %v3071_v16 = vrot.slane %v3069_v12, 5  ;;  %v3080_v18 = vshrl.u32 %v3027_v11, 16  ;;  %v5348_v7 = vld [vmem:[#allocation4 + $0x104] sm:$0xf0] }
 0x203   : > { %4208 = vmatmul.bf16.gmra.mxu3 %v5323_v15  ;;  %3237 = vst [vmem:[#allocation4 + $0x20] sm:$0xf] %v3200_v35  ;;  %v3083_v60 = vshll.u32 %v3027_v11, 16  ;;  %v3169_v61 = vld [vmem:[#allocation3 + $0x20] sm:$0xe]  ;;  %v3089_v10 = vshll.u32 %v3028_v22, 16 }
 0x204   : > { %4255 = vmatpush.bf16.msra.mxu1 %v5930_v40  ;;  %4284 = vmatpush.bf16.msra.mxu2 %v5938_v33  ;;  %3238 = vst [vmem:[#allocation4 + $0x44] sm:$0xf] %v3204_v41  ;;  %v3072_v63 = vor.u32 %v3071_v16, %v3068_v37  ;;  %v3082_v56 = vrot.slane %v3080_v18, 4  ;;  %v3170_v0 = vld [vmem:[#allocation3 + $0x24] sm:$0x1]  ;;  %v3077_v46 = vrot.slane %v3075_v25, 5 }
 0x205   : > { %v3085_v1 = vrot.slane %v3083_v60, 5  ;;  %v3171_v49 = vld [vmem:[#allocation3 + $0x28] sm:$0xe]  ;;  %v3172_v2 = vld [vmem:[#allocation3 + $0x2c] sm:$0x1]  ;;  %4436 = vmatpush.bf16.msra.mxu3 %v5950_v53  ;;  %v5222_v26 = vrot.slane %v3169_v61, 9 }
 0x206   : > { %v3073_v39 = vrot.slane %v3072_v63, 4  ;;  %v3207_v50 = vrot.slane %v3170_v0, 5  ;;  %v5866_v4 = vld [vmem:[#allocation4 + $0xe4] sm:$0xf]  ;;  %v5223_v5 = vrot.slane %v3171_v49, 9  ;;  %v3211_v38 = vrot.slane %v3172_v2, 5 }
 0x207   : > { %v3086_v43 = vor.u32 %v3085_v1, %v3082_v56  ;;  %v3029_v45 = vld [vmem:[#allocation3 + $0x30] sm:$0xf]  ;;  %v5862_v30 = vld [vmem:[#allocation4 + $0xc0] sm:$0xf0]  ;;  %v5351_v58 = vor.u32 %v5866_v4, %v5348_v7  ;;  %v3091_v28 = vrot.slane %v3089_v10, 5 }
 0x208   : > { %v3078_v27 = vsel %vm6370_vm2, %v3073_v39, %v3077_v46  ;;  %v3208_v54 = vsel %vm6853_vm12, %v5222_v26, %v3207_v50  ;;  %v3212_v36 = vsel %vm6853_vm12, %v5223_v5, %v3211_v38  ;;  %v3031_v13 = vld [vmem:[#allocation3 + $0x38] sm:$0xf]  ;;  %v3094_v34 = vshrl.u32 %v3029_v45, 16  ;;  %v5318_v19 = vld [vmem:[#allocation4 + $0xa0] sm:$0xf] }
 0x209   : > { %v3087_v62 = vrot.slane %v3086_v43, 4  ;;  %3159 = vst [vmem:[#allocation4 + $0x64] sm:$0xf] %v3078_v27  ;;  %v3030_v20 = vld [vmem:[#allocation3 + $0x34] sm:$0x1]  ;;  %v3097_v23 = vshll.u32 %v3029_v45, 16  ;;  %v5319_v48 = vor.u32 %v5862_v30, %v5318_v19 }
 0x20a   : > { %3239 = vst [vmem:[#allocation4 + $0x68] sm:$0xf] %v3208_v54  ;;  %v5356_v21 = vld [vmem:[#allocation4 + $0x10c] sm:$0xf0]  ;;  %v3096_v14 = vrot.slane %v3094_v34, 4  ;;  %v3108_v24 = vshrl.u32 %v3031_v13, 16 }
 0x20b   : > { %4155 = vmatmul.bf16.gmra.mxu1 %v5351_v58  ;;  %v3092_v44 = vsel %vm6370_vm2, %v3087_v62, %v3091_v28  ;;  %3240 = vst [vmem:[#allocation4 + $0x8c] sm:$0xf] %v3212_v36  ;;  %v3032_v57 = vld [vmem:[#allocation3 + $0x3c] sm:$0x1]  ;;  %v3111_v59 = vshll.u32 %v3031_v13, 16  ;;  %v3099_v42 = vrot.slane %v3097_v23, 5 }
 0x20c   : > { %3160 = vst [vmem:[#allocation4 + $0x88] sm:$0xf] %v3092_v44  ;;  %v3103_v6 = vshll.u32 %v3030_v20, 16  ;;  %v3173_v55 = vld [vmem:[#allocation3 + $0x30] sm:$0xe]  ;;  %v3110_v31 = vrot.slane %v3108_v24, 4 }
 0x20d   : > { %v3174_v8 = vld [vmem:[#allocation3 + $0x34] sm:$0x1]  ;;  %v5867_v29 = vld [vmem:[#allocation4 + $0xec] sm:$0xf]  ;;  %v3100_v3 = vor.u32 %v3099_v42, %v3096_v14  ;;  %v3113_v15 = vrot.slane %v3111_v59, 5  ;;  %v3117_v17 = vshll.u32 %v3032_v57, 16 }
 0x20e   : > { %v5359_v32 = vor.u32 %v5867_v29, %v5356_v21  ;;  %v3175_v9 = vld [vmem:[#allocation3 + $0x38] sm:$0xe]  ;;  %v3176_v52 = vld [vmem:[#allocation3 + $0x3c] sm:$0x1]  ;;  %v5224_v11 = vrot.slane %v3173_v55, 9  ;;  %v3215_v40 = vrot.slane %v3174_v8, 5 }
 0x20f   : > { %4179 = vmatmul.bf16.gmra.mxu2 %v5319_v48  ;;  %v5225_v33 = vrot.slane %v3175_v9, 9  ;;  %v3219_v35 = vrot.slane %v3176_v52, 5  ;;  %v3101_v37 = vrot.slane %v3100_v3, 4  ;;  %v3105_v12 = vrot.slane %v3103_v6, 5  ;;  %v3033_v22 = vld [vmem:[#allocation3 + $0x40] sm:$0xf] }
 0x210   : > { %v3114_v41 = vor.u32 %v3113_v15, %v3110_v31  ;;  %v3216_v53 = vsel %vm6853_vm12, %v5224_v11, %v3215_v40  ;;  %v3034_v25 = vld [vmem:[#allocation3 + $0x44] sm:$0x1]  ;;  %v3122_v18 = vshrl.u32 %v3033_v22, 16  ;;  %v3125_v7 = vshll.u32 %v3033_v22, 16  ;;  %v3177_v1 = vld [vmem:[#allocation3 + $0x40] sm:$0xe] }
 0x211   : > { %v3220_v16 = vsel %vm6853_vm12, %v5225_v33, %v3219_v35  ;;  %v3106_v60 = vsel %vm6370_vm2, %v3101_v37, %v3105_v12  ;;  %v3119_v63 = vrot.slane %v3117_v17, 5  ;;  %3241 = vst [vmem:[#allocation4 + $0xb0] sm:$0xf] %v3216_v53  ;;  %v3131_v56 = vshll.u32 %v3034_v25, 16  ;;  %v5256_v49 = vld [vmem:[#allocation4 + $0x3c] sm:$0xf0]  ;;  %v4054_v53 = vpop.f32.mrf.mxu0 }
 0x212   : > { %v3115_v61 = vrot.slane %v3114_v41, 4  ;;  %3161 = vst [vmem:[#allocation4 + $0xac] sm:$0xf] %v3106_v60  ;;  %v3124_v10 = vrot.slane %v3122_v18, 4  ;;  %v3127_v0 = vrot.slane %v3125_v7, 5  ;;  %v5226_v26 = vrot.slane %v3177_v1, 9 }
 0x213   : > { %4213 = vmatmul.bf16.gmra.mxu3 %v5359_v32  ;;  %3242 = vst [vmem:[#allocation4 + $0xd4] sm:$0xf] %v3220_v16  ;;  %v3178_v39 = vld [vmem:[#allocation3 + $0x44] sm:$0x1]  ;;  %v5871_v4 = vld [vmem:[#allocation4 + $0x108] sm:$0xf0] }
 0x214   : > { %v3120_v2 = vsel %vm6370_vm2, %v3115_v61, %v3119_v63  ;;  %v3128_v46 = vor.u32 %v3127_v0, %v3124_v10  ;;  %v3223_v50 = vrot.slane %v3178_v39, 5  ;;  %v5841_v43 = vld [vmem:[#allocation4 + $0x1c] sm:$0xf]  ;;  %v5670_v38 = vld [vmem:[%s6325_s21 + $0x110] sm:$0xf]  ;;  %v3133_v58 = vrot.slane %v3131_v56, 5 }
 0x215   : > { %3162 = vst [vmem:[#allocation4 + $0xd0] sm:$0xf] %v3120_v2  ;;  %v5259_v5 = vor.u32 %v5841_v43, %v5256_v49  ;;  %v3035_v45 = vld [vmem:[#allocation3 + $0x48] sm:$0xf]  ;;  %v3180_v36 = vld [vmem:[#allocation3 + $0x4c] sm:$0x1] }
 0x216   : > { %v3129_v30 = vrot.slane %v3128_v46, 4  ;;  %v3179_v27 = vld [vmem:[#allocation3 + $0x48] sm:$0xe]  ;;  %v3224_v28 = vsel %vm6853_vm12, %v5226_v26, %v3223_v50  ;;  %v3136_v54 = vshrl.u32 %v3035_v45, 16  ;;  %v3139_v62 = vshll.u32 %v3035_v45, 16 }
 0x217   : > { %v5227_v13 = vrot.slane %v3179_v27, 9  ;;  %v5946_v34 = vld [vmem:[%s6325_s21 + $0x114] sm:$0xf0]  ;;  %v3227_v20 = vrot.slane %v3180_v36, 5  ;;  %3243 = vst [vmem:[#allocation4 + $0xf8] sm:$0xf] %v3224_v28 }
 0x218   : > { %v3134_v19 = vsel %vm6370_vm2, %v3129_v30, %v3133_v58  ;;  %v5354_v21 = vld [vmem:[#allocation4 + $0xe8] sm:$0xf]  ;;  %v3138_v44 = vrot.slane %v3136_v54, 4  ;;  %v3141_v14 = vrot.slane %v3139_v62, 5  ;;  %v3036_v57 = vld [vmem:[#allocation3 + $0x4c] sm:$0x1]  ;;  %v5671_v59 = vor.u32 %v5946_v34, %v5670_v38 }
 0x219   : > { %3163 = vst [vmem:[#allocation4 + $0xf4] sm:$0xf] %v3134_v19  ;;  %v5355_v23 = vor.u32 %v5871_v4, %v5354_v21  ;;  %v4112_v48 = vpop.f32.mrf.mxu3  ;;  %v3228_v24 = vsel %vm6853_vm12, %v5227_v13, %v3227_v20  ;;  %v3145_v6 = vshll.u32 %v3036_v57, 16  ;;  %v5292_v31 = vld [vmem:[#allocation4 + $0x84] sm:$0xf0]  ;;  %v4056_v49 = vpop.f32.mrf.mxu0 }
 0x21a   : > { %v3142_v42 = vor.u32 %v3141_v14, %v3138_v44  ;;  %3244 = vst [vmem:[#allocation4 + $0x11c] sm:$0xf] %v3228_v24  ;;  %v5850_v3 = vld [vmem:[#allocation4 + $0x64] sm:$0xf]  ;;  %v5674_v17 = vld [vmem:[%s6325_s21 + $0x120] sm:$0xf] }
 0x21b   : > { %4256 = vmatmul.bf16.vlgmr.msra.gmra.mxu1 %v5259_v5  ;;  %v3147_v8 = vrot.slane %v3145_v6, 5  ;;  %v5295_v15 = vor.u32 %v5850_v3, %v5292_v31  ;;  %v5846_v51 = vld [vmem:[#allocation4 + $0x40] sm:$0xf0]  ;;  %v5947_v9 = vld [vmem:[%s6325_s21 + $0x124] sm:$0xf0] }
 0x21c   : > { %v3143_v55 = vrot.slane %v3142_v42, 4  ;;  %v5262_v52 = vld [vmem:[#allocation4 + $0x20] sm:$0xf]  ;;  %v5675_v33 = vor.u32 %v5947_v9, %v5674_v17  ;;  %v5328_v12 = vld [vmem:[#allocation4 + $0xcc] sm:$0xf0] }
 0x21d   : > { %v5263_v40 = vor.u32 %v5846_v51, %v5262_v52  ;;  %v5859_v41 = vld [vmem:[#allocation4 + $0xac] sm:$0xf]  ;;  %v5678_v18 = vld [vmem:[%s6325_s21 + $0x130] sm:$0xf]  ;;  %v5948_v7 = vld [vmem:[%s6325_s21 + $0x134] sm:$0xf0] }
 0x21e   : > { %v3148_v29 = vsel %vm6370_vm2, %v3143_v55, %v3147_v8  ;;  %v5331_v22 = vor.u32 %v5859_v41, %v5328_v12  ;;  %v5855_v16 = vld [vmem:[#allocation4 + $0x88] sm:$0xf0]  ;;  %v5298_v60 = vld [vmem:[#allocation4 + $0x68] sm:$0xf]  ;;  %v5679_v63 = vor.u32 %v5948_v7, %v5678_v18  ;;  %v5864_v5 = vld [vmem:[#allocation4 + $0xd0] sm:$0xf0] }
 0x21f   : > { %4184 = vmatmul.bf16.gmra.mxu2 %v5355_v23  ;;  %3164 = vst [vmem:[#allocation4 + $0x118] sm:$0xf] %v3148_v29  ;;  %v5299_v61 = vor.u32 %v5855_v16, %v5298_v60  ;;  %v5682_v38 = vld [vmem:[%s6325_s21 + $0x140] sm:$0xf]  ;;  %v5949_v45 = vld [vmem:[%s6325_s21 + $0x144] sm:$0xf0] }
 0x220   : > { %v5868_v4 = vld [vmem:[#allocation4 + $0xf4] sm:$0xf]  ;;  %v5334_v58 = vld [vmem:[#allocation4 + $0xb0] sm:$0xf]  ;;  %v5683_v62 = vor.u32 %v5949_v45, %v5682_v38  ;;  %v7154_v45 = vld [vmem:[%s7282_s8] ss:$0 sm:$0xff] }
 0x221   : > { %v4114_v32 = vpop.f32.mrf.mxu3  ;;  %v5335_v27 = vor.u32 %v5864_v5, %v5334_v58  ;;  %v4059_v54 = vpop.f32.mrf.mxu0  ;;  %v5873_v57 = vld [vmem:[#allocation4 + $0x118] sm:$0xf0] }
 0x223   : > { %4437 = vmatmul.bf16.vlgmr.msra.gmra.mxu3 %v5671_v59  ;;  %v5370_v59 = vld [vmem:[#allocation4 + $0xf8] sm:$0xf] }
 0x224   : > { %v5371_v42 = vor.u32 %v5873_v57, %v5370_v59 }
 0x226   : > { %v4083_v11 = vpop.f32.mrf.mxu2  ;;  %v5364_v39 = vld [vmem:[#allocation4 + $0x114] sm:$0xf0] }
 0x227   : > { %v4084_v10 = vadd.f32 %v4083_v11, %v4054_v53  ;;  %v5367_v43 = vor.u32 %v5868_v4, %v5364_v39 }
 0x229   : > { %v7105_v1 = vadd.f32 %v4112_v48, %v4084_v10  ;;  %v4061_v44 = vpop.f32.mrf.mxu0 }
 0x22b   : > { %4261 = vmatmul.bf16.gmra.mxu1 %v5295_v15 }
 0x22e   : > { %v4117_v35 = vpop.f32.mrf.mxu3  ;;  %v4085_v47 = vpop.f32.mrf.mxu2 }
 0x22f   : > { %4285 = vmatmul.bf16.vlgmr.msra.gmra.mxu2 %v5263_v40  ;;  %v4086_v46 = vadd.f32 %v4085_v47, %v4056_v49 }
 0x231   : > { %v7109_v30 = vadd.f32 %v4114_v32, %v4086_v46 }
 0x233   : > { %4442 = vmatmul.bf16.gmra.mxu3 %v5675_v33 }
 0x236   : > { %v4064_v37 = vpop.f32.mrf.mxu1  ;;  %v4119_v25 = vpop.f32.mrf.mxu3 }
 0x23b   : > { %4266 = vmatmul.bf16.gmra.mxu1 %v5331_v22 }
 0x23e   : > { %v4066_v56 = vpop.f32.mrf.mxu1 }
 0x23f   : > { %4290 = vmatmul.bf16.gmra.mxu2 %v5299_v61 }
 0x241   : > { %v4088_v0 = vpop.f32.mrf.mxu2 }
 0x242   : > { %v4089_v13 = vadd.f32 %v4088_v0, %v4059_v54  ;;  %v4228_v0 = vpop.f32.mrf.mxu0 }
 0x243   : > { %4447 = vmatmul.bf16.gmra.mxu3 %v5679_v63 }
 0x244   : > { %v7111_v21 = vadd.f32 %v4117_v35, %v4089_v13 }
 0x246   : > { %v4122_v2 = vpop.f32.mrf.mxu3 }
 0x248   : > { %v4069_v50 = vpop.f32.mrf.mxu1 }
 0x249   : > { %v4090_v26 = vpop.f32.mrf.mxu2 }
 0x24a   : > { %v4091_v23 = vadd.f32 %v4090_v26, %v4061_v44 }
 0x24b   : > { %4271 = vmatmul.bf16.gmra.mxu1 %v5367_v43 }
 0x24c   : > { %v7113_v55 = vadd.f32 %v4119_v25, %v4091_v23 }
 0x24e   : > { %v4124_v28 = vpop.f32.mrf.mxu3 }
 0x24f   : > { %4295 = vmatmul.bf16.gmra.mxu2 %v5335_v27 }
 0x250   : > { %v4071_v36 = vpop.f32.mrf.mxu1 }
 0x252   : > { %v4093_v34 = vpop.f32.mrf.mxu2 }
 0x253   : > { %4452 = vmatmul.bf16.gmra.mxu3 %v5683_v62  ;;  %v4094_v19 = vadd.f32 %v4093_v34, %v4064_v37  ;;  %v7160_v62 = vld [vmem:[%s7283_s9] ss:$0 sm:$0xff] }
 0x255   : > { %v7115_v3 = vadd.f32 %v4122_v2, %v4094_v19 }
 0x256   : > { %v4127_v20 = vpop.f32.mrf.mxu3 }
 0x258   : > { %v4141_v14 = vpop.f32.mrf.mxu1 }
 0x259   : > { %v4142_v39 = vadd.f32 %v4141_v14, %v7105_v1 }
 0x25a   : > { %v4095_v48 = vpop.f32.mrf.mxu2 }
 0x25b   : > { %v4096_v24 = vadd.f32 %v4095_v48, %v4066_v56 }
 0x25d   : > { %v7117_v52 = vadd.f32 %v4124_v28, %v4096_v24 }
 0x25e   : > { %v4129_v6 = vpop.f32.mrf.mxu3 }
 0x25f   : > { %4300 = vmatmul.bf16.gmra.mxu2 %v5371_v42 }
 0x260   : > { %v4143_v8 = vpop.f32.mrf.mxu1 }
 0x261   : > { %v4144_v38 = vadd.f32 %v4143_v8, %v7109_v30  ;;  %v7165_v30 = vld [vmem:[%s7279_s5] ss:$0 sm:$0xff] }
 0x262   : > { %v4098_v29 = vpop.f32.mrf.mxu2 }
 0x263   : > { %v4099_v31 = vadd.f32 %v4098_v29, %v4069_v50  ;;  %v4230_v50 = vpop.f32.mrf.mxu0 }
 0x265   : > { %v7119_v35 = vadd.f32 %v4127_v20, %v4099_v31  ;;  %v7170_v20 = vld [vmem:[%s7280_s6] ss:$0 sm:$0xff] }
 0x266   : > { %v4199_v32 = vpop.f32.mrf.mxu3 }
 0x268   : > { %v4146_v15 = vpop.f32.mrf.mxu1 }
 0x269   : > { %v4147_v14 = vadd.f32 %v4146_v15, %v7111_v21 }
 0x26a   : > { %v4100_v51 = vpop.f32.mrf.mxu2 }
 0x26b   : > { %v4101_v17 = vadd.f32 %v4100_v51, %v4071_v36  ;;  %v4233_v13 = vpop.f32.mrf.mxu0 }
 0x26d   : > { %v7125_v41 = vadd.f32 %v4129_v6, %v4101_v17 }
 0x26e   : > { %v4201_v9 = vpop.f32.mrf.mxu3 }
 0x270   : > { %v4148_v11 = vpop.f32.mrf.mxu1 }
 0x271   : > { %v4149_v15 = vadd.f32 %v4148_v11, %v7113_v55 }
 0x272   : > { %v4170_v40 = vpop.f32.mrf.mxu2 }
 0x273   : > { %v4171_v26 = vadd.f32 %v4170_v40, %v4142_v39  ;;  %v4235_v21 = vpop.f32.mrf.mxu0 }
 0x275   : > { %v4200_v5 = vadd.f32 %v4199_v32, %v4171_v26 }
 0x276   : > { %v4204_v33 = vpop.f32.mrf.mxu3 }
 0x277   : > { %v4229_v28 = vadd.f32 %v4228_v0, %v4200_v5 }
 0x278   : > { %v7121_v47 = vpop.f32.mrf.mxu1 }
 0x279   : > { %v4152_v5 = vadd.f32 %v7121_v47, %v7115_v3 }
 0x27a   : > { %v4172_v37 = vpop.f32.mrf.mxu2 }
 0x27b   : > { %v4173_v27 = vadd.f32 %v4172_v37, %v4144_v38 }
 0x27d   : > { %v4202_v34 = vadd.f32 %v4201_v9, %v4173_v27 }
 0x27e   : > { %v7123_v12 = vpop.f32.mrf.mxu3 }
 0x27f   : > { %v4231_v59 = vadd.f32 %v4230_v50, %v4202_v34 }
 0x280   : > { %v7127_v53 = vpop.f32.mrf.mxu1 }
 0x282   : > { %v4175_v22 = vpop.f32.mrf.mxu2 }
 0x283   : > { %v4176_v24 = vadd.f32 %v4175_v22, %v4147_v14  ;;  %v4154_v14 = vadd.f32 %v7127_v53, %v7117_v52 }
 0x285   : > { %v4205_v31 = vadd.f32 %v4204_v33, %v4176_v24 }
 0x286   : > { %v7129_v16 = vpop.f32.mrf.mxu3 }
 0x287   : > { %v4234_v22 = vadd.f32 %v4233_v13, %v4205_v31 }
 0x288   : > { %v7131_v18 = vpop.f32.mrf.mxu1 }
 0x28a   : > { %v4177_v25 = vpop.f32.mrf.mxu2 }
 0x28b   : > { %v4178_v37 = vadd.f32 %v4177_v25, %v4149_v15 }
 0x28d   : > { %v4207_v11 = vadd.f32 %v7123_v12, %v4178_v37 }
 0x28e   : > { %v7133_v7 = vpop.f32.mrf.mxu3 }
 0x290   : > { %v7139_v63 = vpop.f32.mrf.mxu1 }
 0x292   : > { %v7135_v60 = vpop.f32.mrf.mxu2 }
 0x293   : > { %v4181_v27 = vadd.f32 %v7135_v60, %v4152_v5 }
 0x296   : > { %v7137_v61 = vpop.f32.mrf.mxu3 }
 0x298   : > { %v4257_v49 = vpop.f32.mrf.mxu1 }
 0x299   : > { %v4258_v54 = vadd.f32 %v4257_v49, %v4229_v28  ;;  %v4236_v28 = vadd.f32 %v4235_v21, %v4207_v11 }
 0x29a   : > { %v7141_v56 = vpop.f32.mrf.mxu2 }
 0x29e   : > { %v7143_v10 = vpop.f32.mrf.mxu3 }
 0x2a0   : > { %v4259_v43 = vpop.f32.mrf.mxu1 }
 0x2a1   : > { %v4260_v6 = vadd.f32 %v4259_v43, %v4231_v59 }
 0x2a2   : > { %v7145_v2 = vpop.f32.mrf.mxu2 }
 0x2a6   : > { %v4438_v46 = vpop.f32.mrf.mxu3 }
 0x2a7   : > { %v4462_v1 = vmul.f32 %v7154_v45, %v4438_v46 }
 0x2a8   : > { %v4262_v44 = vpop.f32.mrf.mxu1 }
 0x2a9   : > { %v4474_v23 = vadd.f32 %v7160_v62, %v4462_v1  ;;  %v4263_v39 = vadd.f32 %v4262_v44, %v4234_v22 }
 0x2aa   : > { %v7148_v4 = vpop.f32.mrf.mxu2 }
 0x2ae   : > { %v4440_v58 = vpop.f32.mrf.mxu3 }
 0x2af   : > { %v4463_v51 = vmul.f32 %v7154_v45, %v4440_v58  ;;  %v4238_v58 = vpop.f32.mrf.mxu0 }
 0x2b0   : > { %v4264_v40 = vpop.f32.mrf.mxu1 }
 0x2b1   : > { %v4475_v0 = vadd.f32 %v7160_v62, %v4463_v51 }
 0x2b2   : > { %v4286_v36 = vpop.f32.mrf.mxu2 }
 0x2b3   : > { %v4287_v19 = vadd.f32 %v4286_v36, %v4258_v54  ;;  %v4265_v36 = vadd.f32 %v4264_v40, %v4236_v28 }
 0x2b5   : > { %v4310_v48 = vmul.f32 %v7165_v30, %v4287_v19  ;;  %v4210_v19 = vadd.f32 %v7129_v16, %v4181_v27 }
 0x2b6   : > { %v4443_v57 = vpop.f32.mrf.mxu3 }
 0x2b7   : > { %v4322_v42 = vadd.f32 %v7170_v20, %v4310_v48  ;;  %v4464_v26 = vmul.f32 %v7154_v45, %v4443_v57  ;;  %v4239_v48 = vadd.f32 %v4238_v58, %v4210_v19  ;;  %v4240_v59 = vpop.f32.mrf.mxu0 }
 0x2b8   : > { %v4267_v1 = vpop.f32.mrf.mxu1 }
 0x2b9   : > { %v4482_v8 = vadd.f32 %v4474_v23, %v4322_v42  ;;  %v4476_v25 = vadd.f32 %v7160_v62, %v4464_v26  ;;  %v4183_v23 = vadd.f32 %v7141_v56, %v4154_v14  ;;  %v4268_v16 = vadd.f32 %v4267_v1, %v4239_v48 }
 0x2ba   : > { %v4288_v29 = vpop.f32.mrf.mxu2  ;;  %v4157_v56 = vadd.f32 %v7131_v18, %v7119_v35 }
 0x2bb   : > { %v4490_v32 = vmax.f32 %v4482_v8, 0.0  ;;  %v4289_v17 = vadd.f32 %v4288_v29, %v4260_v6  ;;  %v4212_v52 = vadd.f32 %v7133_v7, %v4183_v23 }
 0x2bc   : > { %v4186_v21 = vadd.f32 %v7145_v2, %v4157_v56 }
 0x2bd   : > { %4498 = vst [vmem:[%s7181_s27] sm:$0xff] %v4490_v32  ;;  %v4311_v9 = vmul.f32 %v7165_v30, %v4289_v17  ;;  %v4241_v15 = vadd.f32 %v4240_v59, %v4212_v52 }
 0x2be   : > { %v4445_v49 = vpop.f32.mrf.mxu3  ;;  %v4215_v22 = vadd.f32 %v7137_v61, %v4186_v21 }
 0x2bf   : > { %v4323_v33 = vadd.f32 %v7170_v20, %v4311_v9  ;;  %v4465_v47 = vmul.f32 %v7154_v45, %v4445_v49  ;;  %v4243_v18 = vpop.f32.mrf.mxu0 }
 0x2c0   : > { %v4269_v8 = vpop.f32.mrf.mxu1 }
 0x2c1   : > { %v4483_v46 = vadd.f32 %v4475_v0, %v4323_v33  ;;  %v4477_v57 = vadd.f32 %v7160_v62, %v4465_v47  ;;  %v4270_v40 = vadd.f32 %v4269_v8, %v4241_v15 }
 0x2c2   : > { %v4291_v55 = vpop.f32.mrf.mxu2 }
 0x2c3   : > { %v4491_v50 = vmax.f32 %v4483_v46, 0.0  ;;  %v4292_v43 = vadd.f32 %v4291_v55, %v4263_v39  ;;  %v4159_v39 = vadd.f32 %v7139_v63, %v7125_v41  ;;  %v4244_v55 = vadd.f32 %v4243_v18, %v4215_v22 }
 0x2c5   : > { %4499 = vst [vmem:[%s7181_s27 + $0x8] sm:$0xff] %v4491_v50  ;;  %v4312_v38 = vmul.f32 %v7165_v30, %v4292_v43  ;;  %v4188_v26 = vadd.f32 %v7148_v4, %v4159_v39 }
 0x2c6   : > { %v4448_v34 = vpop.f32.mrf.mxu3 }
 0x2c7   : > { %v4324_v54 = vadd.f32 %v7170_v20, %v4312_v38  ;;  %v4466_v6 = vmul.f32 %v7154_v45, %v4448_v34  ;;  %v4217_v38 = vadd.f32 %v7143_v10, %v4188_v26  ;;  %v4245_v27 = vpop.f32.mrf.mxu0 }
 0x2c8   : > { %v4272_v49 = vpop.f32.mrf.mxu1 }
 0x2c9   : > { %v4484_v12 = vadd.f32 %v4476_v25, %v4324_v54  ;;  %v4478_v51 = vadd.f32 %v7160_v62, %v4466_v6  ;;  %v4273_v50 = vadd.f32 %v4272_v49, %v4244_v55  ;;  %v4246_v54 = vadd.f32 %v4245_v27, %v4217_v38 }
 0x2ca   : > { %v4293_v13 = vpop.f32.mrf.mxu2 }
 0x2cb   : > { %v4492_v3 = vmax.f32 %v4484_v12, 0.0  ;;  %v4294_v44 = vadd.f32 %v4293_v13, %v4265_v36 }
 0x2cd   : > { %4500 = vst [vmem:[%s7181_s27 + $0x10] sm:$0xff] %v4492_v3  ;;  %v4313_v60 = vmul.f32 %v7165_v30, %v4294_v44 }
 0x2ce   : > { %v4450_v32 = vpop.f32.mrf.mxu3 }
 0x2cf   : > { %v4325_v24 = vadd.f32 %v7170_v20, %v4313_v60  ;;  %v4467_v33 = vmul.f32 %v7154_v45, %v4450_v32 }
 0x2d0   : > { %v4274_v28 = vpop.f32.mrf.mxu1 }
 0x2d1   : > { %v4485_v42 = vadd.f32 %v4477_v57, %v4325_v24  ;;  %v4479_v11 = vadd.f32 %v7160_v62, %v4467_v33  ;;  %v4275_v12 = vadd.f32 %v4274_v28, %v4246_v54 }
 0x2d2   : > { %v4296_v29 = vpop.f32.mrf.mxu2 }
 0x2d3   : > { %v4493_v53 = vmax.f32 %v4485_v42, 0.0  ;;  %v4297_v31 = vadd.f32 %v4296_v29, %v4268_v16 }
 0x2d5   : > { %4501 = vst [vmem:[%s7181_s27 + $0x18] sm:$0xff] %v4493_v53  ;;  %v4314_v17 = vmul.f32 %v7165_v30, %v4297_v31 }
 0x2d6   : > { %v4453_v46 = vpop.f32.mrf.mxu3 }
 0x2d7   : > { %v4326_v9 = vadd.f32 %v7170_v20, %v4314_v17  ;;  %v4468_v5 = vmul.f32 %v7154_v45, %v4453_v46 }
 0x2d9   : > { %v4486_v37 = vadd.f32 %v4478_v51, %v4326_v9  ;;  %v4480_v58 = vadd.f32 %v7160_v62, %v4468_v5 }
 0x2da   : > { %v4298_v7 = vpop.f32.mrf.mxu2 }
 0x2db   : > { %v4494_v0 = vmax.f32 %v4486_v37, 0.0  ;;  %v4299_v35 = vadd.f32 %v4298_v7, %v4270_v40 }
 0x2dd   : > { %4502 = vst [vmem:[%s7181_s27 + $0x20] sm:$0xff] %v4494_v0  ;;  %v4315_v2 = vmul.f32 %v7165_v30, %v4299_v35 }
 0x2de   : > { %v4455_v36 = vpop.f32.mrf.mxu3 }
 0x2df   : > { %v4327_v61 = vadd.f32 %v7170_v20, %v4315_v2  ;;  %v4469_v19 = vmul.f32 %v7154_v45, %v4455_v36 }
 0x2e1   : > { %v4487_v43 = vadd.f32 %v4479_v11, %v4327_v61  ;;  %v4481_v44 = vadd.f32 %v7160_v62, %v4469_v19 }
 0x2e2   : > { %v4301_v25 = vpop.f32.mrf.mxu2 }
 0x2e3   : > { %v4495_v41 = vmax.f32 %v4487_v43, 0.0  ;;  %v4302_v63 = vadd.f32 %v4301_v25, %v4273_v50 }
 0x2e5   : > { %4503 = vst [vmem:[%s7181_s27 + $0x28] sm:$0xff] %v4495_v41  ;;  %v4316_v4 = vmul.f32 %v7165_v30, %v4302_v63 }
 0x2e7   : > { %v4328_v1 = vadd.f32 %v7170_v20, %v4316_v4 }
 0x2e9   : > { %v4488_v13 = vadd.f32 %v4480_v58, %v4328_v1 }
 0x2ea   : > { %v4303_v34 = vpop.f32.mrf.mxu2 }
 0x2eb   : > { %v4496_v10 = vmax.f32 %v4488_v13, 0.0  ;;  %v4304_v3 = vadd.f32 %v4303_v34, %v4275_v12 }
 0x2ed   : > { %4504 = vst [vmem:[%s7181_s27 + $0x30] sm:$0xff] %v4496_v10  ;;  %v4317_v47 = vmul.f32 %v7165_v30, %v4304_v3 }
 0x2ef   : > { %v4329_v14 = vadd.f32 %v7170_v20, %v4317_v47 }
 0x2f1   : > { %v4489_v60 = vadd.f32 %v4481_v44, %v4329_v14 }
 0x2f3   : > { %v4497_v23 = vmax.f32 %v4489_v60, 0.0 }
 0x2f5   : > { %4505 = vst [vmem:[%s7181_s27 + $0x38] sm:$0xff] %v4497_v23 }
 0x2f6   : > { %6102 = shalt.err (!%p6099_p9)
}
 0x2f7   : > { %s6163_s22 = smov 128   ;;  %s6164_s27 = smov 8  }
 0x2f8   : > { %5972 = dma.vmem_to_hbm [thread:$0]  (%p6260_p4), %s4522_s4, 1024, %s4524_s29, %s4507_s16, %s6163_s22, %s6163_s22, %s6164_s27  }
 0x2f9 PF: > { %p5984_p10 = scmp.ge.s32.totalorder %s6157_s18, 2  ;;  %s4538_s11 = sand.u32 1, %s6137_s13  }
 0x2fa   : > { %s4539_s19 = scalar_lea.sflag [#allocation7], %s4538_s11 }
 0x2fb   : > { %p5979_p11 = pnand %p5984_p10, %p6267_p8 }
 0x2fd   : > { %p5980_p12 = pneg %p5979_p11 }
 0x2ff   : > { %6132 = dma.done.wait (%p5980_p12), %s4539_s19, 1024  }
 0x300   : > { %6134 = vsyncadd (%p5980_p12), %s4539_s19, 4294966272  ;;  %s24_s18 = sadd.s32 1, %s6157_s18   ;;  %s7301_s23 = sld [smem:[#allocation11_spill]] }
 0x301   : > { %p21_p13 = scmp.ge.s32.totalorder %s24_s18, 4   ;;  %s7302_s13 = smov %s6141_s14 }
 0x302   : > { %s7303_s14 = smov %s6145_s15  ;;  %s7304_s15 = smov %s6273_s26 }
 0x303   : > { %s7305_s16 = smov %s6153_s17  ;;  %23 = sbr.rel (!%p21_p13) target bundleno = 7 (0x7), region = 114 }
 0x306   : > { %s7306_s17 = smov %s7301_s23 }
 0x308   :  { %4545 = vsyncpa [#allocation6], 1 }
 0x309   :  { %4547 = vsyncpa [#allocation6 + $0x1], 1 }
 0x30a   :  { %4548 = vsyncpa [#allocation7], 1 }
 0x30b   :  { %4550 = vsyncpa [#allocation7 + $0x1], 1 }

</bundles_post_ra>
